<compile_context>
chip_gen: v5e
topology: v5e:2x2
jax: 0.10.0
libtpu: 0.0.40
codegen_flags: <defaults>
</compile_context>

<pallas_src>
import jax
import jax.numpy as jnp
from jax.experimental import pallas as pl
from jax.experimental.pallas import tpu as pltpu

# ---- model hyper-parameters (stand-ins for `lib.*`) ----
VOCAB = 50          # len(lib.ws)
EMBED = 100         # hard-coded in the module
MAX_LEN = 8         # lib.max_len
HIDDEN = 32         # lib.hidden_size
NUM_LAYERS = 2      # lib.num_layers (kernel below is specialized to 2)
BATCH = 2

T = MAX_LEN
B = BATCH
H = HIDDEN
G2 = 8 * H          # fused gate width (both directions, gate-major interleave)
W16 = 16 * H        # fwd- and bwd-time-indexed projection halves side by side
TB = T * B


# ---- packed-parameter slab layout (all matmul regions start on 8-row boundaries) ----
def _round8(x):
    return ((x + 7) // 8) * 8


VOCAB_PAD = _round8(VOCAB)            # 56
R_TAB = 0                             # (VOCAB_PAD, 16H)  emb @ W0_ih(packed) + b0(packed)
R_WHH0 = R_TAB + VOCAB_PAD            # (2H, 8H)          layer-0 fused hidden weights
R_WIH1 = R_WHH0 + 2 * H               # (2H, 16H)         layer-1 fused input weights
R_B1 = R_WIH1 + 2 * H                 # (1, 16H)          layer-1 fused bias
R_FCB = R_B1 + 1                      # (1, 2)            fc bias
R_WHH1 = _round8(R_FCB + 1)           # (2H, 8H)          layer-1 fused hidden weights
R_FCW = R_WHH1 + 2 * H                # (2H, 2)           fc weight
ROWS_TOTAL = _round8(R_FCW + 2 * H)   # 320
LANES = W16                           # 512


# --------------------------------------------------------------------------
# Fused Pallas kernel
# --------------------------------------------------------------------------
def fused_forward_kernel(ids_ref, params_ref, out_ref):
    """Entire model forward in one kernel.

    ids_ref    : [T*B, 1] int32  token ids, time-major (row t*B + b)
    params_ref : [320, 512] f32  packed parameter slab (layout above)
    out_ref    : [B, 2]          log-probabilities (only HBM write)
    """
    f32 = jnp.float32

    # ---- static, tile-aligned views into the packed slab (loads, no DMA) ----
    table = params_ref[R_TAB:R_TAB + VOCAB_PAD, :]           # (56, 512)
    whh0 = params_ref[R_WHH0:R_WHH0 + 2 * H, 0:G2]           # (64, 256)
    wih1 = params_ref[R_WIH1:R_WIH1 + 2 * H, :]              # (64, 512)
    b1 = params_ref[R_B1:R_B1 + 1, :]                        # (1, 512)
    whh1 = params_ref[R_WHH1:R_WHH1 + 2 * H, 0:G2]           # (64, 256)
    fcw = params_ref[R_FCW:R_FCW + 2 * H, 0:2]               # (64, 2)
    fcb = params_ref[R_FCB:R_FCB + 1, 0:2]                   # (1, 2)

    # ---- embedding gather + layer-0 input projection (bias folded) in ONE matmul ----
    ids = ids_ref[...]                                        # (TB, 1) int32
    iota = jax.lax.broadcasted_iota(jnp.int32, (TB, VOCAB_PAD), 1)
    onehot = (iota == ids).astype(f32)                        # (TB, 56)
    xp0 = jnp.dot(onehot, table, preferred_element_type=f32)  # (TB, 16H)

    # Fused-gate column layout: [i_f,i_b | f_f,f_b | g_f,g_b | o_f,o_b], 2H per gate.
    def lstm_cell(addend, h, c, w_hh):
        # h, c are fused [fwd | bwd] states of shape (B, 2H).
        gates = addend + jnp.dot(h, w_hh, preferred_element_type=f32)   # (B, 8H)
        sg = jax.nn.sigmoid(gates)                 # one EUP pass over all gates
        g = jnp.tanh(gates[:, 4 * H:6 * H])        # tanh only on the g block
        c_new = sg[:, 2 * H:4 * H] * c + sg[:, 0:2 * H] * g
        h_new = sg[:, 6 * H:8 * H] * jnp.tanh(c_new)
        return h_new, c_new

    # ---- layer 0: both directions per step, one fused (B,2H)@(2H,8H) MXU push ----
    xpf0 = xp0[:, 0:G2]     # row t: fwd-direction gate addend for time t (_f columns)
    xpb0 = xp0[:, G2:]      # row t: bwd-direction gate addend for time t (_b columns)
    h = jnp.zeros((B, 2 * H), f32)
    c = jnp.zeros((B, 2 * H), f32)
    hs0 = []
    for s in range(T):                               # fully unrolled, static
        rf = s * B                                   # fwd processes time s
        rb = (T - 1 - s) * B                         # bwd processes time T-1-s
        addend = xpf0[rf:rf + B, :] + xpb0[rb:rb + B, :]     # independent of h
        h, c = lstm_cell(addend, h, c, whh0)
        hs0.append(h)                                # stays in vregs, no scratch store

    # ---- layer 1: hoisted input projections (time reversal via slice indices only) ----
    A = jnp.concatenate(hs0, axis=0)                 # (TB, 2H): row block s = [h_f(s)|h_b(T-1-s)]
    p_f = jnp.dot(A[:, 0:H], wih1[0:H, :], preferred_element_type=f32) + b1   # y_f part (+bias)
    p_b = jnp.dot(A[:, H:2 * H], wih1[H:2 * H, :], preferred_element_type=f32)  # y_b part

    h = jnp.zeros((B, 2 * H), f32)
    c = jnp.zeros((B, 2 * H), f32)
    for s in range(T):                               # fully unrolled
        rf = s * B
        rb = (T - 1 - s) * B
        addend = (p_f[rf:rf + B, 0:G2] + p_b[rb:rb + B, 0:G2]   # fwd gates @ time s
                  + p_f[rb:rb + B, G2:] + p_b[rf:rf + B, G2:])  # bwd gates @ time T-1-s
        h, c = lstm_cell(addend, h, c, whh1)

    # TODO(synk): nn.LSTM inter-layer dropout is train-only; identity at inference.

    # ---- head: h == [h_fwd_final | h_bwd_final]; Linear(2H->2) + log_softmax ----
    logits = jnp.dot(h, fcw, preferred_element_type=f32) + fcb   # (B, 2)
    m = jnp.max(logits, axis=-1, keepdims=True)
    z = logits - m
    out_ref[...] = z - jnp.log(jnp.sum(jnp.exp(z), axis=-1, keepdims=True))


# --------------------------------------------------------------------------
# Wrapper
# --------------------------------------------------------------------------
_VMEM_SPEC = pl.BlockSpec(memory_space=pltpu.MemorySpace.VMEM)

_fused_call = pl.pallas_call(
    fused_forward_kernel,
    out_shape=jax.ShapeDtypeStruct((B, 2), jnp.float32),
    in_specs=[_VMEM_SPEC, _VMEM_SPEC],
    out_specs=_VMEM_SPEC,
)


@jax.jit
def model_forward(input_ids, packed_params):
    """input_ids: [B, MAX_LEN] int32, packed_params: [320, 512] f32 -> log-probs [B, 2]."""
    assert NUM_LAYERS == 2, "fused kernel is specialized to 2 LSTM layers"
    ids_tm = jnp.transpose(input_ids.astype(jnp.int32), (1, 0)).reshape(TB, 1)
    return _fused_call(ids_tm, packed_params)


# --------------------------------------------------------------------------
# Host-side parameter packing (runs once at init)
# --------------------------------------------------------------------------
def _scatter_gate_cols(w_d_4h, direction):
    """(D, 4H) PyTorch-order [i,f,g,o] -> (D, 8H) fused layout, zeros in the other dir."""
    d = w_d_4h.shape[0]
    zeros = jnp.zeros((d, H), jnp.float32)
    blocks = []
    for k in range(4):
        blk = w_d_4h[:, k * H:(k + 1) * H]
        blocks += ([blk, zeros] if direction == 0 else [zeros, blk])
    return jnp.concatenate(blocks, axis=1)


def pack_params(params):
    """Fold embedding into the layer-0 projection and pack everything into one slab."""
    h4 = 4 * H
    l0f, l0b = params["lstm"][0]["fw"], params["lstm"][0]["bw"]
    l1f, l1b = params["lstm"][1]["fw"], params["lstm"][1]["bw"]

    # layer 0: fold emb @ W_ih + bias into a (V, 16H) table
    w0p = jnp.concatenate([_scatter_gate_cols(l0f["w_ih"], 0),
                           _scatter_gate_cols(l0b["w_ih"], 1)], axis=1)       # (E, 16H)
    b0p = jnp.concatenate([_scatter_gate_cols(l0f["b"].reshape(1, h4), 0),
                           _scatter_gate_cols(l0b["b"].reshape(1, h4), 1)], axis=1)
    table0 = params["embedding"].astype(jnp.float32) @ w0p + b0p              # (V, 16H)

    whh0 = jnp.concatenate([_scatter_gate_cols(l0f["w_hh"], 0),
                            _scatter_gate_cols(l0b["w_hh"], 1)], axis=0)      # (2H, 8H)
    wih1 = jnp.concatenate([_scatter_gate_cols(l1f["w_ih"], 0),
                            _scatter_gate_cols(l1b["w_ih"], 1)], axis=1)      # (2H, 16H)
    b1p = jnp.concatenate([_scatter_gate_cols(l1f["b"].reshape(1, h4), 0),
                           _scatter_gate_cols(l1b["b"].reshape(1, h4), 1)], axis=1)
    whh1 = jnp.concatenate([_scatter_gate_cols(l1f["w_hh"], 0),
                            _scatter_gate_cols(l1b["w_hh"], 1)], axis=0)      # (2H, 8H)

    buf = jnp.zeros((ROWS_TOTAL, LANES), jnp.float32)
    buf = buf.at[R_TAB:R_TAB + VOCAB, :].set(table0)
    buf = buf.at[R_WHH0:R_WHH0 + 2 * H, 0:G2].set(whh0)
    buf = buf.at[R_WIH1:R_WIH1 + 2 * H, :].set(wih1)
    buf = buf.at[R_B1, :].set(b1p[0])
    buf = buf.at[R_FCB, 0:2].set(params["fc_b"])
    buf = buf.at[R_WHH1:R_WHH1 + 2 * H, 0:G2].set(whh1)
    buf = buf.at[R_FCW:R_FCW + 2 * H, 0:2].set(params["fc_w"])
    return buf


# --------------------------------------------------------------------------
# Pure-JAX reference (same math, no Pallas) for a sanity check
# --------------------------------------------------------------------------
def _ref_lstm_layer(x_tbd, w_ih_t, w_hh_t, b):
    _, Bb, _ = x_tbd.shape
    Hh = w_hh_t.shape[0]

    def step(carry, xt):
        h, c = carry
        gates = xt @ w_ih_t + h @ w_hh_t + b[None, :]
        i = jax.nn.sigmoid(gates[:, 0 * Hh:1 * Hh])
        f = jax.nn.sigmoid(gates[:, 1 * Hh:2 * Hh])
        g = jnp.tanh(gates[:, 2 * Hh:3 * Hh])
        o = jax.nn.sigmoid(gates[:, 3 * Hh:4 * Hh])
        c = f * c + i * g
        h = o * jnp.tanh(c)
        return (h, c), h

    (h, _), y = jax.lax.scan(step, (jnp.zeros((Bb, Hh)), jnp.zeros((Bb, Hh))), x_tbd)
    return y, h


def ref_forward(input_ids, params):
    emb = jnp.take(params["embedding"], input_ids, axis=0)
    x = jnp.transpose(emb, (1, 0, 2)).astype(jnp.float32)
    h_fw = h_bw = None
    for layer in range(NUM_LAYERS):
        pf = params["lstm"][layer]["fw"]
        pb = params["lstm"][layer]["bw"]
        y_f, h_fw = _ref_lstm_layer(x, pf["w_ih"], pf["w_hh"], pf["b"])
        y_b_rev, h_bw = _ref_lstm_layer(x[::-1], pb["w_ih"], pb["w_hh"], pb["b"])
        x = jnp.concatenate([y_f, y_b_rev[::-1]], axis=-1)
    feat = jnp.concatenate([h_fw, h_bw], axis=-1)
    logits = feat @ params["fc_w"] + params["fc_b"][None, :]
    return jax.nn.log_softmax(logits, axis=-1)


# --------------------------------------------------------------------------
# Deterministic parameter init (PyTorch shapes; uniform(-k, k), k = 1/sqrt(H))
# --------------------------------------------------------------------------
def init_params(key):
    k_embed, key = jax.random.split(key)
    params = {"embedding": jax.random.normal(k_embed, (VOCAB, EMBED), jnp.float32)}

    scale = 1.0 / jnp.sqrt(HIDDEN)
    lstm = []
    for layer in range(NUM_LAYERS):
        d_in = EMBED if layer == 0 else 2 * HIDDEN
        layer_p = {}
        for direction in ("fw", "bw"):
            key, k1, k2, k3, k4 = jax.random.split(key, 5)
            w_ih = jax.random.uniform(k1, (4 * HIDDEN, d_in), jnp.float32, -scale, scale)
            w_hh = jax.random.uniform(k2, (4 * HIDDEN, HIDDEN), jnp.float32, -scale, scale)
            b_ih = jax.random.uniform(k3, (4 * HIDDEN,), jnp.float32, -scale, scale)
            b_hh = jax.random.uniform(k4, (4 * HIDDEN,), jnp.float32, -scale, scale)
            layer_p[direction] = {
                "w_ih": w_ih.T,          # [d_in, 4H], PyTorch gate order i,f,g,o
                "w_hh": w_hh.T,          # [H, 4H]
                "b": b_ih + b_hh,        # [4H]
            }
        lstm.append(layer_p)
    params["lstm"] = lstm

    key, kw, kb = jax.random.split(key, 3)
    fc_scale = 1.0 / jnp.sqrt(2 * HIDDEN)
    fc_w = jax.random.uniform(kw, (2, 2 * HIDDEN), jnp.float32, -fc_scale, fc_scale)
    fc_b = jax.random.uniform(kb, (2,), jnp.float32, -fc_scale, fc_scale)
    params["fc_w"] = fc_w.T              # [2H, 2]
    params["fc_b"] = fc_b
    return params


if __name__ == "__main__":
    key = jax.random.PRNGKey(0)
    key, k_ids, k_params = jax.random.split(key, 3)

    input_ids = jax.random.randint(k_ids, (BATCH, MAX_LEN), 0, VOCAB, dtype=jnp.int32)
    params = init_params(k_params)
    packed = pack_params(params)          # once at init; kernel sees a single slab

    out = jax.block_until_ready(model_forward(input_ids, packed))
    ref = jax.block_until_ready(ref_forward(input_ids, params))

    assert out.shape == (BATCH, 2)
    assert jnp.allclose(out, ref, atol=2e-4, rtol=2e-4), (out, ref)

    print("KERNEL_OK")
</pallas_src>

<mosaic_0001>
module attributes {stable_mosaic.version = 11 : i64} {
  func.func @fused_forward_kernel(%arg0: memref<16x1xi32, #tpu.memory_space<vmem>>, %arg1: memref<320x512xf32, #tpu.memory_space<vmem>>, %arg2: memref<2x2xf32, #tpu.memory_space<vmem>>) attributes {dimension_semantics = [], scalar_prefetch = 0 : i64, scratch_operands = 0 : i64, tpu.core_type = #tpu.core_type<tc>} {
    %c0 = arith.constant 0 : index
    %c0_0 = arith.constant 0 : index
    %0 = vector.load %arg1[%c0, %c0_0] : memref<320x512xf32, #tpu.memory_space<vmem>>, vector<56x512xf32>
    %c56 = arith.constant 56 : index
    %c0_1 = arith.constant 0 : index
    %1 = vector.load %arg1[%c56, %c0_1] : memref<320x512xf32, #tpu.memory_space<vmem>>, vector<64x256xf32>
    %c120 = arith.constant 120 : index
    %c0_2 = arith.constant 0 : index
    %2 = vector.load %arg1[%c120, %c0_2] : memref<320x512xf32, #tpu.memory_space<vmem>>, vector<64x512xf32>
    %c184 = arith.constant 184 : index
    %c0_3 = arith.constant 0 : index
    %3 = vector.load %arg1[%c184, %c0_3] : memref<320x512xf32, #tpu.memory_space<vmem>>, vector<1x512xf32>
    %c192 = arith.constant 192 : index
    %c0_4 = arith.constant 0 : index
    %4 = vector.load %arg1[%c192, %c0_4] : memref<320x512xf32, #tpu.memory_space<vmem>>, vector<64x256xf32>
    %c256 = arith.constant 256 : index
    %c0_5 = arith.constant 0 : index
    %5 = vector.load %arg1[%c256, %c0_5] : memref<320x512xf32, #tpu.memory_space<vmem>>, vector<64x2xf32>
    %c185 = arith.constant 185 : index
    %c0_6 = arith.constant 0 : index
    %6 = vector.load %arg1[%c185, %c0_6] : memref<320x512xf32, #tpu.memory_space<vmem>>, vector<1x2xf32>
    %c0_7 = arith.constant 0 : index
    %c0_8 = arith.constant 0 : index
    %7 = vector.load %arg0[%c0_7, %c0_8] : memref<16x1xi32, #tpu.memory_space<vmem>>, vector<16x1xi32>
    %8 = tpu.iota {dimensions = array<i32: 1>} : vector<16x56xi32>
    %9 = vector.broadcast %7 : vector<16x1xi32> to vector<16x56xi32>
    %10 = arith.cmpi eq, %8, %9 : vector<16x56xi32>
    %11 = arith.extui %10 : vector<16x56xi1> to vector<16x56xi32>
    %12 = arith.sitofp %11 : vector<16x56xi32> to vector<16x56xf32>
    %cst = arith.constant dense<0.000000e+00> : vector<16x512xf32>
    %13 = tpu.matmul %12, %0, %cst {dimension_numbers = #tpu.dot_dimension_numbers<[1], [0], [0], [1], [0, 0, 1, 1], [], []>} : vector<16x56xf32>, vector<56x512xf32>, vector<16x512xf32> -> vector<16x512xf32>
    %14 = vector.extract_strided_slice %13 {offsets = [0, 0], sizes = [16, 256], strides = [1, 1]} : vector<16x512xf32> to vector<16x256xf32>
    %15 = vector.extract_strided_slice %13 {offsets = [0, 256], sizes = [16, 256], strides = [1, 1]} : vector<16x512xf32> to vector<16x256xf32>
    %cst_9 = arith.constant 0.000000e+00 : f32
    %16 = vector.broadcast %cst_9 : f32 to vector<2x64xf32>
    %cst_10 = arith.constant 0.000000e+00 : f32
    %17 = vector.broadcast %cst_10 : f32 to vector<2x64xf32>
    %18 = vector.extract_strided_slice %14 {offsets = [0, 0], sizes = [2, 256], strides = [1, 1]} : vector<16x256xf32> to vector<2x256xf32>
    %19 = vector.extract_strided_slice %15 {offsets = [14, 0], sizes = [2, 256], strides = [1, 1]} : vector<16x256xf32> to vector<2x256xf32>
    %20 = arith.addf %18, %19 : vector<2x256xf32>
    %cst_11 = arith.constant dense<0.000000e+00> : vector<2x256xf32>
    %21 = tpu.matmul %16, %1, %cst_11 {dimension_numbers = #tpu.dot_dimension_numbers<[1], [0], [0], [1], [0, 0, 1, 1], [], []>} : vector<2x64xf32>, vector<64x256xf32>, vector<2x256xf32> -> vector<2x256xf32>
    %22 = arith.addf %20, %21 : vector<2x256xf32>
    %23 = arith.negf %22 : vector<2x256xf32>
    %24 = math.exp %23 : vector<2x256xf32>
    %cst_12 = arith.constant 1.000000e+00 : f32
    %25 = vector.broadcast %cst_12 : f32 to vector<2x256xf32>
    %26 = arith.addf %25, %24 : vector<2x256xf32>
    %27 = arith.divf %25, %26 : vector<2x256xf32>
    %28 = vector.extract_strided_slice %22 {offsets = [0, 128], sizes = [2, 64], strides = [1, 1]} : vector<2x256xf32> to vector<2x64xf32>
    %29 = math.tanh %28 : vector<2x64xf32>
    %30 = vector.extract_strided_slice %27 {offsets = [0, 64], sizes = [2, 64], strides = [1, 1]} : vector<2x256xf32> to vector<2x64xf32>
    %31 = arith.mulf %30, %17 : vector<2x64xf32>
    %32 = vector.extract_strided_slice %27 {offsets = [0, 0], sizes = [2, 64], strides = [1, 1]} : vector<2x256xf32> to vector<2x64xf32>
    %33 = arith.mulf %32, %29 : vector<2x64xf32>
    %34 = arith.addf %31, %33 : vector<2x64xf32>
    %35 = vector.extract_strided_slice %27 {offsets = [0, 192], sizes = [2, 64], strides = [1, 1]} : vector<2x256xf32> to vector<2x64xf32>
    %36 = math.tanh %34 : vector<2x64xf32>
    %37 = arith.mulf %35, %36 : vector<2x64xf32>
    %38 = vector.extract_strided_slice %14 {offsets = [2, 0], sizes = [2, 256], strides = [1, 1]} : vector<16x256xf32> to vector<2x256xf32>
    %39 = vector.extract_strided_slice %15 {offsets = [12, 0], sizes = [2, 256], strides = [1, 1]} : vector<16x256xf32> to vector<2x256xf32>
    %40 = arith.addf %38, %39 : vector<2x256xf32>
    %cst_13 = arith.constant dense<0.000000e+00> : vector<2x256xf32>
    %41 = tpu.matmul %37, %1, %cst_13 {dimension_numbers = #tpu.dot_dimension_numbers<[1], [0], [0], [1], [0, 0, 1, 1], [], []>} : vector<2x64xf32>, vector<64x256xf32>, vector<2x256xf32> -> vector<2x256xf32>
    %42 = arith.addf %40, %41 : vector<2x256xf32>
    %43 = arith.negf %42 : vector<2x256xf32>
    %44 = math.exp %43 : vector<2x256xf32>
    %cst_14 = arith.constant 1.000000e+00 : f32
    %45 = vector.broadcast %cst_14 : f32 to vector<2x256xf32>
    %46 = arith.addf %45, %44 : vector<2x256xf32>
    %47 = arith.divf %45, %46 : vector<2x256xf32>
    %48 = vector.extract_strided_slice %42 {offsets = [0, 128], sizes = [2, 64], strides = [1, 1]} : vector<2x256xf32> to vector<2x64xf32>
    %49 = math.tanh %48 : vector<2x64xf32>
    %50 = vector.extract_strided_slice %47 {offsets = [0, 64], sizes = [2, 64], strides = [1, 1]} : vector<2x256xf32> to vector<2x64xf32>
    %51 = arith.mulf %50, %34 : vector<2x64xf32>
    %52 = vector.extract_strided_slice %47 {offsets = [0, 0], sizes = [2, 64], strides = [1, 1]} : vector<2x256xf32> to vector<2x64xf32>
    %53 = arith.mulf %52, %49 : vector<2x64xf32>
    %54 = arith.addf %51, %53 : vector<2x64xf32>
    %55 = vector.extract_strided_slice %47 {offsets = [0, 192], sizes = [2, 64], strides = [1, 1]} : vector<2x256xf32> to vector<2x64xf32>
    %56 = math.tanh %54 : vector<2x64xf32>
    %57 = arith.mulf %55, %56 : vector<2x64xf32>
    %58 = vector.extract_strided_slice %14 {offsets = [4, 0], sizes = [2, 256], strides = [1, 1]} : vector<16x256xf32> to vector<2x256xf32>
    %59 = vector.extract_strided_slice %15 {offsets = [10, 0], sizes = [2, 256], strides = [1, 1]} : vector<16x256xf32> to vector<2x256xf32>
    %60 = arith.addf %58, %59 : vector<2x256xf32>
    %cst_15 = arith.constant dense<0.000000e+00> : vector<2x256xf32>
    %61 = tpu.matmul %57, %1, %cst_15 {dimension_numbers = #tpu.dot_dimension_numbers<[1], [0], [0], [1], [0, 0, 1, 1], [], []>} : vector<2x64xf32>, vector<64x256xf32>, vector<2x256xf32> -> vector<2x256xf32>
    %62 = arith.addf %60, %61 : vector<2x256xf32>
    %63 = arith.negf %62 : vector<2x256xf32>
    %64 = math.exp %63 : vector<2x256xf32>
    %cst_16 = arith.constant 1.000000e+00 : f32
    %65 = vector.broadcast %cst_16 : f32 to vector<2x256xf32>
    %66 = arith.addf %65, %64 : vector<2x256xf32>
    %67 = arith.divf %65, %66 : vector<2x256xf32>
    %68 = vector.extract_strided_slice %62 {offsets = [0, 128], sizes = [2, 64], strides = [1, 1]} : vector<2x256xf32> to vector<2x64xf32>
    %69 = math.tanh %68 : vector<2x64xf32>
    %70 = vector.extract_strided_slice %67 {offsets = [0, 64], sizes = [2, 64], strides = [1, 1]} : vector<2x256xf32> to vector<2x64xf32>
    %71 = arith.mulf %70, %54 : vector<2x64xf32>
    %72 = vector.extract_strided_slice %67 {offsets = [0, 0], sizes = [2, 64], strides = [1, 1]} : vector<2x256xf32> to vector<2x64xf32>
    %73 = arith.mulf %72, %69 : vector<2x64xf32>
    %74 = arith.addf %71, %73 : vector<2x64xf32>
    %75 = vector.extract_strided_slice %67 {offsets = [0, 192], sizes = [2, 64], strides = [1, 1]} : vector<2x256xf32> to vector<2x64xf32>
    %76 = math.tanh %74 : vector<2x64xf32>
    %77 = arith.mulf %75, %76 : vector<2x64xf32>
    %78 = vector.extract_strided_slice %14 {offsets = [6, 0], sizes = [2, 256], strides = [1, 1]} : vector<16x256xf32> to vector<2x256xf32>
    %79 = vector.extract_strided_slice %15 {offsets = [8, 0], sizes = [2, 256], strides = [1, 1]} : vector<16x256xf32> to vector<2x256xf32>
    %80 = arith.addf %78, %79 : vector<2x256xf32>
    %cst_17 = arith.constant dense<0.000000e+00> : vector<2x256xf32>
    %81 = tpu.matmul %77, %1, %cst_17 {dimension_numbers = #tpu.dot_dimension_numbers<[1], [0], [0], [1], [0, 0, 1, 1], [], []>} : vector<2x64xf32>, vector<64x256xf32>, vector<2x256xf32> -> vector<2x256xf32>
    %82 = arith.addf %80, %81 : vector<2x256xf32>
    %83 = arith.negf %82 : vector<2x256xf32>
    %84 = math.exp %83 : vector<2x256xf32>
    %cst_18 = arith.constant 1.000000e+00 : f32
    %85 = vector.broadcast %cst_18 : f32 to vector<2x256xf32>
    %86 = arith.addf %85, %84 : vector<2x256xf32>
    %87 = arith.divf %85, %86 : vector<2x256xf32>
    %88 = vector.extract_strided_slice %82 {offsets = [0, 128], sizes = [2, 64], strides = [1, 1]} : vector<2x256xf32> to vector<2x64xf32>
    %89 = math.tanh %88 : vector<2x64xf32>
    %90 = vector.extract_strided_slice %87 {offsets = [0, 64], sizes = [2, 64], strides = [1, 1]} : vector<2x256xf32> to vector<2x64xf32>
    %91 = arith.mulf %90, %74 : vector<2x64xf32>
    %92 = vector.extract_strided_slice %87 {offsets = [0, 0], sizes = [2, 64], strides = [1, 1]} : vector<2x256xf32> to vector<2x64xf32>
    %93 = arith.mulf %92, %89 : vector<2x64xf32>
    %94 = arith.addf %91, %93 : vector<2x64xf32>
    %95 = vector.extract_strided_slice %87 {offsets = [0, 192], sizes = [2, 64], strides = [1, 1]} : vector<2x256xf32> to vector<2x64xf32>
    %96 = math.tanh %94 : vector<2x64xf32>
    %97 = arith.mulf %95, %96 : vector<2x64xf32>
    %98 = vector.extract_strided_slice %14 {offsets = [8, 0], sizes = [2, 256], strides = [1, 1]} : vector<16x256xf32> to vector<2x256xf32>
    %99 = vector.extract_strided_slice %15 {offsets = [6, 0], sizes = [2, 256], strides = [1, 1]} : vector<16x256xf32> to vector<2x256xf32>
    %100 = arith.addf %98, %99 : vector<2x256xf32>
    %cst_19 = arith.constant dense<0.000000e+00> : vector<2x256xf32>
    %101 = tpu.matmul %97, %1, %cst_19 {dimension_numbers = #tpu.dot_dimension_numbers<[1], [0], [0], [1], [0, 0, 1, 1], [], []>} : vector<2x64xf32>, vector<64x256xf32>, vector<2x256xf32> -> vector<2x256xf32>
    %102 = arith.addf %100, %101 : vector<2x256xf32>
    %103 = arith.negf %102 : vector<2x256xf32>
    %104 = math.exp %103 : vector<2x256xf32>
    %cst_20 = arith.constant 1.000000e+00 : f32
    %105 = vector.broadcast %cst_20 : f32 to vector<2x256xf32>
    %106 = arith.addf %105, %104 : vector<2x256xf32>
    %107 = arith.divf %105, %106 : vector<2x256xf32>
    %108 = vector.extract_strided_slice %102 {offsets = [0, 128], sizes = [2, 64], strides = [1, 1]} : vector<2x256xf32> to vector<2x64xf32>
    %109 = math.tanh %108 : vector<2x64xf32>
    %110 = vector.extract_strided_slice %107 {offsets = [0, 64], sizes = [2, 64], strides = [1, 1]} : vector<2x256xf32> to vector<2x64xf32>
    %111 = arith.mulf %110, %94 : vector<2x64xf32>
    %112 = vector.extract_strided_slice %107 {offsets = [0, 0], sizes = [2, 64], strides = [1, 1]} : vector<2x256xf32> to vector<2x64xf32>
    %113 = arith.mulf %112, %109 : vector<2x64xf32>
    %114 = arith.addf %111, %113 : vector<2x64xf32>
    %115 = vector.extract_strided_slice %107 {offsets = [0, 192], sizes = [2, 64], strides = [1, 1]} : vector<2x256xf32> to vector<2x64xf32>
    %116 = math.tanh %114 : vector<2x64xf32>
    %117 = arith.mulf %115, %116 : vector<2x64xf32>
    %118 = vector.extract_strided_slice %14 {offsets = [10, 0], sizes = [2, 256], strides = [1, 1]} : vector<16x256xf32> to vector<2x256xf32>
    %119 = vector.extract_strided_slice %15 {offsets = [4, 0], sizes = [2, 256], strides = [1, 1]} : vector<16x256xf32> to vector<2x256xf32>
    %120 = arith.addf %118, %119 : vector<2x256xf32>
    %cst_21 = arith.constant dense<0.000000e+00> : vector<2x256xf32>
    %121 = tpu.matmul %117, %1, %cst_21 {dimension_numbers = #tpu.dot_dimension_numbers<[1], [0], [0], [1], [0, 0, 1, 1], [], []>} : vector<2x64xf32>, vector<64x256xf32>, vector<2x256xf32> -> vector<2x256xf32>
    %122 = arith.addf %120, %121 : vector<2x256xf32>
    %123 = arith.negf %122 : vector<2x256xf32>
    %124 = math.exp %123 : vector<2x256xf32>
    %cst_22 = arith.constant 1.000000e+00 : f32
    %125 = vector.broadcast %cst_22 : f32 to vector<2x256xf32>
    %126 = arith.addf %125, %124 : vector<2x256xf32>
    %127 = arith.divf %125, %126 : vector<2x256xf32>
    %128 = vector.extract_strided_slice %122 {offsets = [0, 128], sizes = [2, 64], strides = [1, 1]} : vector<2x256xf32> to vector<2x64xf32>
    %129 = math.tanh %128 : vector<2x64xf32>
    %130 = vector.extract_strided_slice %127 {offsets = [0, 64], sizes = [2, 64], strides = [1, 1]} : vector<2x256xf32> to vector<2x64xf32>
    %131 = arith.mulf %130, %114 : vector<2x64xf32>
    %132 = vector.extract_strided_slice %127 {offsets = [0, 0], sizes = [2, 64], strides = [1, 1]} : vector<2x256xf32> to vector<2x64xf32>
    %133 = arith.mulf %132, %129 : vector<2x64xf32>
    %134 = arith.addf %131, %133 : vector<2x64xf32>
    %135 = vector.extract_strided_slice %127 {offsets = [0, 192], sizes = [2, 64], strides = [1, 1]} : vector<2x256xf32> to vector<2x64xf32>
    %136 = math.tanh %134 : vector<2x64xf32>
    %137 = arith.mulf %135, %136 : vector<2x64xf32>
    %138 = vector.extract_strided_slice %14 {offsets = [12, 0], sizes = [2, 256], strides = [1, 1]} : vector<16x256xf32> to vector<2x256xf32>
    %139 = vector.extract_strided_slice %15 {offsets = [2, 0], sizes = [2, 256], strides = [1, 1]} : vector<16x256xf32> to vector<2x256xf32>
    %140 = arith.addf %138, %139 : vector<2x256xf32>
    %cst_23 = arith.constant dense<0.000000e+00> : vector<2x256xf32>
    %141 = tpu.matmul %137, %1, %cst_23 {dimension_numbers = #tpu.dot_dimension_numbers<[1], [0], [0], [1], [0, 0, 1, 1], [], []>} : vector<2x64xf32>, vector<64x256xf32>, vector<2x256xf32> -> vector<2x256xf32>
    %142 = arith.addf %140, %141 : vector<2x256xf32>
    %143 = arith.negf %142 : vector<2x256xf32>
    %144 = math.exp %143 : vector<2x256xf32>
    %cst_24 = arith.constant 1.000000e+00 : f32
    %145 = vector.broadcast %cst_24 : f32 to vector<2x256xf32>
    %146 = arith.addf %145, %144 : vector<2x256xf32>
    %147 = arith.divf %145, %146 : vector<2x256xf32>
    %148 = vector.extract_strided_slice %142 {offsets = [0, 128], sizes = [2, 64], strides = [1, 1]} : vector<2x256xf32> to vector<2x64xf32>
    %149 = math.tanh %148 : vector<2x64xf32>
    %150 = vector.extract_strided_slice %147 {offsets = [0, 64], sizes = [2, 64], strides = [1, 1]} : vector<2x256xf32> to vector<2x64xf32>
    %151 = arith.mulf %150, %134 : vector<2x64xf32>
    %152 = vector.extract_strided_slice %147 {offsets = [0, 0], sizes = [2, 64], strides = [1, 1]} : vector<2x256xf32> to vector<2x64xf32>
    %153 = arith.mulf %152, %149 : vector<2x64xf32>
    %154 = arith.addf %151, %153 : vector<2x64xf32>
    %155 = vector.extract_strided_slice %147 {offsets = [0, 192], sizes = [2, 64], strides = [1, 1]} : vector<2x256xf32> to vector<2x64xf32>
    %156 = math.tanh %154 : vector<2x64xf32>
    %157 = arith.mulf %155, %156 : vector<2x64xf32>
    %158 = vector.extract_strided_slice %14 {offsets = [14, 0], sizes = [2, 256], strides = [1, 1]} : vector<16x256xf32> to vector<2x256xf32>
    %159 = vector.extract_strided_slice %15 {offsets = [0, 0], sizes = [2, 256], strides = [1, 1]} : vector<16x256xf32> to vector<2x256xf32>
    %160 = arith.addf %158, %159 : vector<2x256xf32>
    %cst_25 = arith.constant dense<0.000000e+00> : vector<2x256xf32>
    %161 = tpu.matmul %157, %1, %cst_25 {dimension_numbers = #tpu.dot_dimension_numbers<[1], [0], [0], [1], [0, 0, 1, 1], [], []>} : vector<2x64xf32>, vector<64x256xf32>, vector<2x256xf32> -> vector<2x256xf32>
    %162 = arith.addf %160, %161 : vector<2x256xf32>
    %163 = arith.negf %162 : vector<2x256xf32>
    %164 = math.exp %163 : vector<2x256xf32>
    %cst_26 = arith.constant 1.000000e+00 : f32
    %165 = vector.broadcast %cst_26 : f32 to vector<2x256xf32>
    %166 = arith.addf %165, %164 : vector<2x256xf32>
    %167 = arith.divf %165, %166 : vector<2x256xf32>
    %168 = vector.extract_strided_slice %162 {offsets = [0, 128], sizes = [2, 64], strides = [1, 1]} : vector<2x256xf32> to vector<2x64xf32>
    %169 = math.tanh %168 : vector<2x64xf32>
    %170 = vector.extract_strided_slice %167 {offsets = [0, 64], sizes = [2, 64], strides = [1, 1]} : vector<2x256xf32> to vector<2x64xf32>
    %171 = arith.mulf %170, %154 : vector<2x64xf32>
    %172 = vector.extract_strided_slice %167 {offsets = [0, 0], sizes = [2, 64], strides = [1, 1]} : vector<2x256xf32> to vector<2x64xf32>
    %173 = arith.mulf %172, %169 : vector<2x64xf32>
    %174 = arith.addf %171, %173 : vector<2x64xf32>
    %175 = vector.extract_strided_slice %167 {offsets = [0, 192], sizes = [2, 64], strides = [1, 1]} : vector<2x256xf32> to vector<2x64xf32>
    %176 = math.tanh %174 : vector<2x64xf32>
    %177 = arith.mulf %175, %176 : vector<2x64xf32>
    %178 = tpu.concatenate %37, %57, %77, %97, %117, %137, %157, %177 in 0 : vector<2x64xf32>, vector<2x64xf32>, vector<2x64xf32>, vector<2x64xf32>, vector<2x64xf32>, vector<2x64xf32>, vector<2x64xf32>, vector<2x64xf32> -> vector<16x64xf32>
    %179 = vector.extract_strided_slice %178 {offsets = [0, 0], sizes = [16, 32], strides = [1, 1]} : vector<16x64xf32> to vector<16x32xf32>
    %180 = vector.extract_strided_slice %2 {offsets = [0, 0], sizes = [32, 512], strides = [1, 1]} : vector<64x512xf32> to vector<32x512xf32>
    %cst_27 = arith.constant dense<0.000000e+00> : vector<16x512xf32>
    %181 = tpu.matmul %179, %180, %cst_27 {dimension_numbers = #tpu.dot_dimension_numbers<[1], [0], [0], [1], [0, 0, 1, 1], [], []>} : vector<16x32xf32>, vector<32x512xf32>, vector<16x512xf32> -> vector<16x512xf32>
    %182 = vector.broadcast %3 : vector<1x512xf32> to vector<16x512xf32>
    %183 = arith.addf %181, %182 : vector<16x512xf32>
    %184 = vector.extract_strided_slice %178 {offsets = [0, 32], sizes = [16, 32], strides = [1, 1]} : vector<16x64xf32> to vector<16x32xf32>
    %185 = vector.extract_strided_slice %2 {offsets = [32, 0], sizes = [32, 512], strides = [1, 1]} : vector<64x512xf32> to vector<32x512xf32>
    %cst_28 = arith.constant dense<0.000000e+00> : vector<16x512xf32>
    %186 = tpu.matmul %184, %185, %cst_28 {dimension_numbers = #tpu.dot_dimension_numbers<[1], [0], [0], [1], [0, 0, 1, 1], [], []>} : vector<16x32xf32>, vector<32x512xf32>, vector<16x512xf32> -> vector<16x512xf32>
    %cst_29 = arith.constant 0.000000e+00 : f32
    %187 = vector.broadcast %cst_29 : f32 to vector<2x64xf32>
    %cst_30 = arith.constant 0.000000e+00 : f32
    %188 = vector.broadcast %cst_30 : f32 to vector<2x64xf32>
    %189 = vector.extract_strided_slice %183 {offsets = [0, 0], sizes = [2, 256], strides = [1, 1]} : vector<16x512xf32> to vector<2x256xf32>
    %190 = vector.extract_strided_slice %186 {offsets = [14, 0], sizes = [2, 256], strides = [1, 1]} : vector<16x512xf32> to vector<2x256xf32>
    %191 = arith.addf %189, %190 : vector<2x256xf32>
    %192 = vector.extract_strided_slice %183 {offsets = [14, 256], sizes = [2, 256], strides = [1, 1]} : vector<16x512xf32> to vector<2x256xf32>
    %193 = arith.addf %191, %192 : vector<2x256xf32>
    %194 = vector.extract_strided_slice %186 {offsets = [0, 256], sizes = [2, 256], strides = [1, 1]} : vector<16x512xf32> to vector<2x256xf32>
    %195 = arith.addf %193, %194 : vector<2x256xf32>
    %cst_31 = arith.constant dense<0.000000e+00> : vector<2x256xf32>
    %196 = tpu.matmul %187, %4, %cst_31 {dimension_numbers = #tpu.dot_dimension_numbers<[1], [0], [0], [1], [0, 0, 1, 1], [], []>} : vector<2x64xf32>, vector<64x256xf32>, vector<2x256xf32> -> vector<2x256xf32>
    %197 = arith.addf %195, %196 : vector<2x256xf32>
    %198 = arith.negf %197 : vector<2x256xf32>
    %199 = math.exp %198 : vector<2x256xf32>
    %cst_32 = arith.constant 1.000000e+00 : f32
    %200 = vector.broadcast %cst_32 : f32 to vector<2x256xf32>
    %201 = arith.addf %200, %199 : vector<2x256xf32>
    %202 = arith.divf %200, %201 : vector<2x256xf32>
    %203 = vector.extract_strided_slice %197 {offsets = [0, 128], sizes = [2, 64], strides = [1, 1]} : vector<2x256xf32> to vector<2x64xf32>
    %204 = math.tanh %203 : vector<2x64xf32>
    %205 = vector.extract_strided_slice %202 {offsets = [0, 64], sizes = [2, 64], strides = [1, 1]} : vector<2x256xf32> to vector<2x64xf32>
    %206 = arith.mulf %205, %188 : vector<2x64xf32>
    %207 = vector.extract_strided_slice %202 {offsets = [0, 0], sizes = [2, 64], strides = [1, 1]} : vector<2x256xf32> to vector<2x64xf32>
    %208 = arith.mulf %207, %204 : vector<2x64xf32>
    %209 = arith.addf %206, %208 : vector<2x64xf32>
    %210 = vector.extract_strided_slice %202 {offsets = [0, 192], sizes = [2, 64], strides = [1, 1]} : vector<2x256xf32> to vector<2x64xf32>
    %211 = math.tanh %209 : vector<2x64xf32>
    %212 = arith.mulf %210, %211 : vector<2x64xf32>
    %213 = vector.extract_strided_slice %183 {offsets = [2, 0], sizes = [2, 256], strides = [1, 1]} : vector<16x512xf32> to vector<2x256xf32>
    %214 = vector.extract_strided_slice %186 {offsets = [12, 0], sizes = [2, 256], strides = [1, 1]} : vector<16x512xf32> to vector<2x256xf32>
    %215 = arith.addf %213, %214 : vector<2x256xf32>
    %216 = vector.extract_strided_slice %183 {offsets = [12, 256], sizes = [2, 256], strides = [1, 1]} : vector<16x512xf32> to vector<2x256xf32>
    %217 = arith.addf %215, %216 : vector<2x256xf32>
    %218 = vector.extract_strided_slice %186 {offsets = [2, 256], sizes = [2, 256], strides = [1, 1]} : vector<16x512xf32> to vector<2x256xf32>
    %219 = arith.addf %217, %218 : vector<2x256xf32>
    %cst_33 = arith.constant dense<0.000000e+00> : vector<2x256xf32>
    %220 = tpu.matmul %212, %4, %cst_33 {dimension_numbers = #tpu.dot_dimension_numbers<[1], [0], [0], [1], [0, 0, 1, 1], [], []>} : vector<2x64xf32>, vector<64x256xf32>, vector<2x256xf32> -> vector<2x256xf32>
    %221 = arith.addf %219, %220 : vector<2x256xf32>
    %222 = arith.negf %221 : vector<2x256xf32>
    %223 = math.exp %222 : vector<2x256xf32>
    %cst_34 = arith.constant 1.000000e+00 : f32
    %224 = vector.broadcast %cst_34 : f32 to vector<2x256xf32>
    %225 = arith.addf %224, %223 : vector<2x256xf32>
    %226 = arith.divf %224, %225 : vector<2x256xf32>
    %227 = vector.extract_strided_slice %221 {offsets = [0, 128], sizes = [2, 64], strides = [1, 1]} : vector<2x256xf32> to vector<2x64xf32>
    %228 = math.tanh %227 : vector<2x64xf32>
    %229 = vector.extract_strided_slice %226 {offsets = [0, 64], sizes = [2, 64], strides = [1, 1]} : vector<2x256xf32> to vector<2x64xf32>
    %230 = arith.mulf %229, %209 : vector<2x64xf32>
    %231 = vector.extract_strided_slice %226 {offsets = [0, 0], sizes = [2, 64], strides = [1, 1]} : vector<2x256xf32> to vector<2x64xf32>
    %232 = arith.mulf %231, %228 : vector<2x64xf32>
    %233 = arith.addf %230, %232 : vector<2x64xf32>
    %234 = vector.extract_strided_slice %226 {offsets = [0, 192], sizes = [2, 64], strides = [1, 1]} : vector<2x256xf32> to vector<2x64xf32>
    %235 = math.tanh %233 : vector<2x64xf32>
    %236 = arith.mulf %234, %235 : vector<2x64xf32>
    %237 = vector.extract_strided_slice %183 {offsets = [4, 0], sizes = [2, 256], strides = [1, 1]} : vector<16x512xf32> to vector<2x256xf32>
    %238 = vector.extract_strided_slice %186 {offsets = [10, 0], sizes = [2, 256], strides = [1, 1]} : vector<16x512xf32> to vector<2x256xf32>
    %239 = arith.addf %237, %238 : vector<2x256xf32>
    %240 = vector.extract_strided_slice %183 {offsets = [10, 256], sizes = [2, 256], strides = [1, 1]} : vector<16x512xf32> to vector<2x256xf32>
    %241 = arith.addf %239, %240 : vector<2x256xf32>
    %242 = vector.extract_strided_slice %186 {offsets = [4, 256], sizes = [2, 256], strides = [1, 1]} : vector<16x512xf32> to vector<2x256xf32>
    %243 = arith.addf %241, %242 : vector<2x256xf32>
    %cst_35 = arith.constant dense<0.000000e+00> : vector<2x256xf32>
    %244 = tpu.matmul %236, %4, %cst_35 {dimension_numbers = #tpu.dot_dimension_numbers<[1], [0], [0], [1], [0, 0, 1, 1], [], []>} : vector<2x64xf32>, vector<64x256xf32>, vector<2x256xf32> -> vector<2x256xf32>
    %245 = arith.addf %243, %244 : vector<2x256xf32>
    %246 = arith.negf %245 : vector<2x256xf32>
    %247 = math.exp %246 : vector<2x256xf32>
    %cst_36 = arith.constant 1.000000e+00 : f32
    %248 = vector.broadcast %cst_36 : f32 to vector<2x256xf32>
    %249 = arith.addf %248, %247 : vector<2x256xf32>
    %250 = arith.divf %248, %249 : vector<2x256xf32>
    %251 = vector.extract_strided_slice %245 {offsets = [0, 128], sizes = [2, 64], strides = [1, 1]} : vector<2x256xf32> to vector<2x64xf32>
    %252 = math.tanh %251 : vector<2x64xf32>
    %253 = vector.extract_strided_slice %250 {offsets = [0, 64], sizes = [2, 64], strides = [1, 1]} : vector<2x256xf32> to vector<2x64xf32>
    %254 = arith.mulf %253, %233 : vector<2x64xf32>
    %255 = vector.extract_strided_slice %250 {offsets = [0, 0], sizes = [2, 64], strides = [1, 1]} : vector<2x256xf32> to vector<2x64xf32>
    %256 = arith.mulf %255, %252 : vector<2x64xf32>
    %257 = arith.addf %254, %256 : vector<2x64xf32>
    %258 = vector.extract_strided_slice %250 {offsets = [0, 192], sizes = [2, 64], strides = [1, 1]} : vector<2x256xf32> to vector<2x64xf32>
    %259 = math.tanh %257 : vector<2x64xf32>
    %260 = arith.mulf %258, %259 : vector<2x64xf32>
    %261 = vector.extract_strided_slice %183 {offsets = [6, 0], sizes = [2, 256], strides = [1, 1]} : vector<16x512xf32> to vector<2x256xf32>
    %262 = vector.extract_strided_slice %186 {offsets = [8, 0], sizes = [2, 256], strides = [1, 1]} : vector<16x512xf32> to vector<2x256xf32>
    %263 = arith.addf %261, %262 : vector<2x256xf32>
    %264 = vector.extract_strided_slice %183 {offsets = [8, 256], sizes = [2, 256], strides = [1, 1]} : vector<16x512xf32> to vector<2x256xf32>
    %265 = arith.addf %263, %264 : vector<2x256xf32>
    %266 = vector.extract_strided_slice %186 {offsets = [6, 256], sizes = [2, 256], strides = [1, 1]} : vector<16x512xf32> to vector<2x256xf32>
    %267 = arith.addf %265, %266 : vector<2x256xf32>
    %cst_37 = arith.constant dense<0.000000e+00> : vector<2x256xf32>
    %268 = tpu.matmul %260, %4, %cst_37 {dimension_numbers = #tpu.dot_dimension_numbers<[1], [0], [0], [1], [0, 0, 1, 1], [], []>} : vector<2x64xf32>, vector<64x256xf32>, vector<2x256xf32> -> vector<2x256xf32>
    %269 = arith.addf %267, %268 : vector<2x256xf32>
    %270 = arith.negf %269 : vector<2x256xf32>
    %271 = math.exp %270 : vector<2x256xf32>
    %cst_38 = arith.constant 1.000000e+00 : f32
    %272 = vector.broadcast %cst_38 : f32 to vector<2x256xf32>
    %273 = arith.addf %272, %271 : vector<2x256xf32>
    %274 = arith.divf %272, %273 : vector<2x256xf32>
    %275 = vector.extract_strided_slice %269 {offsets = [0, 128], sizes = [2, 64], strides = [1, 1]} : vector<2x256xf32> to vector<2x64xf32>
    %276 = math.tanh %275 : vector<2x64xf32>
    %277 = vector.extract_strided_slice %274 {offsets = [0, 64], sizes = [2, 64], strides = [1, 1]} : vector<2x256xf32> to vector<2x64xf32>
    %278 = arith.mulf %277, %257 : vector<2x64xf32>
    %279 = vector.extract_strided_slice %274 {offsets = [0, 0], sizes = [2, 64], strides = [1, 1]} : vector<2x256xf32> to vector<2x64xf32>
    %280 = arith.mulf %279, %276 : vector<2x64xf32>
    %281 = arith.addf %278, %280 : vector<2x64xf32>
    %282 = vector.extract_strided_slice %274 {offsets = [0, 192], sizes = [2, 64], strides = [1, 1]} : vector<2x256xf32> to vector<2x64xf32>
    %283 = math.tanh %281 : vector<2x64xf32>
    %284 = arith.mulf %282, %283 : vector<2x64xf32>
    %285 = vector.extract_strided_slice %183 {offsets = [8, 0], sizes = [2, 256], strides = [1, 1]} : vector<16x512xf32> to vector<2x256xf32>
    %286 = vector.extract_strided_slice %186 {offsets = [6, 0], sizes = [2, 256], strides = [1, 1]} : vector<16x512xf32> to vector<2x256xf32>
    %287 = arith.addf %285, %286 : vector<2x256xf32>
    %288 = vector.extract_strided_slice %183 {offsets = [6, 256], sizes = [2, 256], strides = [1, 1]} : vector<16x512xf32> to vector<2x256xf32>
    %289 = arith.addf %287, %288 : vector<2x256xf32>
    %290 = vector.extract_strided_slice %186 {offsets = [8, 256], sizes = [2, 256], strides = [1, 1]} : vector<16x512xf32> to vector<2x256xf32>
    %291 = arith.addf %289, %290 : vector<2x256xf32>
    %cst_39 = arith.constant dense<0.000000e+00> : vector<2x256xf32>
    %292 = tpu.matmul %284, %4, %cst_39 {dimension_numbers = #tpu.dot_dimension_numbers<[1], [0], [0], [1], [0, 0, 1, 1], [], []>} : vector<2x64xf32>, vector<64x256xf32>, vector<2x256xf32> -> vector<2x256xf32>
    %293 = arith.addf %291, %292 : vector<2x256xf32>
    %294 = arith.negf %293 : vector<2x256xf32>
    %295 = math.exp %294 : vector<2x256xf32>
    %cst_40 = arith.constant 1.000000e+00 : f32
    %296 = vector.broadcast %cst_40 : f32 to vector<2x256xf32>
    %297 = arith.addf %296, %295 : vector<2x256xf32>
    %298 = arith.divf %296, %297 : vector<2x256xf32>
    %299 = vector.extract_strided_slice %293 {offsets = [0, 128], sizes = [2, 64], strides = [1, 1]} : vector<2x256xf32> to vector<2x64xf32>
    %300 = math.tanh %299 : vector<2x64xf32>
    %301 = vector.extract_strided_slice %298 {offsets = [0, 64], sizes = [2, 64], strides = [1, 1]} : vector<2x256xf32> to vector<2x64xf32>
    %302 = arith.mulf %301, %281 : vector<2x64xf32>
    %303 = vector.extract_strided_slice %298 {offsets = [0, 0], sizes = [2, 64], strides = [1, 1]} : vector<2x256xf32> to vector<2x64xf32>
    %304 = arith.mulf %303, %300 : vector<2x64xf32>
    %305 = arith.addf %302, %304 : vector<2x64xf32>
    %306 = vector.extract_strided_slice %298 {offsets = [0, 192], sizes = [2, 64], strides = [1, 1]} : vector<2x256xf32> to vector<2x64xf32>
    %307 = math.tanh %305 : vector<2x64xf32>
    %308 = arith.mulf %306, %307 : vector<2x64xf32>
    %309 = vector.extract_strided_slice %183 {offsets = [10, 0], sizes = [2, 256], strides = [1, 1]} : vector<16x512xf32> to vector<2x256xf32>
    %310 = vector.extract_strided_slice %186 {offsets = [4, 0], sizes = [2, 256], strides = [1, 1]} : vector<16x512xf32> to vector<2x256xf32>
    %311 = arith.addf %309, %310 : vector<2x256xf32>
    %312 = vector.extract_strided_slice %183 {offsets = [4, 256], sizes = [2, 256], strides = [1, 1]} : vector<16x512xf32> to vector<2x256xf32>
    %313 = arith.addf %311, %312 : vector<2x256xf32>
    %314 = vector.extract_strided_slice %186 {offsets = [10, 256], sizes = [2, 256], strides = [1, 1]} : vector<16x512xf32> to vector<2x256xf32>
    %315 = arith.addf %313, %314 : vector<2x256xf32>
    %cst_41 = arith.constant dense<0.000000e+00> : vector<2x256xf32>
    %316 = tpu.matmul %308, %4, %cst_41 {dimension_numbers = #tpu.dot_dimension_numbers<[1], [0], [0], [1], [0, 0, 1, 1], [], []>} : vector<2x64xf32>, vector<64x256xf32>, vector<2x256xf32> -> vector<2x256xf32>
    %317 = arith.addf %315, %316 : vector<2x256xf32>
    %318 = arith.negf %317 : vector<2x256xf32>
    %319 = math.exp %318 : vector<2x256xf32>
    %cst_42 = arith.constant 1.000000e+00 : f32
    %320 = vector.broadcast %cst_42 : f32 to vector<2x256xf32>
    %321 = arith.addf %320, %319 : vector<2x256xf32>
    %322 = arith.divf %320, %321 : vector<2x256xf32>
    %323 = vector.extract_strided_slice %317 {offsets = [0, 128], sizes = [2, 64], strides = [1, 1]} : vector<2x256xf32> to vector<2x64xf32>
    %324 = math.tanh %323 : vector<2x64xf32>
    %325 = vector.extract_strided_slice %322 {offsets = [0, 64], sizes = [2, 64], strides = [1, 1]} : vector<2x256xf32> to vector<2x64xf32>
    %326 = arith.mulf %325, %305 : vector<2x64xf32>
    %327 = vector.extract_strided_slice %322 {offsets = [0, 0], sizes = [2, 64], strides = [1, 1]} : vector<2x256xf32> to vector<2x64xf32>
    %328 = arith.mulf %327, %324 : vector<2x64xf32>
    %329 = arith.addf %326, %328 : vector<2x64xf32>
    %330 = vector.extract_strided_slice %322 {offsets = [0, 192], sizes = [2, 64], strides = [1, 1]} : vector<2x256xf32> to vector<2x64xf32>
    %331 = math.tanh %329 : vector<2x64xf32>
    %332 = arith.mulf %330, %331 : vector<2x64xf32>
    %333 = vector.extract_strided_slice %183 {offsets = [12, 0], sizes = [2, 256], strides = [1, 1]} : vector<16x512xf32> to vector<2x256xf32>
    %334 = vector.extract_strided_slice %186 {offsets = [2, 0], sizes = [2, 256], strides = [1, 1]} : vector<16x512xf32> to vector<2x256xf32>
    %335 = arith.addf %333, %334 : vector<2x256xf32>
    %336 = vector.extract_strided_slice %183 {offsets = [2, 256], sizes = [2, 256], strides = [1, 1]} : vector<16x512xf32> to vector<2x256xf32>
    %337 = arith.addf %335, %336 : vector<2x256xf32>
    %338 = vector.extract_strided_slice %186 {offsets = [12, 256], sizes = [2, 256], strides = [1, 1]} : vector<16x512xf32> to vector<2x256xf32>
    %339 = arith.addf %337, %338 : vector<2x256xf32>
    %cst_43 = arith.constant dense<0.000000e+00> : vector<2x256xf32>
    %340 = tpu.matmul %332, %4, %cst_43 {dimension_numbers = #tpu.dot_dimension_numbers<[1], [0], [0], [1], [0, 0, 1, 1], [], []>} : vector<2x64xf32>, vector<64x256xf32>, vector<2x256xf32> -> vector<2x256xf32>
    %341 = arith.addf %339, %340 : vector<2x256xf32>
    %342 = arith.negf %341 : vector<2x256xf32>
    %343 = math.exp %342 : vector<2x256xf32>
    %cst_44 = arith.constant 1.000000e+00 : f32
    %344 = vector.broadcast %cst_44 : f32 to vector<2x256xf32>
    %345 = arith.addf %344, %343 : vector<2x256xf32>
    %346 = arith.divf %344, %345 : vector<2x256xf32>
    %347 = vector.extract_strided_slice %341 {offsets = [0, 128], sizes = [2, 64], strides = [1, 1]} : vector<2x256xf32> to vector<2x64xf32>
    %348 = math.tanh %347 : vector<2x64xf32>
    %349 = vector.extract_strided_slice %346 {offsets = [0, 64], sizes = [2, 64], strides = [1, 1]} : vector<2x256xf32> to vector<2x64xf32>
    %350 = arith.mulf %349, %329 : vector<2x64xf32>
    %351 = vector.extract_strided_slice %346 {offsets = [0, 0], sizes = [2, 64], strides = [1, 1]} : vector<2x256xf32> to vector<2x64xf32>
    %352 = arith.mulf %351, %348 : vector<2x64xf32>
    %353 = arith.addf %350, %352 : vector<2x64xf32>
    %354 = vector.extract_strided_slice %346 {offsets = [0, 192], sizes = [2, 64], strides = [1, 1]} : vector<2x256xf32> to vector<2x64xf32>
    %355 = math.tanh %353 : vector<2x64xf32>
    %356 = arith.mulf %354, %355 : vector<2x64xf32>
    %357 = vector.extract_strided_slice %183 {offsets = [14, 0], sizes = [2, 256], strides = [1, 1]} : vector<16x512xf32> to vector<2x256xf32>
    %358 = vector.extract_strided_slice %186 {offsets = [0, 0], sizes = [2, 256], strides = [1, 1]} : vector<16x512xf32> to vector<2x256xf32>
    %359 = arith.addf %357, %358 : vector<2x256xf32>
    %360 = vector.extract_strided_slice %183 {offsets = [0, 256], sizes = [2, 256], strides = [1, 1]} : vector<16x512xf32> to vector<2x256xf32>
    %361 = arith.addf %359, %360 : vector<2x256xf32>
    %362 = vector.extract_strided_slice %186 {offsets = [14, 256], sizes = [2, 256], strides = [1, 1]} : vector<16x512xf32> to vector<2x256xf32>
    %363 = arith.addf %361, %362 : vector<2x256xf32>
    %cst_45 = arith.constant dense<0.000000e+00> : vector<2x256xf32>
    %364 = tpu.matmul %356, %4, %cst_45 {dimension_numbers = #tpu.dot_dimension_numbers<[1], [0], [0], [1], [0, 0, 1, 1], [], []>} : vector<2x64xf32>, vector<64x256xf32>, vector<2x256xf32> -> vector<2x256xf32>
    %365 = arith.addf %363, %364 : vector<2x256xf32>
    %366 = arith.negf %365 : vector<2x256xf32>
    %367 = math.exp %366 : vector<2x256xf32>
    %cst_46 = arith.constant 1.000000e+00 : f32
    %368 = vector.broadcast %cst_46 : f32 to vector<2x256xf32>
    %369 = arith.addf %368, %367 : vector<2x256xf32>
    %370 = arith.divf %368, %369 : vector<2x256xf32>
    %371 = vector.extract_strided_slice %365 {offsets = [0, 128], sizes = [2, 64], strides = [1, 1]} : vector<2x256xf32> to vector<2x64xf32>
    %372 = math.tanh %371 : vector<2x64xf32>
    %373 = vector.extract_strided_slice %370 {offsets = [0, 64], sizes = [2, 64], strides = [1, 1]} : vector<2x256xf32> to vector<2x64xf32>
    %374 = arith.mulf %373, %353 : vector<2x64xf32>
    %375 = vector.extract_strided_slice %370 {offsets = [0, 0], sizes = [2, 64], strides = [1, 1]} : vector<2x256xf32> to vector<2x64xf32>
    %376 = arith.mulf %375, %372 : vector<2x64xf32>
    %377 = arith.addf %374, %376 : vector<2x64xf32>
    %378 = vector.extract_strided_slice %370 {offsets = [0, 192], sizes = [2, 64], strides = [1, 1]} : vector<2x256xf32> to vector<2x64xf32>
    %379 = math.tanh %377 : vector<2x64xf32>
    %380 = arith.mulf %378, %379 : vector<2x64xf32>
    %cst_47 = arith.constant dense<0.000000e+00> : vector<2x2xf32>
    %381 = tpu.matmul %380, %5, %cst_47 {dimension_numbers = #tpu.dot_dimension_numbers<[1], [0], [0], [1], [0, 0, 1, 1], [], []>} : vector<2x64xf32>, vector<64x2xf32>, vector<2x2xf32> -> vector<2x2xf32>
    %382 = vector.broadcast %6 : vector<1x2xf32> to vector<2x2xf32>
    %383 = arith.addf %381, %382 : vector<2x2xf32>
    %cst_48 = arith.constant dense<0xFF800000> : vector<2xf32>
    %384 = vector.multi_reduction <maximumf>, %383, %cst_48 [1] : vector<2x2xf32> to vector<2xf32>
    %385 = vector.shape_cast %384 : vector<2xf32> to vector<2x1xf32>
    %386 = vector.broadcast %385 : vector<2x1xf32> to vector<2x2xf32>
    %387 = arith.subf %383, %386 : vector<2x2xf32>
    %388 = math.exp %387 : vector<2x2xf32>
    %cst_49 = arith.constant dense<0.000000e+00> : vector<2xf32>
    %389 = vector.multi_reduction <add>, %388, %cst_49 [1] : vector<2x2xf32> to vector<2xf32>
    %390 = vector.shape_cast %389 : vector<2xf32> to vector<2x1xf32>
    %391 = math.log %390 : vector<2x1xf32>
    %392 = vector.broadcast %391 : vector<2x1xf32> to vector<2x2xf32>
    %393 = arith.subf %387, %392 : vector<2x2xf32>
    %c0_50 = arith.constant 0 : index
    %c0_51 = arith.constant 0 : index
    %394 = vector.load %arg2[%c0_50, %c0_51] : memref<2x2xf32, #tpu.memory_space<vmem>>, vector<2x2xf32>
    tpu.vector_store %arg2[%c0_50, %c0_51], %393 {strides = array<i32>} : memref<2x2xf32, #tpu.memory_space<vmem>>, vector<2x2xf32>,
    return
  }
}

</mosaic_0001>

<bundles_post_ra>
// kernel: model_forward.1
= control target key start
LH: loop header
LB: loop body
LE: loop exit
PB: predicated region body
PF: predicated region fallthrough
CT: control target
= control target key end

     0   :  { %7 = vsyncpa [#allocation3], 0  ;;  %s3244_s0 = inlined_call_operand.vmem [shape: s32[16,1], index: 0, kind: input, shape index: {}]   ;;  %s3245_s1 = inlined_call_operand.hbm [shape: f32[320,512], index: 1, kind: input, shape index: {}]   ;;  %s3246_s2 = inlined_call_operand.hbm [shape: f32[2,2], index: 2, kind: output, shape index: {}]  }
   0x1   :  { %8 = vsyncpa [#allocation4], 0  ;;  %s15_s11 = sshll.u32 %s3245_s1, 4  ;;  %s2601_s12 = smov [#allocation2]   ;;  %s16_s11 = int_to_ptr.hbm [resolvable:$true] %s15_s11 }
   0x2   :  { %s17_s13 = sshll.u32 %s2601_s12, 4  ;;  %s2602_s14 = smov 512   ;;  %s18_s13 = int_to_ptr.vmem [resolvable:$true] %s17_s13 }
   0x3   :  { %s2603_s15 = smov 32  }
   0x4   :  { %23 = dma.hbm_to_vmem [thread:$0]  %s16_s11, 20480, %s18_s13, [#allocation3], %s2602_s14, %s2602_s14, %s2603_s15  }
   0x5   :  { %2597 = dma.done.wait [#allocation3], 20480  }
   0x6   :  { %2598 = vsyncadd [#allocation3], 4294946816  ;;  %v2604_v0 = vmov 0   ;;  %v131_v1 = vld [vmem:[%s3244_s0] sm:$0xff]  ;;  %v53_v3 = vld [vmem:[#allocation2 + $0xc8] sm:$0xff]  ;;  %v133_v47 = vlaneseq  ;;  %vm147_vm0 = vcmask 457728  }
   0x7   :  { %2352 = vset.pattern.permute.xlu0 %v2604_v0  ;;  %v52_v2 = vld [vmem:[#allocation2 + $0xc0] sm:$0xff]  ;;  %v54_v4 = vld [vmem:[#allocation2 + $0xd0] sm:$0xff]  ;;  %v55_v5 = vld [vmem:[#allocation2 + $0xd8] sm:$0xff]  ;;  %186 = vmatpush.msra.mxu1 %v53_v3  ;;  %v2605_v50 = vmov 0.0   ;;  %vm254_vm11 = vcmask 523264   ;;  %s2607_s19 = smov [#allocation5]  }
   0x8   :  { %136 = vperm.xlu0 %2352, %v131_v1   ;;  %163 = vmatpush.msra.mxu0 %v52_v2  ;;  %v48_v6 = vld [vmem:[#allocation2 + $0xa0] sm:$0xff]  ;;  %v49_v7 = vld [vmem:[#allocation2 + $0xa8] sm:$0xff]  ;;  %v50_v8 = vld [vmem:[#allocation2 + $0xb0] sm:$0xff]  ;;  %v134_v48 = vand.u32 127, %v133_v47  ;;  %s2242_s20 = sshll.u32 %s2607_s19, 4  ;;  %s2244_s23 = sshll.u32 %s3246_s2, 4  ;;  %s2243_s20 = int_to_ptr.vmem [resolvable:$true] %s2242_s20  ;;  %s2245_s23 = int_to_ptr.hbm [resolvable:$true] %s2244_s23 }
   0x9   :  { %209 = vmatpush.msra.mxu2 %v54_v4  ;;  %232 = vmatpush.msra.mxu3 %v55_v5  ;;  %v51_v9 = vld [vmem:[#allocation2 + $0xb8] sm:$0xff]  ;;  %v44_v10 = vld [vmem:[#allocation2 + $0x80] sm:$0xff]  ;;  %v45_v11 = vld [vmem:[#allocation2 + $0x88] sm:$0xff] }
   0xa   :  { %164 = vmatpush.msra.mxu0 %v48_v6  ;;  %187 = vmatpush.msra.mxu1 %v49_v7  ;;  %v46_v12 = vld [vmem:[#allocation2 + $0x90] sm:$0xff]  ;;  %v47_v13 = vld [vmem:[#allocation2 + $0x98] sm:$0xff]  ;;  %v40_v14 = vld [vmem:[#allocation2 + $0x60] sm:$0xff] }
   0xb   :  { %210 = vmatpush.msra.mxu2 %v50_v8  ;;  %233 = vmatpush.msra.mxu3 %v51_v9  ;;  %v41_v15 = vld [vmem:[#allocation2 + $0x68] sm:$0xff]  ;;  %v42_v16 = vld [vmem:[#allocation2 + $0x70] sm:$0xff]  ;;  %v43_v18 = vld [vmem:[#allocation2 + $0x78] sm:$0xff] }
   0xc   :  { %165 = vmatpush.msra.mxu0 %v44_v10  ;;  %v132_v17 = vld [vmem:[%s3244_s0 + $0x8] sm:$0xff]  ;;  %188 = vmatpush.msra.mxu1 %v45_v11  ;;  %v36_v19 = vld [vmem:[#allocation2 + $0x40] sm:$0xff]  ;;  %v38_v21 = vld [vmem:[#allocation2 + $0x50] sm:$0xff]  ;;  %s2606_s0 = smov 64  }
   0xd   :  { %211 = vmatpush.msra.mxu2 %v46_v12  ;;  %234 = vmatpush.msra.mxu3 %v47_v13  ;;  %v37_v20 = vld [vmem:[#allocation2 + $0x48] sm:$0xff]  ;;  %v39_v22 = vld [vmem:[#allocation2 + $0x58] sm:$0xff]  ;;  %v32_v23 = vld [vmem:[#allocation2 + $0x20] sm:$0xff] }
   0xe   :  { %166 = vmatpush.msra.mxu0 %v40_v14  ;;  %189 = vmatpush.msra.mxu1 %v41_v15  ;;  %v33_v24 = vld [vmem:[#allocation2 + $0x28] sm:$0xff]  ;;  %v34_v25 = vld [vmem:[#allocation2 + $0x30] sm:$0xff]  ;;  %v35_v26 = vld [vmem:[#allocation2 + $0x38] sm:$0xff] }
   0xf   :  { %212 = vmatpush.msra.mxu2 %v42_v16  ;;  %235 = vmatpush.msra.mxu3 %v43_v18  ;;  %v28_v27 = vld [vmem:[#allocation2] sm:$0xff]  ;;  %v29_v28 = vld [vmem:[#allocation2 + $0x8] sm:$0xff]  ;;  %v30_v29 = vld [vmem:[#allocation2 + $0x10] sm:$0xff] }
  0x10   :  { %139 = vperm.xlu0 %2352, %v132_v17   ;;  %167 = vmatpush.msra.mxu0 %v36_v19  ;;  %v31_v30 = vld [vmem:[#allocation2 + $0x18] sm:$0xff]  ;;  %v2633_v31 = vld [vmem:[#allocation2 + $0x1c0] sm:$0xff]  ;;  %v2635_v32 = vld [vmem:[#allocation2 + $0x1c8] sm:$0xff] }
  0x11   :  { %190 = vmatpush.msra.mxu1 %v37_v20  ;;  %213 = vmatpush.msra.mxu2 %v38_v21  ;;  %v2637_v33 = vld [vmem:[#allocation2 + $0x1a0] sm:$0xff]  ;;  %v2644_v34 = vld [vmem:[#allocation2 + $0x1a8] sm:$0xff] }
  0x12   :  { %236 = vmatpush.msra.mxu3 %v39_v22  ;;  %168 = vmatpush.msra.mxu0 %v32_v23  ;;  %v2649_v35 = vld [vmem:[#allocation2 + $0x180] sm:$0xff]  ;;  %v2651_v36 = vld [vmem:[#allocation2 + $0x188] sm:$0xff] }
  0x13   :  { %191 = vmatpush.msra.mxu1 %v33_v24  ;;  %214 = vmatpush.msra.mxu2 %v34_v25  ;;  %v2655_v37 = vld [vmem:[#allocation2 + $0x160] sm:$0xff]  ;;  %v2657_v38 = vld [vmem:[#allocation2 + $0x168] sm:$0xff] }
  0x14   :  { %237 = vmatpush.msra.mxu3 %v35_v26  ;;  %169 = vmatpush.msra.mxu0 %v28_v27  ;;  %v2659_v39 = vld [vmem:[#allocation2 + $0x140] sm:$0xff]  ;;  %v2665_v40 = vld [vmem:[#allocation2 + $0x148] sm:$0xff] }
  0x15   :  { %192 = vmatpush.msra.mxu1 %v29_v28  ;;  %215 = vmatpush.msra.mxu2 %v30_v29  ;;  %v2667_v41 = vld [vmem:[#allocation2 + $0x120] sm:$0xff]  ;;  %v2669_v42 = vld [vmem:[#allocation2 + $0x128] sm:$0xff] }
  0x16   :  { %238 = vmatpush.msra.mxu3 %v31_v30  ;;  %266 = vmatpush.msrb.mxu0 %v2633_v31  ;;  %v2675_v43 = vld [vmem:[#allocation2 + $0x100] sm:$0xff]  ;;  %v2677_v44 = vld [vmem:[#allocation2 + $0x108] sm:$0xff] }
  0x17   :  { %286 = vmatpush.msrb.mxu1 %v2635_v32  ;;  %367 = vmatpush.msrb.mxu2 %v2633_v31  ;;  %v2683_v45 = vld [vmem:[#allocation2 + $0xe0] sm:$0xff]  ;;  %v2685_v46 = vld [vmem:[#allocation2 + $0xe8] sm:$0xff] }
  0x18   :  { %387 = vmatpush.msrb.mxu3 %v2635_v32  ;;  %267 = vmatpush.msrb.mxu0 %v2637_v33 }
  0x19   :  { %368 = vmatpush.msrb.mxu2 %v2637_v33  ;;  %287 = vmatpush.msrb.mxu1 %v2644_v34 }
  0x1a   :  { %388 = vmatpush.msrb.mxu3 %v2644_v34  ;;  %268 = vmatpush.msrb.mxu0 %v2649_v35 }
  0x1b   :  { %288 = vmatpush.msrb.mxu1 %v2651_v36  ;;  %369 = vmatpush.msrb.mxu2 %v2649_v35 }
  0x1c   :  { %389 = vmatpush.msrb.mxu3 %v2651_v36  ;;  %269 = vmatpush.msrb.mxu0 %v2655_v37 }
  0x1d   :  { %289 = vmatpush.msrb.mxu1 %v2657_v38  ;;  %370 = vmatpush.msrb.mxu2 %v2655_v37 }
  0x1e   :  { %390 = vmatpush.msrb.mxu3 %v2657_v38  ;;  %270 = vmatpush.msrb.mxu0 %v2659_v39 }
  0x1f   :  { %290 = vmatpush.msrb.mxu1 %v2665_v40  ;;  %371 = vmatpush.msrb.mxu2 %v2659_v39 }
  0x20   :  { %391 = vmatpush.msrb.mxu3 %v2665_v40  ;;  %271 = vmatpush.msrb.mxu0 %v2667_v41 }
  0x21   :  { %291 = vmatpush.msrb.mxu1 %v2669_v42  ;;  %372 = vmatpush.msrb.mxu2 %v2667_v41 }
  0x22   :  { %392 = vmatpush.msrb.mxu3 %v2669_v42  ;;  %272 = vmatpush.msrb.mxu0 %v2675_v43 }
  0x23   :  { %292 = vmatpush.msrb.mxu1 %v2677_v44  ;;  %373 = vmatpush.msrb.mxu2 %v2675_v43 }
  0x24   :  { %393 = vmatpush.msrb.mxu3 %v2677_v44  ;;  %273 = vmatpush.msrb.mxu0 %v2683_v45 }
  0x25   :  { %293 = vmatpush.msrb.mxu1 %v2685_v46  ;;  %374 = vmatpush.msrb.mxu2 %v2683_v45 }
  0x26   :  { %394 = vmatpush.msrb.mxu3 %v2685_v46 }
  0x7a   :  { %v137_v49 = vpop.permute.xlu0 %136 }
  0x7b   :  { %vm141_vm1 = vcmp.eq.s32.totalorder %v134_v48, %v137_v49 }
  0x7c   :  { %v2254_v51 = vsel %vm141_vm1, 1.0, %v2605_v50 }
  0x7d   :  { %2256 = vmatmul.msk.f32.vlgmr.msra.gmra.mxu0 %vm147_vm0, %v2254_v51  ;;  %2258 = vmatmul.msk.f32.vlgmr.msra.gmra.mxu1 %vm147_vm0, %v2254_v51 }
  0x7e   :  { %2260 = vmatmul.msk.f32.vlgmr.msra.gmra.mxu2 %vm147_vm0, %v2254_v51  ;;  %2262 = vmatmul.msk.f32.vlgmr.msra.gmra.mxu3 %vm147_vm0, %v2254_v51 }
  0x7f   :  { %472 = vmatpush.msra.mxu0 %v2633_v31  ;;  %492 = vmatpush.msra.mxu1 %v2635_v32 }
  0x80   :  { %577 = vmatpush.msra.mxu2 %v2633_v31  ;;  %597 = vmatpush.msra.mxu3 %v2635_v32 }
  0x81   :  { %473 = vmatpush.msra.mxu0 %v2637_v33  ;;  %493 = vmatpush.msra.mxu1 %v2644_v34 }
  0x82   :  { %v140_v52 = vpop.permute.xlu0 %139  ;;  %578 = vmatpush.msra.mxu2 %v2637_v33  ;;  %598 = vmatpush.msra.mxu3 %v2644_v34 }
  0x83   :  { %vm142_vm2 = vcmp.eq.s32.totalorder %v134_v48, %v140_v52  ;;  %474 = vmatpush.msra.mxu0 %v2649_v35  ;;  %494 = vmatpush.msra.mxu1 %v2651_v36 }
  0x84   :  { %v2255_v53 = vsel %vm142_vm2, 1.0, %v2605_v50  ;;  %579 = vmatpush.msra.mxu2 %v2649_v35  ;;  %599 = vmatpush.msra.mxu3 %v2651_v36 }
  0x85   :  { %2257 = vmatmul.msk.f32.gmra.mxu0 %vm147_vm0, %v2255_v53  ;;  %2259 = vmatmul.msk.f32.gmra.mxu1 %vm147_vm0, %v2255_v53 }
  0x86   :  { %2261 = vmatmul.msk.f32.gmra.mxu2 %vm147_vm0, %v2255_v53  ;;  %2263 = vmatmul.msk.f32.gmra.mxu3 %vm147_vm0, %v2255_v53 }
  0x87   :  { %475 = vmatpush.msra.mxu0 %v2655_v37  ;;  %495 = vmatpush.msra.mxu1 %v2657_v38 }
  0x88   :  { %580 = vmatpush.msra.mxu2 %v2655_v37  ;;  %600 = vmatpush.msra.mxu3 %v2657_v38 }
  0x89   :  { %476 = vmatpush.msra.mxu0 %v2659_v39  ;;  %496 = vmatpush.msra.mxu1 %v2665_v40 }
  0x8a   :  { %581 = vmatpush.msra.mxu2 %v2659_v39  ;;  %601 = vmatpush.msra.mxu3 %v2665_v40 }
  0x8b   :  { %477 = vmatpush.msra.mxu0 %v2667_v41  ;;  %497 = vmatpush.msra.mxu1 %v2669_v42 }
  0x8c   :  { %582 = vmatpush.msra.mxu2 %v2667_v41  ;;  %602 = vmatpush.msra.mxu3 %v2669_v42 }
  0x8d   :  { %274 = vmatmul.f32.vlgmr.msrb.gmra.mxu0 %v2605_v50  ;;  %294 = vmatmul.f32.vlgmr.msrb.gmra.mxu1 %v2605_v50 }
  0x8e   :  { %478 = vmatpush.msra.mxu0 %v2675_v43  ;;  %498 = vmatpush.msra.mxu1 %v2677_v44 }
  0x8f   :  { %583 = vmatpush.msra.mxu2 %v2675_v43  ;;  %603 = vmatpush.msra.mxu3 %v2677_v44 }
  0x90   :  { %479 = vmatpush.msra.mxu0 %v2683_v45  ;;  %499 = vmatpush.msra.mxu1 %v2685_v46 }
  0x91   :  { %584 = vmatpush.msra.mxu2 %v2683_v45  ;;  %604 = vmatpush.msra.mxu3 %v2685_v46 }
  0x92   :  { %690 = vmatpush.msrb.mxu0 %v2633_v31  ;;  %710 = vmatpush.msrb.mxu1 %v2635_v32 }
  0x94   :  { %691 = vmatpush.msrb.mxu0 %v2637_v33  ;;  %711 = vmatpush.msrb.mxu1 %v2644_v34 }
  0x96   :  { %692 = vmatpush.msrb.mxu0 %v2649_v35  ;;  %712 = vmatpush.msrb.mxu1 %v2651_v36 }
  0x98   :  { %693 = vmatpush.msrb.mxu0 %v2655_v37  ;;  %713 = vmatpush.msrb.mxu1 %v2657_v38 }
  0x9a   :  { %694 = vmatpush.msrb.mxu0 %v2659_v39  ;;  %714 = vmatpush.msrb.mxu1 %v2665_v40 }
  0x9c   :  { %695 = vmatpush.msrb.mxu0 %v2667_v41  ;;  %715 = vmatpush.msrb.mxu1 %v2669_v42 }
  0x9e   :  { %696 = vmatpush.msrb.mxu0 %v2675_v43  ;;  %716 = vmatpush.msrb.mxu1 %v2677_v44 }
  0xa0   :  { %697 = vmatpush.msrb.mxu0 %v2683_v45  ;;  %717 = vmatpush.msrb.mxu1 %v2685_v46 }
  0xfa   :  { %v2757_v54 = vpop.f32.mrf.mxu0  ;;  %v2759_v55 = vpop.f32.mrf.mxu1 }
 0x101   :  { %v217_v56 = vpop.f32.mrf.mxu2  ;;  %v240_v57 = vpop.f32.mrf.mxu3 }
 0x102   :  { %v670_v58 = vrot.slane %v217_v56, 6  ;;  %v775_v59 = vrot.slane %v217_v56, 2  ;;  %v671_v60 = vrot.slane %v240_v57, 6  ;;  %v776_v61 = vrot.slane %v240_v57, 2  ;;  %v174_v62 = vpop.f32.mrf.mxu0  ;;  %v197_v63 = vpop.f32.mrf.mxu1 }
 0x104   :  { %v2761_v0 = vadd.f32 %v670_v58, %v174_v62  ;;  %v2763_v1 = vadd.f32 %v775_v59, %v174_v62  ;;  %v2765_v2 = vadd.f32 %v671_v60, %v197_v63  ;;  %v2767_v3 = vadd.f32 %v776_v61, %v197_v63 }
 0x109   :  { %v2769_v4 = vpop.f32.mrf.mxu2  ;;  %v2776_v10 = vpop.f32.mrf.mxu3 }
 0x10a   :  { %v248_v5 = vrot.slane %v2769_v4, 6  ;;  %v275_v6 = vpop.f32.mrf.mxu0  ;;  %v249_v12 = vrot.slane %v2776_v10, 6  ;;  %v295_v15 = vpop.f32.mrf.mxu1 }
 0x10c   :  { %v2773_v7 = vadd.f32 %v248_v5, %v2757_v54  ;;  %v2780_v14 = vadd.f32 %v249_v12, %v2759_v55 }
 0x10e   :  { %v298_v8 = vadd.f32 %v275_v6, %v2773_v7  ;;  %v299_v17 = vadd.f32 %v295_v15, %v2780_v14 }
 0x110   :  { %v2264_v9 = vmul.f32 -1.442695, %v298_v8  ;;  %v2265_v29 = vmul.f32 -1.442695, %v299_v17 }
 0x112   :  { %2353 = vpow2.f32 %v2264_v9  ;;  %v348_v9 = vrot.slane %v2769_v4, 2 }
 0x114   :  { %v2811_v12 = vadd.f32 %v348_v9, %v2757_v54 }
 0x118   :  { %v2354_v11 = vpop.eup %2353 }
 0x119   :  { %v306_v13 = vadd.f32 1.0, %v2354_v11 }
 0x11b   :  { %2355 = vrcp.f32 %v306_v13  ;;  %v319_v20 = vand.u32 2147483648, %v306_v13  ;;  %v317_v22 = vand.u32 2147483647, %v306_v13  ;;  %vm313_vm4 = vweird.f32 %v306_v13 }
 0x11c   :  { %2357 = vtanh.f32 %v299_v17 }
 0x11d   :  { %v320_v24 = vor.u32 1.1754944e-38, %v319_v20  ;;  %vm318_vm6 = vcmp.eq.f32.partialorder %v317_v22, 8.507059e+37  ;;  %2359 = vpow2.f32 %v2265_v29  ;;  %v349_v20 = vrot.slane %v2776_v10, 2 }
 0x11f   :  { %v2816_v22 = vadd.f32 %v349_v20, %v2759_v55 }
 0x121   :  { %v2356_v16 = vpop.eup %2355 }
 0x122   :  { %v309_v18 = vmul.f32 %v2356_v16, %v306_v13  ;;  %vm314_vm3 = vweird.f32 %v2356_v16  ;;  %v2358_v26 = vpop.eup %2357 }
 0x123   :  { %vm315_vm5 = vmor %vm313_vm4, %vm314_vm3  ;;  %v2360_v30 = vpop.eup %2359 }
 0x124   :  { %v310_v19 = vsub.f32 1.0, %v309_v18  ;;  %v307_v47 = vadd.f32 1.0, %v2360_v30 }
 0x126   :  { %v311_v21 = vmul.f32 %v2356_v16, %v310_v19  ;;  %2361 = vrcp.f32 %v307_v47  ;;  %v334_v59 = vand.u32 2147483648, %v307_v47  ;;  %vm328_vm8 = vweird.f32 %v307_v47 }
 0x127   :  { %v332_v60 = vand.u32 2147483647, %v307_v47 }
 0x128   :  { %v312_v23 = vadd.f32 %v2356_v16, %v311_v21  ;;  %v335_v62 = vor.u32 1.1754944e-38, %v334_v59 }
 0x129   :  { %vm333_vm10 = vcmp.eq.f32.partialorder %v332_v60, 8.507059e+37 }
 0x12a   :  { %v316_v25 = vsel %vm315_vm5, %v2356_v16, %v312_v23 }
 0x12b   :  { %v321_v27 = vsel %vm318_vm6, %v320_v24, %v316_v25 }
 0x12c   :  { %v340_v28 = vmul.f32 %v2358_v26, %v321_v27  ;;  %v2362_v48 = vpop.eup %2361  ;;  %v339_v53 = vmul.f32 0.0, %v321_v27 }
 0x12d   :  { %v324_v49 = vmul.f32 %v2362_v48, %v307_v47  ;;  %vm329_vm7 = vweird.f32 %v2362_v48 }
 0x12e   :  { %342 = vrot.lane.b32.xlu1 %v340_v28, %s2606_s0  ;;  %vm330_vm9 = vmor %vm328_vm8, %vm329_vm7 }
 0x12f   :  { %v325_v51 = vsub.f32 1.0, %v324_v49 }
 0x131   :  { %v326_v52 = vmul.f32 %v2362_v48, %v325_v51 }
 0x133   :  { %v327_v58 = vadd.f32 %v2362_v48, %v326_v52 }
 0x135   :  { %v331_v61 = vsel %vm330_vm9, %v2362_v48, %v327_v58 }
 0x136   :  { %v336_v5 = vsel %vm333_vm10, %v335_v62, %v331_v61 }
 0x1a0   :  { %v343_v56 = vpop.permute.xlu1 %342 }
 0x1a1   :  { %v2784_v57 = vadd.f32 %v343_v56, %v339_v53 }
 0x1a3   :  { %2363 = vtanh.f32 %v2784_v57  ;;  %v447_v10 = vrot.slane %v2784_v57, 6 }
 0x1a9   :  { %v2364_v63 = vpop.eup %2363 }
 0x1aa   :  { %v2787_v6 = vmul.f32 %v2364_v63, %v336_v5 }
 0x1ac   :  { %355 = vrot.lane.b32.xlu1 %v2787_v6, %s2606_s0 }
 0x21e   :  { %v356_v8 = vpop.permute.xlu1 %355 }
 0x21f   :  { %2266 = vmatmul.msk.f32.vlgmr.msrb.gmra.mxu2 %vm254_vm11, %v356_v8  ;;  %2267 = vmatmul.msk.f32.vlgmr.msrb.gmra.mxu3 %vm254_vm11, %v356_v8 }
 0x220   :  { %794 = vmatpush.msrb.mxu2 %v2633_v31  ;;  %814 = vmatpush.msrb.mxu3 %v2635_v32 }
 0x222   :  { %795 = vmatpush.msrb.mxu2 %v2637_v33  ;;  %815 = vmatpush.msrb.mxu3 %v2644_v34 }
 0x224   :  { %796 = vmatpush.msrb.mxu2 %v2649_v35  ;;  %816 = vmatpush.msrb.mxu3 %v2651_v36 }
 0x226   :  { %797 = vmatpush.msrb.mxu2 %v2655_v37  ;;  %817 = vmatpush.msrb.mxu3 %v2657_v38 }
 0x228   :  { %798 = vmatpush.msrb.mxu2 %v2659_v39  ;;  %818 = vmatpush.msrb.mxu3 %v2665_v40 }
 0x22a   :  { %799 = vmatpush.msrb.mxu2 %v2667_v41  ;;  %819 = vmatpush.msrb.mxu3 %v2669_v42 }
 0x22c   :  { %800 = vmatpush.msrb.mxu2 %v2675_v43  ;;  %820 = vmatpush.msrb.mxu3 %v2677_v44 }
 0x22e   :  { %801 = vmatpush.msrb.mxu2 %v2683_v45  ;;  %821 = vmatpush.msrb.mxu3 %v2685_v46 }
 0x2a2   :  { %v376_v11 = vpop.f32.mrf.mxu2  ;;  %v396_v19 = vpop.f32.mrf.mxu3 }
 0x2a3   :  { %v401_v13 = vrot.slane %v376_v11, 6  ;;  %v402_v21 = vrot.slane %v396_v19, 6 }
 0x2a5   :  { %v405_v15 = vadd.f32 %v401_v13, %v2811_v12  ;;  %v406_v23 = vadd.f32 %v402_v21, %v2816_v22 }
 0x2a7   :  { %v2268_v16 = vmul.f32 -1.442695, %v405_v15  ;;  %v2269_v51 = vmul.f32 -1.442695, %v406_v23 }
 0x2a9   :  { %2365 = vpow2.f32 %v2268_v16 }
 0x2af   :  { %v2366_v17 = vpop.eup %2365 }
 0x2b0   :  { %v413_v18 = vadd.f32 1.0, %v2366_v17 }
 0x2b2   :  { %2367 = vrcp.f32 %v413_v18  ;;  %v426_v25 = vand.u32 2147483648, %v413_v18  ;;  %v424_v27 = vand.u32 2147483647, %v413_v18  ;;  %vm420_vm13 = vweird.f32 %v413_v18 }
 0x2b3   :  { %2369 = vtanh.f32 %v406_v23 }
 0x2b4   :  { %v427_v29 = vor.u32 1.1754944e-38, %v426_v25  ;;  %vm425_vm15 = vcmp.eq.f32.partialorder %v424_v27, 8.507059e+37  ;;  %2371 = vpow2.f32 %v2269_v51 }
 0x2b8   :  { %v2368_v4 = vpop.eup %2367 }
 0x2b9   :  { %v416_v54 = vmul.f32 %v2368_v4, %v413_v18  ;;  %vm421_vm12 = vweird.f32 %v2368_v4  ;;  %v2370_v55 = vpop.eup %2369 }
 0x2ba   :  { %vm422_vm14 = vmor %vm420_vm13, %vm421_vm12  ;;  %v2372_v52 = vpop.eup %2371  ;;  %vm1095_vm13 = vcmask 1041408  }
 0x2bb   :  { %v417_v24 = vsub.f32 1.0, %v416_v54  ;;  %v414_v53 = vadd.f32 1.0, %v2372_v52 }
 0x2bd   :  { %v418_v26 = vmul.f32 %v2368_v4, %v417_v24  ;;  %2373 = vrcp.f32 %v414_v53  ;;  %v441_v63 = vand.u32 2147483648, %v414_v53  ;;  %vm435_vm1 = vweird.f32 %v414_v53 }
 0x2be   :  { %v439_v5 = vand.u32 2147483647, %v414_v53 }
 0x2bf   :  { %v419_v28 = vadd.f32 %v2368_v4, %v418_v26  ;;  %v442_v9 = vor.u32 1.1754944e-38, %v441_v63 }
 0x2c0   :  { %vm440_vm3 = vcmp.eq.f32.partialorder %v439_v5, 8.507059e+37 }
 0x2c1   :  { %v423_v30 = vsel %vm422_vm14, %v2368_v4, %v419_v28  ;;  %vm1097_vm14 = vcmask 1043456  }
 0x2c2   :  { %v428_v47 = vsel %vm425_vm15, %v427_v29, %v423_v30 }
 0x2c3   :  { %v450_v48 = vmul.f32 %v2370_v55, %v428_v47  ;;  %v449_v49 = vmul.f32 %v447_v10, %v428_v47  ;;  %v2374_v56 = vpop.eup %2373 }
 0x2c4   :  { %v431_v58 = vmul.f32 %v2374_v56, %v414_v53  ;;  %vm436_vm0 = vweird.f32 %v2374_v56 }
 0x2c5   :  { %452 = vrot.lane.b32.xlu2 %v450_v48, %s2606_s0  ;;  %vm437_vm2 = vmor %vm435_vm1, %vm436_vm0 }
 0x2c6   :  { %v432_v59 = vsub.f32 1.0, %v431_v58 }
 0x2c8   :  { %v433_v60 = vmul.f32 %v2374_v56, %v432_v59 }
 0x2ca   :  { %v434_v57 = vadd.f32 %v2374_v56, %v433_v60 }
 0x2cc   :  { %v438_v8 = vsel %vm437_vm2, %v2374_v56, %v434_v57 }
 0x2cd   :  { %v443_v13 = vsel %vm440_vm3, %v442_v9, %v438_v8 }
 0x31f   :  { %v453_v61 = vpop.permute.xlu2 %452 }
 0x320   :  { %v2821_v62 = vadd.f32 %v453_v61, %v449_v49 }
 0x322   :  { %2375 = vtanh.f32 %v2821_v62  ;;  %v552_v47 = vrot.slane %v2821_v62, 6 }
 0x328   :  { %v2376_v11 = vpop.eup %2375 }
 0x329   :  { %v2824_v15 = vmul.f32 %v2376_v11, %v443_v13 }
 0x32b   :  { %v459_v16 = vrot.slane %v2824_v15, 2 }
 0x32d   :  { %460 = vrot.lane.b32.xlu2 %v459_v16, %s2606_s0 }
 0x387   :  { %v461_v17 = vpop.permute.xlu2 %460 }
 0x388   :  { %2270 = vmatmul.msk.f32.vlgmr.msra.gmra.mxu0 %vm254_vm11, %v461_v17  ;;  %2271 = vmatmul.msk.f32.vlgmr.msra.gmra.mxu1 %vm254_vm11, %v461_v17 }
 0x389   :  { %899 = vmatpush.msra.mxu0 %v2633_v31  ;;  %919 = vmatpush.msra.mxu1 %v2635_v32 }
 0x38b   :  { %900 = vmatpush.msra.mxu0 %v2637_v33  ;;  %920 = vmatpush.msra.mxu1 %v2644_v34 }
 0x38d   :  { %901 = vmatpush.msra.mxu0 %v2649_v35  ;;  %921 = vmatpush.msra.mxu1 %v2651_v36 }
 0x38f   :  { %902 = vmatpush.msra.mxu0 %v2655_v37  ;;  %922 = vmatpush.msra.mxu1 %v2657_v38 }
 0x391   :  { %903 = vmatpush.msra.mxu0 %v2659_v39  ;;  %923 = vmatpush.msra.mxu1 %v2665_v40 }
 0x393   :  { %904 = vmatpush.msra.mxu0 %v2667_v41  ;;  %924 = vmatpush.msra.mxu1 %v2669_v42 }
 0x395   :  { %905 = vmatpush.msra.mxu0 %v2675_v43  ;;  %925 = vmatpush.msra.mxu1 %v2677_v44 }
 0x397   :  { %906 = vmatpush.msra.mxu0 %v2683_v45  ;;  %926 = vmatpush.msra.mxu1 %v2685_v46 }
 0x405   :  { %v481_v18 = vpop.f32.mrf.mxu0  ;;  %v501_v54 = vpop.f32.mrf.mxu1 }
 0x406   :  { %v506_v19 = vrot.slane %v481_v18, 4  ;;  %v507_v24 = vrot.slane %v501_v54, 4 }
 0x408   :  { %v510_v20 = vadd.f32 %v506_v19, %v2773_v7  ;;  %v511_v26 = vadd.f32 %v507_v24, %v2780_v14  ;;  %v1096_v19 = vsel %vm1095_vm13, %v2787_v6, %v2824_v15 }
 0x40a   :  { %v2272_v21 = vmul.f32 -1.442695, %v510_v20  ;;  %v2273_v14 = vmul.f32 -1.442695, %v511_v26 }
 0x40c   :  { %2377 = vpow2.f32 %v2272_v21 }
 0x412   :  { %v2378_v4 = vpop.eup %2377 }
 0x413   :  { %v518_v23 = vadd.f32 1.0, %v2378_v4 }
 0x415   :  { %2379 = vrcp.f32 %v518_v23  ;;  %v531_v29 = vand.u32 2147483648, %v518_v23  ;;  %v529_v30 = vand.u32 2147483647, %v518_v23  ;;  %vm525_vm5 = vweird.f32 %v518_v23 }
 0x416   :  { %2381 = vtanh.f32 %v511_v26 }
 0x417   :  { %v532_v7 = vor.u32 1.1754944e-38, %v531_v29  ;;  %vm530_vm7 = vcmp.eq.f32.partialorder %v529_v30, 8.507059e+37  ;;  %2383 = vpow2.f32 %v2273_v14 }
 0x41b   :  { %v2380_v25 = vpop.eup %2379 }
 0x41c   :  { %v521_v27 = vmul.f32 %v2380_v25, %v518_v23  ;;  %vm526_vm4 = vweird.f32 %v2380_v25  ;;  %v2382_v49 = vpop.eup %2381 }
 0x41d   :  { %vm527_vm6 = vmor %vm525_vm5, %vm526_vm4  ;;  %v2384_v56 = vpop.eup %2383 }
 0x41e   :  { %v522_v28 = vsub.f32 1.0, %v521_v27  ;;  %v519_v58 = vadd.f32 1.0, %v2384_v56 }
 0x420   :  { %v523_v10 = vmul.f32 %v2380_v25, %v522_v28  ;;  %2385 = vrcp.f32 %v519_v58  ;;  %v546_v8 = vand.u32 2147483648, %v519_v58  ;;  %vm540_vm9 = vweird.f32 %v519_v58 }
 0x421   :  { %v544_v9 = vand.u32 2147483647, %v519_v58 }
 0x422   :  { %v524_v55 = vadd.f32 %v2380_v25, %v523_v10  ;;  %v547_v13 = vor.u32 1.1754944e-38, %v546_v8 }
 0x423   :  { %vm545_vm12 = vcmp.eq.f32.partialorder %v544_v9, 8.507059e+37 }
 0x424   :  { %v528_v48 = vsel %vm527_vm6, %v2380_v25, %v524_v55 }
 0x425   :  { %v533_v51 = vsel %vm530_vm7, %v532_v7, %v528_v48  ;;  %vm1099_vm7 = vcmask 1045504  }
 0x426   :  { %v555_v52 = vmul.f32 %v2382_v49, %v533_v51  ;;  %v554_v53 = vmul.f32 %v552_v47, %v533_v51  ;;  %v2386_v59 = vpop.eup %2385 }
 0x427   :  { %v536_v60 = vmul.f32 %v2386_v59, %v519_v58  ;;  %vm541_vm8 = vweird.f32 %v2386_v59 }
 0x428   :  { %557 = vrot.lane.b32.xlu0 %v555_v52, %s2606_s0  ;;  %vm542_vm10 = vmor %vm540_vm9, %vm541_vm8 }
 0x429   :  { %v537_v61 = vsub.f32 1.0, %v536_v60 }
 0x42b   :  { %v538_v57 = vmul.f32 %v2386_v59, %v537_v61 }
 0x42d   :  { %v539_v62 = vadd.f32 %v2386_v59, %v538_v57 }
 0x42f   :  { %v543_v11 = vsel %vm542_vm10, %v2386_v59, %v539_v62 }
 0x430   :  { %v548_v17 = vsel %vm545_vm12, %v547_v13, %v543_v11 }
 0x49a   :  { %v558_v63 = vpop.permute.xlu0 %557 }
 0x49b   :  { %v2850_v5 = vadd.f32 %v558_v63, %v554_v53 }
 0x49d   :  { %2387 = vtanh.f32 %v2850_v5 }
 0x4a3   :  { %v2388_v16 = vpop.eup %2387 }
 0x4a4   :  { %v562_v18 = vmul.f32 %v2388_v16, %v548_v17 }
 0x4a6   :  { %v564_v20 = vrot.slane %v562_v18, 4  ;;  %v2857_v21 = vsel %vm1097_vm14, %v1096_v19, %v562_v18 }
 0x4a8   :  { %565 = vrot.lane.b32.xlu1 %v564_v20, %s2606_s0 }
 0x51a   :  { %v566_v4 = vpop.permute.xlu1 %565 }
 0x51b   :  { %2274 = vmatmul.msk.f32.vlgmr.msra.gmra.mxu2 %vm254_vm11, %v566_v4  ;;  %2275 = vmatmul.msk.f32.vlgmr.msra.gmra.mxu3 %vm254_vm11, %v566_v4 }
 0x51c   :  { %1004 = vmatpush.msra.mxu2 %v2633_v31  ;;  %1024 = vmatpush.msra.mxu3 %v2635_v32 }
 0x51e   :  { %1005 = vmatpush.msra.mxu2 %v2637_v33  ;;  %1025 = vmatpush.msra.mxu3 %v2644_v34 }
 0x520   :  { %1006 = vmatpush.msra.mxu2 %v2649_v35  ;;  %1026 = vmatpush.msra.mxu3 %v2651_v36 }
 0x522   :  { %1007 = vmatpush.msra.mxu2 %v2655_v37  ;;  %1027 = vmatpush.msra.mxu3 %v2657_v38 }
 0x524   :  { %1008 = vmatpush.msra.mxu2 %v2659_v39  ;;  %1028 = vmatpush.msra.mxu3 %v2665_v40 }
 0x526   :  { %1009 = vmatpush.msra.mxu2 %v2667_v41  ;;  %1029 = vmatpush.msra.mxu3 %v2669_v42 }
 0x528   :  { %1010 = vmatpush.msra.mxu2 %v2675_v43  ;;  %1030 = vmatpush.msra.mxu3 %v2677_v44 }
 0x52a   :  { %1011 = vmatpush.msra.mxu2 %v2683_v45  ;;  %1031 = vmatpush.msra.mxu3 %v2685_v46 }
 0x59e   :  { %v586_v31 = vpop.f32.mrf.mxu2  ;;  %v606_v37 = vpop.f32.mrf.mxu3 }
 0x59f   :  { %v611_v32 = vrot.slane %v586_v31, 2  ;;  %v612_v38 = vrot.slane %v606_v37, 2 }
 0x5a1   :  { %v615_v33 = vadd.f32 %v611_v32, %v2811_v12  ;;  %v616_v40 = vadd.f32 %v612_v38, %v2816_v22  ;;  %v657_v12 = vrot.slane %v2850_v5, 6 }
 0x5a3   :  { %v2276_v34 = vmul.f32 -1.442695, %v615_v33  ;;  %v2277_v22 = vmul.f32 -1.442695, %v616_v40 }
 0x5a5   :  { %2389 = vpow2.f32 %v2276_v34 }
 0x5ab   :  { %v2390_v35 = vpop.eup %2389 }
 0x5ac   :  { %v623_v36 = vadd.f32 1.0, %v2390_v35 }
 0x5ae   :  { %2391 = vrcp.f32 %v623_v36  ;;  %v636_v43 = vand.u32 2147483648, %v623_v36  ;;  %v634_v45 = vand.u32 2147483647, %v623_v36  ;;  %vm630_vm0 = vweird.f32 %v623_v36 }
 0x5af   :  { %2393 = vtanh.f32 %v616_v40 }
 0x5b0   :  { %v637_v6 = vor.u32 1.1754944e-38, %v636_v43  ;;  %vm635_vm2 = vcmp.eq.f32.partialorder %v634_v45, 8.507059e+37  ;;  %2395 = vpow2.f32 %v2277_v22 }
 0x5b4   :  { %v2392_v39 = vpop.eup %2391 }
 0x5b5   :  { %v626_v41 = vmul.f32 %v2392_v39, %v623_v36  ;;  %vm631_vm15 = vweird.f32 %v2392_v39  ;;  %v2394_v23 = vpop.eup %2393 }
 0x5b6   :  { %vm632_vm1 = vmor %vm630_vm0, %vm631_vm15  ;;  %v2396_v26 = vpop.eup %2395 }
 0x5b7   :  { %v627_v42 = vsub.f32 1.0, %v626_v41  ;;  %v624_v27 = vadd.f32 1.0, %v2396_v26 }
 0x5b9   :  { %v628_v44 = vmul.f32 %v2392_v39, %v627_v42  ;;  %2397 = vrcp.f32 %v624_v27  ;;  %v651_v48 = vand.u32 2147483648, %v624_v27  ;;  %vm645_vm4 = vweird.f32 %v624_v27 }
 0x5ba   :  { %v649_v49 = vand.u32 2147483647, %v624_v27 }
 0x5bb   :  { %v629_v46 = vadd.f32 %v2392_v39, %v628_v44  ;;  %v652_v52 = vor.u32 1.1754944e-38, %v651_v48 }
 0x5bc   :  { %vm650_vm6 = vcmp.eq.f32.partialorder %v649_v49, 8.507059e+37 }
 0x5bd   :  { %v633_v15 = vsel %vm632_vm1, %v2392_v39, %v629_v46 }
 0x5be   :  { %v638_v54 = vsel %vm635_vm2, %v637_v6, %v633_v15 }
 0x5bf   :  { %v660_v24 = vmul.f32 %v2394_v23, %v638_v54  ;;  %v659_v25 = vmul.f32 %v657_v12, %v638_v54  ;;  %v2398_v28 = vpop.eup %2397 }
 0x5c0   :  { %v641_v29 = vmul.f32 %v2398_v28, %v624_v27  ;;  %vm646_vm3 = vweird.f32 %v2398_v28 }
 0x5c1   :  { %662 = vrot.lane.b32.xlu2 %v660_v24, %s2606_s0  ;;  %vm647_vm5 = vmor %vm645_vm4, %vm646_vm3 }
 0x5c2   :  { %v642_v10 = vsub.f32 1.0, %v641_v29 }
 0x5c4   :  { %v643_v30 = vmul.f32 %v2398_v28, %v642_v10 }
 0x5c6   :  { %v644_v47 = vadd.f32 %v2398_v28, %v643_v30 }
 0x5c8   :  { %v648_v51 = vsel %vm647_vm5, %v2398_v28, %v644_v47 }
 0x5c9   :  { %v653_v14 = vsel %vm650_vm6, %v652_v52, %v648_v51 }
 0x61b   :  { %v663_v55 = vpop.permute.xlu2 %662 }
 0x61c   :  { %v665_v7 = vadd.f32 %v663_v55, %v659_v25 }
 0x61e   :  { %2399 = vtanh.f32 %v665_v7  ;;  %v764_v4 = vrot.slane %v665_v7, 6 }
 0x624   :  { %v2400_v53 = vpop.eup %2399 }
 0x625   :  { %v667_v56 = vmul.f32 %v2400_v53, %v653_v14 }
 0x627   :  { %v677_v58 = vrot.slane %v667_v56, 6  ;;  %v2884_v59 = vsel %vm1099_vm7, %v2857_v21, %v667_v56 }
 0x629   :  { %678 = vrot.lane.b32.xlu0 %v677_v58, %s2606_s0 }
 0x69b   :  { %v679_v60 = vpop.permute.xlu0 %678 }
 0x69c   :  { %2278 = vmatmul.msk.f32.vlgmr.msrb.gmra.mxu0 %vm254_vm11, %v679_v60  ;;  %2279 = vmatmul.msk.f32.vlgmr.msrb.gmra.mxu1 %vm254_vm11, %v679_v60 }
 0x719   :  { %v699_v61 = vpop.f32.mrf.mxu0  ;;  %v719_v8 = vpop.f32.mrf.mxu1 }
 0x71a   :  { %v722_v57 = vadd.f32 %v699_v61, %v2761_v0  ;;  %v723_v11 = vadd.f32 %v719_v8, %v2765_v2 }
 0x71c   :  { %v2280_v63 = vmul.f32 -1.442695, %v722_v57  ;;  %v2281_v36 = vmul.f32 -1.442695, %v723_v11 }
 0x71e   :  { %2401 = vpow2.f32 %v2280_v63 }
 0x724   :  { %v2402_v5 = vpop.eup %2401 }
 0x725   :  { %v730_v62 = vadd.f32 1.0, %v2402_v5 }
 0x727   :  { %2403 = vrcp.f32 %v730_v62  ;;  %v743_v17 = vand.u32 2147483648, %v730_v62  ;;  %v741_v19 = vand.u32 2147483647, %v730_v62  ;;  %vm737_vm9 = vweird.f32 %v730_v62 }
 0x728   :  { %2405 = vtanh.f32 %v723_v11 }
 0x729   :  { %v744_v21 = vor.u32 1.1754944e-38, %v743_v17  ;;  %vm742_vm12 = vcmp.eq.f32.partialorder %v741_v19, 8.507059e+37  ;;  %2407 = vpow2.f32 %v2281_v36 }
 0x72d   :  { %v2404_v9 = vpop.eup %2403 }
 0x72e   :  { %v733_v13 = vmul.f32 %v2404_v9, %v730_v62  ;;  %vm738_vm8 = vweird.f32 %v2404_v9  ;;  %v2406_v32 = vpop.eup %2405 }
 0x72f   :  { %vm739_vm10 = vmor %vm737_vm9, %vm738_vm8  ;;  %v2408_v37 = vpop.eup %2407 }
 0x730   :  { %v734_v16 = vsub.f32 1.0, %v733_v13  ;;  %v731_v38 = vadd.f32 1.0, %v2408_v37 }
 0x732   :  { %v735_v18 = vmul.f32 %v2404_v9, %v734_v16  ;;  %2409 = vrcp.f32 %v731_v38  ;;  %v758_v46 = vand.u32 2147483648, %v731_v38  ;;  %vm752_vm0 = vweird.f32 %v731_v38 }
 0x733   :  { %v756_v6 = vand.u32 2147483647, %v731_v38 }
 0x734   :  { %v736_v20 = vadd.f32 %v2404_v9, %v735_v18  ;;  %v759_v15 = vor.u32 1.1754944e-38, %v758_v46 }
 0x735   :  { %vm757_vm2 = vcmp.eq.f32.partialorder %v756_v6, 8.507059e+37 }
 0x736   :  { %v740_v31 = vsel %vm739_vm10, %v2404_v9, %v736_v20 }
 0x737   :  { %v745_v33 = vsel %vm742_vm12, %v744_v21, %v740_v31 }
 0x738   :  { %v767_v34 = vmul.f32 %v2406_v32, %v745_v33  ;;  %v766_v35 = vmul.f32 %v764_v4, %v745_v33  ;;  %v2410_v39 = vpop.eup %2409 }
 0x739   :  { %v748_v40 = vmul.f32 %v2410_v39, %v731_v38  ;;  %vm753_vm15 = vweird.f32 %v2410_v39 }
 0x73a   :  { %769 = vrot.lane.b32.xlu1 %v767_v34, %s2606_s0  ;;  %vm754_vm1 = vmor %vm752_vm0, %vm753_vm15 }
 0x73b   :  { %v749_v41 = vsub.f32 1.0, %v748_v40 }
 0x73d   :  { %v750_v42 = vmul.f32 %v2410_v39, %v749_v41 }
 0x73f   :  { %v751_v45 = vadd.f32 %v2410_v39, %v750_v42 }
 0x741   :  { %v755_v12 = vsel %vm754_vm1, %v2410_v39, %v751_v45 }
 0x742   :  { %v760_v54 = vsel %vm757_vm2, %v759_v15, %v755_v12 }
 0x7ac   :  { %v770_v43 = vpop.permute.xlu1 %769 }
 0x7ad   :  { %v772_v44 = vadd.f32 %v770_v43, %v766_v35 }
 0x7af   :  { %2411 = vtanh.f32 %v772_v44  ;;  %v874_v58 = vrot.slane %v772_v44, 6 }
 0x7b5   :  { %v2412_v23 = vpop.eup %2411 }
 0x7b6   :  { %v2892_v24 = vmul.f32 %v2412_v23, %v760_v54 }
 0x7b8   :  { %782 = vrot.lane.b32.xlu2 %v2892_v24, %s2606_s0 }
 0x812   :  { %v783_v25 = vpop.permute.xlu2 %782 }
 0x813   :  { %2282 = vmatmul.msk.f32.vlgmr.msrb.gmra.mxu2 %vm254_vm11, %v783_v25  ;;  %2283 = vmatmul.msk.f32.vlgmr.msrb.gmra.mxu3 %vm254_vm11, %v783_v25 }
 0x896   :  { %v803_v22 = vpop.f32.mrf.mxu2  ;;  %v823_v30 = vpop.f32.mrf.mxu3 }
 0x897   :  { %v828_v26 = vrot.slane %v803_v22, 6  ;;  %v829_v55 = vrot.slane %v823_v30, 6 }
 0x899   :  { %v832_v27 = vadd.f32 %v828_v26, %v2763_v1  ;;  %v833_v47 = vadd.f32 %v829_v55, %v2767_v3  ;;  %v84_v55 = vld [vmem:[#allocation2 + $0x240] sm:$0xff] }
 0x89a   :  { %1136 = vmatpush.msrb.mxu0 %v84_v55  ;;  %2341 = vmatpush.msrb.mxu1 %v84_v55 }
 0x89b   :  { %v2284_v28 = vmul.f32 -1.442695, %v832_v27  ;;  %v2285_v62 = vmul.f32 -1.442695, %v833_v47 }
 0x89d   :  { %2413 = vpow2.f32 %v2284_v28 }
 0x8a3   :  { %v2414_v29 = vpop.eup %2413 }
 0x8a4   :  { %v840_v10 = vadd.f32 1.0, %v2414_v29 }
 0x8a6   :  { %2415 = vrcp.f32 %v840_v10  ;;  %v853_v51 = vand.u32 2147483648, %v840_v10  ;;  %v851_v53 = vand.u32 2147483647, %v840_v10  ;;  %vm847_vm4 = vweird.f32 %v840_v10 }
 0x8a7   :  { %2417 = vtanh.f32 %v833_v47  ;;  %v76_v47 = vld [vmem:[#allocation2 + $0x200] sm:$0xff] }
 0x8a8   :  { %v854_v56 = vor.u32 1.1754944e-38, %v853_v51  ;;  %vm852_vm6 = vcmp.eq.f32.partialorder %v851_v53, 8.507059e+37  ;;  %2419 = vpow2.f32 %v2285_v62 }
 0x8ac   :  { %v2416_v7 = vpop.eup %2415 }
 0x8ad   :  { %v843_v48 = vmul.f32 %v2416_v7, %v840_v10  ;;  %vm848_vm3 = vweird.f32 %v2416_v7  ;;  %v2418_v61 = vpop.eup %2417 }
 0x8ae   :  { %vm849_vm5 = vmor %vm847_vm4, %vm848_vm3  ;;  %v2420_v8 = vpop.eup %2419 }
 0x8af   :  { %v844_v49 = vsub.f32 1.0, %v843_v48  ;;  %v841_v9 = vadd.f32 1.0, %v2420_v8 }
 0x8b1   :  { %v845_v52 = vmul.f32 %v2416_v7, %v844_v49  ;;  %2421 = vrcp.f32 %v841_v9  ;;  %v868_v21 = vand.u32 2147483648, %v841_v9  ;;  %vm862_vm9 = vweird.f32 %v841_v9  ;;  %v72_v49 = vld [vmem:[#allocation2 + $0x1e0] sm:$0xff] }
 0x8b2   :  { %v866_v4 = vand.u32 2147483647, %v841_v9 }
 0x8b3   :  { %v846_v14 = vadd.f32 %v2416_v7, %v845_v52  ;;  %v869_v32 = vor.u32 1.1754944e-38, %v868_v21  ;;  %v82_v21 = vld [vmem:[#allocation2 + $0x230] sm:$0xff] }
 0x8b4   :  { %vm867_vm12 = vcmp.eq.f32.partialorder %v866_v4, 8.507059e+37  ;;  %v83_v4 = vld [vmem:[#allocation2 + $0x238] sm:$0xff] }
 0x8b5   :  { %v850_v60 = vsel %vm849_vm5, %v2416_v7, %v846_v14  ;;  %v80_v7 = vld [vmem:[#allocation2 + $0x220] sm:$0xff] }
 0x8b6   :  { %v855_v57 = vsel %vm852_vm6, %v854_v56, %v850_v60  ;;  %1137 = vmatpush.msrb.mxu0 %v80_v7  ;;  %2342 = vmatpush.msrb.mxu1 %v80_v7  ;;  %vm1119_vm6 = vcmask 261120  }
 0x8b7   :  { %v877_v63 = vmul.f32 %v2418_v61, %v855_v57  ;;  %v876_v5 = vmul.f32 %v874_v58, %v855_v57  ;;  %v2422_v11 = vpop.eup %2421 }
 0x8b8   :  { %v858_v13 = vmul.f32 %v2422_v11, %v841_v9  ;;  %vm863_vm8 = vweird.f32 %v2422_v11  ;;  %1138 = vmatpush.msrb.mxu0 %v76_v47  ;;  %2343 = vmatpush.msrb.mxu1 %v76_v47 }
 0x8b9   :  { %879 = vrot.lane.b32.xlu0 %v877_v63, %s2606_s0  ;;  %vm864_vm10 = vmor %vm862_vm9, %vm863_vm8 }
 0x8ba   :  { %v859_v16 = vsub.f32 1.0, %v858_v13  ;;  %1139 = vmatpush.msrb.mxu0 %v72_v49  ;;  %2344 = vmatpush.msrb.mxu1 %v72_v49 }
 0x8bc   :  { %v860_v17 = vmul.f32 %v2422_v11, %v859_v16 }
 0x8be   :  { %v861_v20 = vadd.f32 %v2422_v11, %v860_v17 }
 0x8c0   :  { %v865_v31 = vsel %vm864_vm10, %v2422_v11, %v861_v20  ;;  %v87_v20 = vld [vmem:[#allocation2 + $0x258] sm:$0xff] }
 0x8c1   :  { %v870_v34 = vsel %vm867_vm12, %v869_v32, %v865_v31  ;;  %1205 = vmatpush.msrb.mxu3 %v87_v20  ;;  %v78_v31 = vld [vmem:[#allocation2 + $0x210] sm:$0xff]  ;;  %v79_v32 = vld [vmem:[#allocation2 + $0x218] sm:$0xff] }
 0x8c2   :  { %v99_v20 = vld [vmem:[#allocation2 + $0x2b8] sm:$0xff] }
 0x8c3   :  { %1206 = vmatpush.msrb.mxu3 %v83_v4  ;;  %v95_v4 = vld [vmem:[#allocation2 + $0x298] sm:$0xff] }
 0x8c5   :  { %1207 = vmatpush.msrb.mxu3 %v79_v32  ;;  %v73_v32 = vld [vmem:[#allocation2 + $0x1e8] sm:$0xff] }
 0x92b   :  { %v880_v18 = vpop.permute.xlu0 %879 }
 0x92c   :  { %v882_v19 = vadd.f32 %v880_v18, %v876_v5 }
 0x92e   :  { %2423 = vtanh.f32 %v882_v19  ;;  %v979_v26 = vrot.slane %v882_v19, 6  ;;  %v86_v19 = vld [vmem:[#allocation2 + $0x250] sm:$0xff] }
 0x92f   :  { %1182 = vmatpush.msrb.mxu2 %v86_v19  ;;  %v94_v19 = vld [vmem:[#allocation2 + $0x290] sm:$0xff] }
 0x931   :  { %1183 = vmatpush.msrb.mxu2 %v82_v21  ;;  %v77_v21 = vld [vmem:[#allocation2 + $0x208] sm:$0xff] }
 0x933   :  { %1184 = vmatpush.msrb.mxu2 %v78_v31  ;;  %v2951_v31 = vld [vmem:[#allocation2 + $0x3a0] sm:$0xff] }
 0x934   :  { %v2424_v33 = vpop.eup %2423 }
 0x935   :  { %v2901_v35 = vmul.f32 %v2424_v33, %v870_v34  ;;  %v74_v33 = vld [vmem:[#allocation2 + $0x1f0] sm:$0xff] }
 0x936   :  { %1185 = vmatpush.msrb.mxu2 %v74_v33 }
 0x937   :  { %v886_v36 = vrot.slane %v2901_v35, 2  ;;  %v1101_v16 = vsel %vm1095_vm13, %v2892_v24, %v2901_v35  ;;  %v75_v24 = vld [vmem:[#allocation2 + $0x1f8] sm:$0xff] }
 0x938   :  { %1208 = vmatpush.msrb.mxu3 %v75_v24  ;;  %v90_v24 = vld [vmem:[#allocation2 + $0x270] sm:$0xff] }
 0x939   :  { %887 = vrot.lane.b32.xlu1 %v886_v36, %s2606_s0 }
 0x9ab   :  { %v888_v37 = vpop.permute.xlu1 %887 }
 0x9ac   :  { %2286 = vmatmul.msk.f32.vlgmr.msra.gmra.mxu0 %vm254_vm11, %v888_v37  ;;  %2287 = vmatmul.msk.f32.vlgmr.msra.gmra.mxu1 %vm254_vm11, %v888_v37 }
 0xa29   :  { %v908_v38 = vpop.f32.mrf.mxu0  ;;  %v928_v44 = vpop.f32.mrf.mxu1 }
 0xa2a   :  { %v933_v39 = vrot.slane %v908_v38, 4  ;;  %v934_v45 = vrot.slane %v928_v44, 4 }
 0xa2c   :  { %v937_v40 = vadd.f32 %v933_v39, %v2761_v0  ;;  %v938_v6 = vadd.f32 %v934_v45, %v2765_v2 }
 0xa2e   :  { %v2288_v41 = vmul.f32 -1.442695, %v937_v40  ;;  %v2289_v2 = vmul.f32 -1.442695, %v938_v6 }
 0xa30   :  { %2425 = vpow2.f32 %v2288_v41 }
 0xa36   :  { %v2426_v42 = vpop.eup %2425 }
 0xa37   :  { %v945_v43 = vadd.f32 1.0, %v2426_v42 }
 0xa39   :  { %2427 = vrcp.f32 %v945_v43  ;;  %v958_v23 = vand.u32 2147483648, %v945_v43  ;;  %v956_v25 = vand.u32 2147483647, %v945_v43  ;;  %vm952_vm0 = vweird.f32 %v945_v43 }
 0xa3a   :  { %2429 = vtanh.f32 %v938_v6 }
 0xa3b   :  { %v959_v0 = vor.u32 1.1754944e-38, %v958_v23  ;;  %vm957_vm2 = vcmp.eq.f32.partialorder %v956_v25, 8.507059e+37  ;;  %2431 = vpow2.f32 %v2289_v2  ;;  %v88_v2 = vld [vmem:[#allocation2 + $0x260] sm:$0xff] }
 0xa3f   :  { %v2428_v46 = vpop.eup %2427 }
 0xa40   :  { %v948_v12 = vmul.f32 %v2428_v46, %v945_v43  ;;  %vm953_vm15 = vweird.f32 %v2428_v46  ;;  %v2430_v28 = vpop.eup %2429 }
 0xa41   :  { %vm954_vm1 = vmor %vm952_vm0, %vm953_vm15  ;;  %v2432_v48 = vpop.eup %2431 }
 0xa42   :  { %v949_v15 = vsub.f32 1.0, %v948_v12  ;;  %v946_v51 = vadd.f32 1.0, %v2432_v48 }
 0xa44   :  { %v950_v54 = vmul.f32 %v2428_v46, %v949_v15  ;;  %2433 = vrcp.f32 %v946_v51  ;;  %v973_v57 = vand.u32 2147483648, %v946_v51  ;;  %vm967_vm4 = vweird.f32 %v946_v51 }
 0xa45   :  { %v971_v63 = vand.u32 2147483647, %v946_v51 }
 0xa46   :  { %v951_v22 = vadd.f32 %v2428_v46, %v950_v54  ;;  %v974_v62 = vor.u32 1.1754944e-38, %v973_v57 }
 0xa47   :  { %vm972_vm8 = vcmp.eq.f32.partialorder %v971_v63, 8.507059e+37 }
 0xa48   :  { %v955_v27 = vsel %vm954_vm1, %v2428_v46, %v951_v22 }
 0xa49   :  { %v960_v29 = vsel %vm957_vm2, %v959_v0, %v955_v27 }
 0xa4a   :  { %v982_v10 = vmul.f32 %v2430_v28, %v960_v29  ;;  %v981_v30 = vmul.f32 %v979_v26, %v960_v29  ;;  %v2434_v52 = vpop.eup %2433  ;;  %v100_v28 = vld [vmem:[#allocation2 + $0x2c0] sm:$0xff] }
 0xa4b   :  { %v963_v53 = vmul.f32 %v2434_v52, %v946_v51  ;;  %vm968_vm3 = vweird.f32 %v2434_v52  ;;  %1236 = vmatpush.msra.mxu0 %v100_v28  ;;  %v96_v29 = vld [vmem:[#allocation2 + $0x2a0] sm:$0xff] }
 0xa4c   :  { %984 = vrot.lane.b32.xlu2 %v982_v10, %s2606_s0  ;;  %vm969_vm5 = vmor %vm967_vm4, %vm968_vm3  ;;  %v92_v10 = vld [vmem:[#allocation2 + $0x280] sm:$0xff] }
 0xa4d   :  { %v964_v14 = vsub.f32 1.0, %v963_v53  ;;  %1237 = vmatpush.msra.mxu0 %v96_v29 }
 0xa4f   :  { %v965_v56 = vmul.f32 %v2434_v52, %v964_v14  ;;  %1238 = vmatpush.msra.mxu0 %v92_v10 }
 0xa51   :  { %v966_v61 = vadd.f32 %v2434_v52, %v965_v56  ;;  %1239 = vmatpush.msra.mxu0 %v88_v2 }
 0xa53   :  { %v970_v5 = vsel %vm969_vm5, %v2434_v52, %v966_v61 }
 0xa54   :  { %1115 = vrot.lane.b32.xlu2 %v2884_v59, %s2606_s0  ;;  %v975_v11 = vsel %vm972_vm8, %v974_v62, %v970_v5  ;;  %v102_v62 = vld [vmem:[#allocation2 + $0x2d0] sm:$0xff] }
 0xaa6   :  { %v985_v58 = vpop.permute.xlu2 %984 }
 0xaa7   :  { %v2912_v60 = vadd.f32 %v985_v58, %v981_v30 }
 0xaa9   :  { %2435 = vtanh.f32 %v2912_v60  ;;  %v1084_v54 = vrot.slane %v2912_v60, 6 }
 0xaae   :  { %v2915_v8 = vpop.permute.xlu2 %1115 }
 0xaaf   :  { %v2436_v9 = vpop.eup %2435  ;;  %2294 = vmatmul.msk.f32.vlgmr.msrb.gmra.mxu0 %vm1119_vm6, %v2915_v8 }
 0xab0   :  { %v989_v13 = vmul.f32 %v2436_v9, %v975_v11  ;;  %v98_v9 = vld [vmem:[#allocation2 + $0x2b0] sm:$0xff]  ;;  %v85_v11 = vld [vmem:[#allocation2 + $0x248] sm:$0xff] }
 0xab1   :  { %1159 = vmatpush.msra.mxu1 %v85_v11 }
 0xab2   :  { %v991_v17 = vrot.slane %v989_v13, 4  ;;  %v2923_v18 = vsel %vm1097_vm14, %v1101_v16, %v989_v13  ;;  %v103_v13 = vld [vmem:[#allocation2 + $0x2d8] sm:$0xff]  ;;  %v2946_v16 = vld [vmem:[#allocation2 + $0x3e0] sm:$0xff] }
 0xab3   :  { %1342 = vmatpush.msrb.mxu0 %v2946_v16 }
 0xab4   :  { %992 = vrot.lane.b32.xlu0 %v991_v17, %s2606_s0  ;;  %v81_v17 = vld [vmem:[#allocation2 + $0x228] sm:$0xff] }
 0xab5   :  { %1160 = vmatpush.msra.mxu1 %v81_v17 }
 0xab7   :  { %1161 = vmatpush.msra.mxu1 %v77_v21 }
 0xab9   :  { %1162 = vmatpush.msra.mxu1 %v73_v32 }
 0xb26   :  { %v993_v34 = vpop.permute.xlu0 %992 }
 0xb27   :  { %2290 = vmatmul.msk.f32.vlgmr.msra.gmra.mxu2 %vm254_vm11, %v993_v34  ;;  %2291 = vmatmul.msk.f32.vlgmr.msra.gmra.mxu3 %vm254_vm11, %v993_v34  ;;  %v91_v34 = vld [vmem:[#allocation2 + $0x278] sm:$0xff] }
 0xb28   :  { %1282 = vmatpush.msra.mxu2 %v102_v62  ;;  %1305 = vmatpush.msra.mxu3 %v103_v13 }
 0xb2a   :  { %1283 = vmatpush.msra.mxu2 %v98_v9  ;;  %1306 = vmatpush.msra.mxu3 %v99_v20 }
 0xb2c   :  { %1284 = vmatpush.msra.mxu2 %v94_v19  ;;  %1307 = vmatpush.msra.mxu3 %v95_v4 }
 0xb2e   :  { %1285 = vmatpush.msra.mxu2 %v90_v24  ;;  %1308 = vmatpush.msra.mxu3 %v91_v34 }
 0xb2f   :  { %2298 = vmatmul.msk.f32.vlgmr.msrb.gmra.mxu2 %vm1119_vm6, %v2915_v8  ;;  %2300 = vmatmul.msk.f32.vlgmr.msrb.gmra.mxu3 %vm1119_vm6, %v2915_v8 }
 0xb30   :  { %1451 = vmatpush.msrb.mxu2 %v2946_v16 }
 0xbaa   :  { %v1013_v35 = vpop.f32.mrf.mxu2  ;;  %v1033_v41 = vpop.f32.mrf.mxu3 }
 0xbab   :  { %v1038_v36 = vrot.slane %v1013_v35, 2  ;;  %v1039_v42 = vrot.slane %v1033_v41, 2  ;;  %v2957_v35 = vld [vmem:[#allocation2 + $0x380] sm:$0xff]  ;;  %v2990_v41 = vld [vmem:[#allocation2 + $0x3c8] sm:$0xff] }
 0xbad   :  { %v1042_v37 = vadd.f32 %v1038_v36, %v2763_v1  ;;  %v1043_v44 = vadd.f32 %v1039_v42, %v2767_v3  ;;  %v2962_v36 = vld [vmem:[#allocation2 + $0x360] sm:$0xff]  ;;  %v2994_v42 = vld [vmem:[#allocation2 + $0x3a8] sm:$0xff] }
 0xbaf   :  { %v2292_v38 = vmul.f32 -1.442695, %v1042_v37  ;;  %v2293_v3 = vmul.f32 -1.442695, %v1043_v44  ;;  %v2964_v37 = vld [vmem:[#allocation2 + $0x340] sm:$0xff] }
 0xbb1   :  { %2437 = vpow2.f32 %v2292_v38  ;;  %v2968_v38 = vld [vmem:[#allocation2 + $0x320] sm:$0xff] }
 0xbb2   :  { %v1187_v29 = vpop.f32.mrf.mxu2  ;;  %v1210_v20 = vpop.f32.mrf.mxu3 }
 0xbb7   :  { %v2438_v39 = vpop.eup %2437 }
 0xbb8   :  { %v1050_v40 = vadd.f32 1.0, %v2438_v39  ;;  %v2972_v39 = vld [vmem:[#allocation2 + $0x300] sm:$0xff] }
 0xbba   :  { %2439 = vrcp.f32 %v1050_v40  ;;  %v1063_v6 = vand.u32 2147483648, %v1050_v40  ;;  %v1061_v15 = vand.u32 2147483647, %v1050_v40  ;;  %vm1057_vm14 = vweird.f32 %v1050_v40 }
 0xbbb   :  { %2441 = vtanh.f32 %v1043_v44  ;;  %v2998_v44 = vld [vmem:[#allocation2 + $0x388] sm:$0xff] }
 0xbbc   :  { %v1064_v1 = vor.u32 1.1754944e-38, %v1063_v6  ;;  %vm1062_vm10 = vcmp.eq.f32.partialorder %v1061_v15, 8.507059e+37  ;;  %2443 = vpow2.f32 %v2293_v3  ;;  %v3005_v6 = vld [vmem:[#allocation2 + $0x368] sm:$0xff] }
 0xbbd   :  { %v3009_v15 = vld [vmem:[#allocation2 + $0x348] sm:$0xff] }
 0xbc0   :  { %v2440_v43 = vpop.eup %2439 }
 0xbc1   :  { %v1053_v45 = vmul.f32 %v2440_v43, %v1050_v40  ;;  %vm1058_vm13 = vweird.f32 %v2440_v43  ;;  %v2442_v22 = vpop.eup %2441  ;;  %v2985_v40 = vld [vmem:[#allocation2 + $0x3e8] sm:$0xff] }
 0xbc2   :  { %vm1059_vm9 = vmor %vm1057_vm14, %vm1058_vm13  ;;  %v2444_v30 = vpop.eup %2443  ;;  %1471 = vmatpush.msrb.mxu3 %v2985_v40 }
 0xbc3   :  { %v1054_v46 = vsub.f32 1.0, %v1053_v45  ;;  %v1051_v55 = vadd.f32 1.0, %v2444_v30 }
 0xbc4   :  { %1472 = vmatpush.msrb.mxu3 %v2990_v41 }
 0xbc5   :  { %v1055_v12 = vmul.f32 %v2440_v43, %v1054_v46  ;;  %2445 = vrcp.f32 %v1051_v55  ;;  %v1078_v53 = vand.u32 2147483648, %v1051_v55  ;;  %vm1072_vm15 = vweird.f32 %v1051_v55  ;;  %v97_v46 = vld [vmem:[#allocation2 + $0x2a8] sm:$0xff] }
 0xbc6   :  { %v1076_v14 = vand.u32 2147483647, %v1051_v55  ;;  %1473 = vmatpush.msrb.mxu3 %v2994_v42 }
 0xbc7   :  { %v1056_v23 = vadd.f32 %v2440_v43, %v1055_v12  ;;  %v1079_v58 = vor.u32 1.1754944e-38, %v1078_v53  ;;  %v93_v12 = vld [vmem:[#allocation2 + $0x288] sm:$0xff] }
 0xbc8   :  { %vm1077_vm1 = vcmp.eq.f32.partialorder %v1076_v14, 8.507059e+37  ;;  %1474 = vmatpush.msrb.mxu3 %v2998_v44 }
 0xbc9   :  { %v1060_v25 = vsel %vm1059_vm9, %v2440_v43, %v1056_v23  ;;  %v101_v43 = vld [vmem:[#allocation2 + $0x2c8] sm:$0xff] }
 0xbca   :  { %v1065_v0 = vsel %vm1062_vm10, %v1064_v1, %v1060_v25  ;;  %1475 = vmatpush.msrb.mxu3 %v3005_v6  ;;  %v89_v23 = vld [vmem:[#allocation2 + $0x268] sm:$0xff] }
 0xbcb   :  { %v1087_v26 = vmul.f32 %v2442_v22, %v1065_v0  ;;  %v1086_v27 = vmul.f32 %v1084_v54, %v1065_v0  ;;  %v2446_v7 = vpop.eup %2445  ;;  %v3013_v1 = vld [vmem:[#allocation2 + $0x328] sm:$0xff] }
 0xbcc   :  { %v1068_v47 = vmul.f32 %v2446_v7, %v1051_v55  ;;  %vm1073_vm12 = vweird.f32 %v2446_v7  ;;  %1476 = vmatpush.msrb.mxu3 %v3009_v15  ;;  %v3025_v54 = vld [vmem:[#allocation2 + $0x308] sm:$0xff] }
 0xbcd   :  { %1089 = vrot.lane.b32.xlu1 %v1087_v26, %s2606_s0  ;;  %vm1074_vm0 = vmor %vm1072_vm15, %vm1073_vm12 }
 0xbce   :  { %v1069_v48 = vsub.f32 1.0, %v1068_v47  ;;  %1477 = vmatpush.msrb.mxu3 %v3013_v1 }
 0xbd0   :  { %v1070_v49 = vmul.f32 %v2446_v7, %v1069_v48  ;;  %1478 = vmatpush.msrb.mxu3 %v3025_v54 }
 0xbd5   :  { %1216 = vrot.lane.b32.xlu1 %v2884_v59, %s2603_s15  ;;  %v1071_v59 = vadd.f32 %v2446_v7, %v1070_v49 }
 0xbd7   :  { %v1075_v56 = vsel %vm1074_vm0, %v2446_v7, %v1071_v59 }
 0xbd8   :  { %v1080_v57 = vsel %vm1077_vm1, %v1079_v58, %v1075_v56 }
 0xc3f   :  { %v1090_v51 = vpop.permute.xlu1 %1089 }
 0xc40   :  { %v1092_v52 = vadd.f32 %v1090_v51, %v1086_v27 }
 0xc42   :  { %2447 = vtanh.f32 %v1092_v52 }
 0xc47   :  { %v2938_v60 = vpop.permute.xlu1 %1216 }
 0xc48   :  { %v2448_v61 = vpop.eup %2447  ;;  %2302 = vmatmul.msk.f32.vlgmr.msra.gmra.mxu0 %vm1119_vm6, %v2938_v60 }
 0xc49   :  { %v1094_v63 = vmul.f32 %v2448_v61, %v1080_v57 }
 0xc4b   :  { %v1103_v5 = vsel %vm1099_vm7, %v2923_v18, %v1094_v63  ;;  %v2949_v18 = vld [vmem:[#allocation2 + $0x3c0] sm:$0xff] }
 0xc4c   :  { %1218 = vrot.lane.b32.xlu2 %v1103_v5, %s2603_s15  ;;  %1117 = vrot.lane.b32.xlu0 %v1103_v5, %s2606_s0 }
 0xc4d   :  { %1343 = vmatpush.msrb.mxu0 %v2949_v18  ;;  %1452 = vmatpush.msrb.mxu2 %v2949_v18 }
 0xc4f   :  { %1344 = vmatpush.msrb.mxu0 %v2951_v31  ;;  %1453 = vmatpush.msrb.mxu2 %v2951_v31 }
 0xc51   :  { %1345 = vmatpush.msrb.mxu0 %v2957_v35  ;;  %1454 = vmatpush.msrb.mxu2 %v2957_v35 }
 0xc53   :  { %1346 = vmatpush.msrb.mxu0 %v2962_v36  ;;  %1455 = vmatpush.msrb.mxu2 %v2962_v36 }
 0xc55   :  { %1347 = vmatpush.msrb.mxu0 %v2964_v37  ;;  %1456 = vmatpush.msrb.mxu2 %v2964_v37 }
 0xc57   :  { %1348 = vmatpush.msrb.mxu0 %v2968_v38  ;;  %1457 = vmatpush.msrb.mxu2 %v2968_v38 }
 0xc59   :  { %1349 = vmatpush.msrb.mxu0 %v2972_v39  ;;  %1458 = vmatpush.msrb.mxu2 %v2972_v39 }
 0xc5b   :  { %1556 = vmatpush.msra.mxu0 %v2946_v16 }
 0xc5d   :  { %1557 = vmatpush.msra.mxu0 %v2949_v18 }
 0xc5f   :  { %1558 = vmatpush.msra.mxu0 %v2951_v31 }
 0xc61   :  { %1559 = vmatpush.msra.mxu0 %v2957_v35 }
 0xc63   :  { %1560 = vmatpush.msra.mxu0 %v2962_v36 }
 0xc65   :  { %1561 = vmatpush.msra.mxu0 %v2964_v37 }
 0xc67   :  { %1562 = vmatpush.msra.mxu0 %v2968_v38 }
 0xc69   :  { %1563 = vmatpush.msra.mxu0 %v2972_v39 }
 0xca6   :  { %v2955_v33 = vpop.permute.xlu2 %1218 }
 0xca7   :  { %2303 = vmatmul.msk.f32.gmra.mxu0 %vm1119_vm6, %v2955_v33 }
 0xcaf   :  { %1350 = vmatmul.f32.vlgmr.msrb.gmra.mxu0 %v2605_v50 }
 0xcb0   :  { %1784 = vmatpush.msrb.mxu0 %v2946_v16 }
 0xcb2   :  { %1785 = vmatpush.msrb.mxu0 %v2949_v18 }
 0xcb4   :  { %1786 = vmatpush.msrb.mxu0 %v2951_v31 }
 0xcb6   :  { %1787 = vmatpush.msrb.mxu0 %v2957_v35 }
 0xcb8   :  { %1788 = vmatpush.msrb.mxu0 %v2962_v36 }
 0xcba   :  { %1789 = vmatpush.msrb.mxu0 %v2964_v37 }
 0xcbc   :  { %1790 = vmatpush.msrb.mxu0 %v2968_v38 }
 0xcbe   :  { %v1118_v45 = vpop.permute.xlu0 %1117  ;;  %1791 = vmatpush.msrb.mxu0 %v2972_v39 }
 0xcbf   :  { %2295 = vmatmul.msk.f32.vlgmr.msrb.gmra.mxu1 %vm1119_vm6, %v1118_v45  ;;  %2299 = vmatmul.msk.f32.gmra.mxu2 %vm1119_vm6, %v1118_v45 }
 0xcc0   :  { %2301 = vmatmul.msk.f32.gmra.mxu3 %vm1119_vm6, %v1118_v45  ;;  %1259 = vmatpush.msrb.mxu1 %v101_v43 }
 0xcc2   :  { %1260 = vmatpush.msrb.mxu1 %v97_v46 }
 0xcc4   :  { %1261 = vmatpush.msrb.mxu1 %v93_v12 }
 0xcc6   :  { %1262 = vmatpush.msrb.mxu1 %v89_v23 }
 0xcc7   :  { %2296 = vmatmul.msk.f32.vlgmr.msra.gmra.mxu1 %vm1119_vm6, %v2915_v8  ;;  %2306 = vmatmul.msk.f32.vlgmr.msra.gmra.mxu2 %vm1119_vm6, %v2938_v60  ;;  %v1141_v8 = vpop.f32.mrf.mxu0 }
 0xcc8   :  { %2308 = vmatmul.msk.f32.vlgmr.msra.gmra.mxu3 %vm1119_vm6, %v2938_v60  ;;  %1362 = vmatpush.msra.mxu1 %v2985_v40 }
 0xcc9   :  { %1661 = vmatpush.msra.mxu2 %v2946_v16  ;;  %1681 = vmatpush.msra.mxu3 %v2985_v40 }
 0xcca   :  { %1363 = vmatpush.msra.mxu1 %v2990_v41 }
 0xccb   :  { %1662 = vmatpush.msra.mxu2 %v2949_v18  ;;  %1682 = vmatpush.msra.mxu3 %v2990_v41 }
 0xccc   :  { %1364 = vmatpush.msra.mxu1 %v2994_v42 }
 0xccd   :  { %1663 = vmatpush.msra.mxu2 %v2951_v31  ;;  %1683 = vmatpush.msra.mxu3 %v2994_v42 }
 0xcce   :  { %1365 = vmatpush.msra.mxu1 %v2998_v44 }
 0xccf   :  { %2297 = vmatmul.msk.f32.gmra.mxu1 %vm1119_vm6, %v1118_v45  ;;  %2307 = vmatmul.msk.f32.gmra.mxu2 %vm1119_vm6, %v2955_v33  ;;  %v3082_v25 = vpop.f32.mrf.mxu0 }
 0xcd0   :  { %2309 = vmatmul.msk.f32.gmra.mxu3 %vm1119_vm6, %v2955_v33  ;;  %1366 = vmatpush.msra.mxu1 %v3005_v6  ;;  %v1869_v2 = vrot.slane %v3082_v25, 2 }
 0xcd1   :  { %1664 = vmatpush.msra.mxu2 %v2957_v35  ;;  %1684 = vmatpush.msra.mxu3 %v2998_v44 }
 0xcd2   :  { %1367 = vmatpush.msra.mxu1 %v3009_v15 }
 0xcd3   :  { %1665 = vmatpush.msra.mxu2 %v2962_v36  ;;  %1685 = vmatpush.msra.mxu3 %v3005_v6 }
 0xcd4   :  { %1368 = vmatpush.msra.mxu1 %v3013_v1 }
 0xcd5   :  { %1666 = vmatpush.msra.mxu2 %v2964_v37  ;;  %1686 = vmatpush.msra.mxu3 %v3009_v15 }
 0xcd6   :  { %1369 = vmatpush.msra.mxu1 %v3025_v54 }
 0xcd7   :  { %2304 = vmatmul.msk.f32.vlgmr.msrb.gmra.mxu1 %vm1119_vm6, %v2938_v60  ;;  %1667 = vmatpush.msra.mxu2 %v2968_v38 }
 0xcd8   :  { %1576 = vmatpush.msrb.mxu1 %v2985_v40  ;;  %1687 = vmatpush.msra.mxu3 %v3013_v1 }
 0xcd9   :  { %1668 = vmatpush.msra.mxu2 %v2972_v39 }
 0xcda   :  { %1577 = vmatpush.msrb.mxu1 %v2990_v41  ;;  %1688 = vmatpush.msra.mxu3 %v3025_v54 }
 0xcdc   :  { %1578 = vmatpush.msrb.mxu1 %v2994_v42 }
 0xcde   :  { %1579 = vmatpush.msrb.mxu1 %v2998_v44 }
 0xcdf   :  { %2305 = vmatmul.msk.f32.gmra.mxu1 %vm1119_vm6, %v2955_v33 }
 0xce0   :  { %1580 = vmatpush.msrb.mxu1 %v3005_v6 }
 0xce2   :  { %1581 = vmatpush.msrb.mxu1 %v3009_v15 }
 0xce4   :  { %1582 = vmatpush.msrb.mxu1 %v3013_v1 }
 0xce6   :  { %1583 = vmatpush.msrb.mxu1 %v3025_v54 }
 0xce7   :  { %1370 = vmatmul.f32.vlgmr.msra.gmra.mxu1 %v2605_v50  ;;  %v105_v50 = vld [vmem:[#allocation2 + $0x2e0] ss:$8 sm:$0xf] }
 0xce8   :  { %1804 = vmatpush.msra.mxu1 %v2985_v40  ;;  %v1105_v22 = vperm.slane %v105_v50, 0  ;;  %v1107_v28 = vperm.slane %v105_v50, 2  ;;  %v1106_v63 = vperm.slane %v105_v50, 1  ;;  %v1108_v17 = vperm.slane %v105_v50, 3 }
 0xcea   :  { %1805 = vmatpush.msra.mxu1 %v2990_v41  ;;  %v1142_v26 = vadd.f32 %v1141_v8, %v1105_v22  ;;  %v3084_v10 = vadd.f32 %v1187_v29, %v1107_v28  ;;  %v3098_v21 = vadd.f32 %v1210_v20, %v1108_v17 }
 0xcec   :  { %1806 = vmatpush.msra.mxu1 %v2994_v42  ;;  %v1875_v7 = vrot.slane %v3084_v10, 2  ;;  %v1876_v34 = vrot.slane %v3098_v21, 2 }
 0xcee   :  { %1807 = vmatpush.msra.mxu1 %v2998_v44 }
 0xcf0   :  { %1808 = vmatpush.msra.mxu1 %v3005_v6 }
 0xcf2   :  { %1809 = vmatpush.msra.mxu1 %v3009_v15 }
 0xcf4   :  { %1810 = vmatpush.msra.mxu1 %v3013_v1 }
 0xcf6   :  { %1811 = vmatpush.msra.mxu1 %v3025_v54 }
 0xd24   :  { %v1244_v0 = vpop.f32.mrf.mxu0 }
 0xd25   :  { %v1424_v27 = vrot.slane %v1244_v0, 2  ;;  %v1318_v51 = vrot.slane %v1244_v0, 6 }
 0xd27   :  { %v1428_v3 = vadd.f32 %v1424_v27, %v1142_v26  ;;  %v1322_v56 = vadd.f32 %v1318_v51, %v1142_v26 }
 0xd2c   :  { %v1351_v57 = vpop.f32.mrf.mxu0 }
 0xd3c   :  { %v1144_v30 = vpop.f32.mrf.mxu1 }
 0xd3d   :  { %v3087_v55 = vadd.f32 %v1144_v30, %v1105_v22 }
 0xd3f   :  { %v1873_v47 = vadd.f32 %v1869_v2, %v3087_v55 }
 0xd41   :  { %v3091_v48 = vadd.f32 %v1875_v7, %v1873_v47 }
 0xd42   :  { %v1190_v49 = vpop.f32.mrf.mxu2 }
 0xd43   :  { %v1191_v52 = vadd.f32 %v1190_v49, %v1107_v28  ;;  %v1213_v46 = vpop.f32.mrf.mxu3 }
 0xd44   :  { %v1164_v59 = vpop.f32.mrf.mxu1  ;;  %v1214_v8 = vadd.f32 %v1213_v46, %v1108_v17 }
 0xd45   :  { %v1326_v53 = vrot.slane %v1191_v52, 6  ;;  %v1430_v14 = vrot.slane %v1191_v52, 2  ;;  %v1165_v22 = vadd.f32 %v1164_v59, %v1106_v63 }
 0xd46   :  { %v1327_v27 = vrot.slane %v1214_v8, 6 }
 0xd47   :  { %v1434_v58 = vadd.f32 %v1430_v14, %v1428_v3  ;;  %v1330_v60 = vadd.f32 %v1326_v53, %v1322_v56  ;;  %v1431_v3 = vrot.slane %v1214_v8, 2 }
 0xd4a   :  { %v1287_v61 = vpop.f32.mrf.mxu2 }
 0xd4b   :  { %v3093_v5 = vadd.f32 %v1330_v60, %v1287_v61  ;;  %v3095_v62 = vadd.f32 %v1434_v58, %v1287_v61  ;;  %v1310_v49 = vpop.f32.mrf.mxu3 }
 0xd4c   :  { %v1167_v9 = vpop.f32.mrf.mxu1 }
 0xd4d   :  { %v1168_v11 = vadd.f32 %v1167_v9, %v1106_v63  ;;  %v1374_v13 = vadd.f32 %v1351_v57, %v3093_v5 }
 0xd4f   :  { %v2310_v19 = vmul.f32 -1.442695, %v1374_v13 }
 0xd51   :  { %2449 = vpow2.f32 %v2310_v19 }
 0xd54   :  { %v1264_v4 = vpop.f32.mrf.mxu1 }
 0xd55   :  { %v1755_v32 = vrot.slane %v1264_v4, 6  ;;  %v1870_v33 = vrot.slane %v1264_v4, 2 }
 0xd57   :  { %v2450_v24 = vpop.eup %2449  ;;  %v3101_v43 = vadd.f32 %v1755_v32, %v1168_v11  ;;  %v1874_v45 = vadd.f32 %v1870_v33, %v1168_v11 }
 0xd58   :  { %v1382_v12 = vadd.f32 1.0, %v2450_v24 }
 0xd59   :  { %v3103_v23 = vadd.f32 %v1876_v34, %v1874_v45 }
 0xd5a   :  { %2451 = vrcp.f32 %v1382_v12  ;;  %v1395_v60 = vand.u32 2147483648, %v1382_v12  ;;  %vm1389_vm2 = vweird.f32 %v1382_v12  ;;  %v1393_v61 = vand.u32 2147483647, %v1382_v12 }
 0xd5c   :  { %v1267_v50 = vpop.f32.mrf.mxu1  ;;  %v1396_v63 = vor.u32 1.1754944e-38, %v1395_v60  ;;  %vm1394_vm4 = vcmp.eq.f32.partialorder %v1393_v61, 8.507059e+37 }
 0xd5d   :  { %v1319_v0 = vrot.slane %v1267_v50, 6  ;;  %v1425_v26 = vrot.slane %v1267_v50, 2 }
 0xd5f   :  { %v1323_v28 = vadd.f32 %v1319_v0, %v1165_v22  ;;  %v1429_v29 = vadd.f32 %v1425_v26, %v1165_v22 }
 0xd60   :  { %v2452_v30 = vpop.eup %2451 }
 0xd61   :  { %v1385_v2 = vmul.f32 %v2452_v30, %v1382_v12  ;;  %v1435_v7 = vadd.f32 %v1431_v3, %v1429_v29  ;;  %v1331_v47 = vadd.f32 %v1327_v27, %v1323_v28  ;;  %vm1390_vm7 = vweird.f32 %v2452_v30  ;;  %v3133_v29 = vpop.f32.mrf.mxu2 }
 0xd62   :  { %vm1391_vm3 = vmor %vm1389_vm2, %vm1390_vm7 }
 0xd63   :  { %v3105_v51 = vadd.f32 %v1331_v47, %v1310_v49  ;;  %v1386_v52 = vsub.f32 1.0, %v1385_v2  ;;  %v3107_v53 = vadd.f32 %v1435_v7, %v1310_v49  ;;  %v3136_v49 = vpop.f32.mrf.mxu3 }
 0xd64   :  { %v1371_v14 = vpop.f32.mrf.mxu1 }
 0xd65   :  { %v1375_v56 = vadd.f32 %v1371_v14, %v3105_v51  ;;  %v1387_v59 = vmul.f32 %v2452_v30, %v1386_v52 }
 0xd67   :  { %2453 = vtanh.f32 %v1375_v56  ;;  %v1388_v58 = vadd.f32 %v2452_v30, %v1387_v59  ;;  %v2311_v17 = vmul.f32 -1.442695, %v1375_v56 }
 0xd69   :  { %v1392_v57 = vsel %vm1391_vm3, %v2452_v30, %v1388_v58  ;;  %2455 = vpow2.f32 %v2311_v17 }
 0xd6a   :  { %v1397_v11 = vsel %vm1394_vm4, %v1396_v63, %v1392_v57 }
 0xd6b   :  { %v1415_v34 = vmul.f32 0.0, %v1397_v11 }
 0xd6d   :  { %v2454_v9 = vpop.eup %2453 }
 0xd6e   :  { %v1416_v13 = vmul.f32 %v2454_v9, %v1397_v11 }
 0xd6f   :  { %v2456_v19 = vpop.eup %2455 }
 0xd70   :  { %1418 = vrot.lane.b32.xlu0 %v1416_v13, %s2606_s0  ;;  %v1383_v20 = vadd.f32 1.0, %v2456_v19 }
 0xd72   :  { %2457 = vrcp.f32 %v1383_v20  ;;  %v1410_v8 = vand.u32 2147483648, %v1383_v20  ;;  %vm1404_vm6 = vweird.f32 %v1383_v20  ;;  %v1408_v50 = vand.u32 2147483647, %v1383_v20 }
 0xd74   :  { %v1411_v0 = vor.u32 1.1754944e-38, %v1410_v8  ;;  %vm1409_vm13 = vcmp.eq.f32.partialorder %v1408_v50, 8.507059e+37 }
 0xd78   :  { %v2458_v4 = vpop.eup %2457 }
 0xd79   :  { %v1400_v32 = vmul.f32 %v2458_v4, %v1383_v20  ;;  %vm1405_vm5 = vweird.f32 %v2458_v4 }
 0xd7a   :  { %vm1406_vm8 = vmor %vm1404_vm6, %vm1405_vm5 }
 0xd7b   :  { %v1401_v33 = vsub.f32 1.0, %v1400_v32 }
 0xd7d   :  { %v1402_v24 = vmul.f32 %v2458_v4, %v1401_v33 }
 0xd7f   :  { %v1403_v12 = vadd.f32 %v2458_v4, %v1402_v24 }
 0xd81   :  { %v1407_v22 = vsel %vm1406_vm8, %v2458_v4, %v1403_v12 }
 0xd82   :  { %v1412_v27 = vsel %vm1409_vm13, %v1411_v0, %v1407_v22 }
 0xde2   :  { %v1419_v45 = vpop.permute.xlu0 %1418 }
 0xde3   :  { %v3111_v46 = vadd.f32 %v1419_v45, %v1415_v34 }
 0xde5   :  { %2459 = vtanh.f32 %v3111_v46  ;;  %v1531_v19 = vrot.slane %v3111_v46, 6 }
 0xdeb   :  { %v2460_v26 = vpop.eup %2459 }
 0xdec   :  { %v1423_v3 = vmul.f32 %v2460_v26, %v1412_v27 }
 0xdee   :  { %1439 = vrot.lane.b32.xlu1 %v1423_v3, %s2606_s0 }
 0xe60   :  { %v1440_v28 = vpop.permute.xlu1 %1439 }
 0xe61   :  { %2312 = vmatmul.msk.f32.vlgmr.msrb.gmra.mxu2 %vm254_vm11, %v1440_v28  ;;  %2313 = vmatmul.msk.f32.vlgmr.msrb.gmra.mxu3 %vm254_vm11, %v1440_v28 }
 0xe62   :  { %1896 = vmatpush.msrb.mxu2 %v2946_v16  ;;  %1916 = vmatpush.msrb.mxu3 %v2985_v40 }
 0xe64   :  { %1897 = vmatpush.msrb.mxu2 %v2949_v18  ;;  %1917 = vmatpush.msrb.mxu3 %v2990_v41 }
 0xe66   :  { %1898 = vmatpush.msrb.mxu2 %v2951_v31  ;;  %1918 = vmatpush.msrb.mxu3 %v2994_v42 }
 0xe68   :  { %1899 = vmatpush.msrb.mxu2 %v2957_v35  ;;  %1919 = vmatpush.msrb.mxu3 %v2998_v44 }
 0xe6a   :  { %1900 = vmatpush.msrb.mxu2 %v2962_v36  ;;  %1920 = vmatpush.msrb.mxu3 %v3005_v6 }
 0xe6c   :  { %1901 = vmatpush.msrb.mxu2 %v2964_v37  ;;  %1921 = vmatpush.msrb.mxu3 %v3009_v15 }
 0xe6e   :  { %1902 = vmatpush.msrb.mxu2 %v2968_v38  ;;  %1922 = vmatpush.msrb.mxu3 %v3013_v1 }
 0xe70   :  { %1903 = vmatpush.msrb.mxu2 %v2972_v39  ;;  %1923 = vmatpush.msrb.mxu3 %v3025_v54 }
 0xee4   :  { %v1460_v30 = vpop.f32.mrf.mxu2  ;;  %v1480_v56 = vpop.f32.mrf.mxu3 }
 0xee5   :  { %v1485_v2 = vrot.slane %v1460_v30, 6  ;;  %v1486_v59 = vrot.slane %v1480_v56, 6 }
 0xee7   :  { %v1489_v7 = vadd.f32 %v1485_v2, %v3095_v62  ;;  %v1490_v60 = vadd.f32 %v1486_v59, %v3107_v53 }
 0xee9   :  { %v2314_v47 = vmul.f32 -1.442695, %v1489_v7  ;;  %v2315_v34 = vmul.f32 -1.442695, %v1490_v60 }
 0xeeb   :  { %2461 = vpow2.f32 %v2314_v47 }
 0xef1   :  { %v2462_v52 = vpop.eup %2461 }
 0xef2   :  { %v1497_v14 = vadd.f32 1.0, %v2462_v52 }
 0xef4   :  { %2463 = vrcp.f32 %v1497_v14  ;;  %v1510_v63 = vand.u32 2147483648, %v1497_v14  ;;  %v1508_v11 = vand.u32 2147483647, %v1497_v14  ;;  %vm1504_vm9 = vweird.f32 %v1497_v14 }
 0xef5   :  { %2465 = vtanh.f32 %v1490_v60 }
 0xef6   :  { %v1511_v17 = vor.u32 1.1754944e-38, %v1510_v63  ;;  %vm1509_vm12 = vcmp.eq.f32.partialorder %v1508_v11, 8.507059e+37  ;;  %2467 = vpow2.f32 %v2315_v34 }
 0xefa   :  { %v2464_v58 = vpop.eup %2463 }
 0xefb   :  { %v1500_v61 = vmul.f32 %v2464_v58, %v1497_v14  ;;  %vm1505_vm14 = vweird.f32 %v2464_v58  ;;  %v2466_v4 = vpop.eup %2465 }
 0xefc   :  { %vm1506_vm10 = vmor %vm1504_vm9, %vm1505_vm14  ;;  %v2468_v45 = vpop.eup %2467 }
 0xefd   :  { %v1501_v57 = vsub.f32 1.0, %v1500_v61  ;;  %v1498_v12 = vadd.f32 1.0, %v2468_v45 }
 0xeff   :  { %v1502_v9 = vmul.f32 %v2464_v58, %v1501_v57  ;;  %2469 = vrcp.f32 %v1498_v12  ;;  %v1525_v3 = vand.u32 2147483648, %v1498_v12  ;;  %vm1519_vm0 = vweird.f32 %v1498_v12 }
 0xf00   :  { %v1523_v28 = vand.u32 2147483647, %v1498_v12 }
 0xf01   :  { %v1503_v13 = vadd.f32 %v2464_v58, %v1502_v9  ;;  %v1526_v2 = vor.u32 1.1754944e-38, %v1525_v3 }
 0xf02   :  { %vm1524_vm7 = vcmp.eq.f32.partialorder %v1523_v28, 8.507059e+37 }
 0xf03   :  { %v1507_v20 = vsel %vm1506_vm10, %v2464_v58, %v1503_v13 }
 0xf04   :  { %v1512_v32 = vsel %vm1509_vm12, %v1511_v17, %v1507_v20 }
 0xf05   :  { %v1534_v33 = vmul.f32 %v2466_v4, %v1512_v32  ;;  %v1533_v24 = vmul.f32 %v1531_v19, %v1512_v32  ;;  %v2470_v8 = vpop.eup %2469 }
 0xf06   :  { %v1515_v50 = vmul.f32 %v2470_v8, %v1498_v12  ;;  %vm1520_vm15 = vweird.f32 %v2470_v8 }
 0xf07   :  { %1536 = vrot.lane.b32.xlu2 %v1534_v33, %s2606_s0  ;;  %vm1521_vm1 = vmor %vm1519_vm0, %vm1520_vm15 }
 0xf08   :  { %v1516_v22 = vsub.f32 1.0, %v1515_v50 }
 0xf0a   :  { %v1517_v0 = vmul.f32 %v2470_v8, %v1516_v22 }
 0xf0c   :  { %v1518_v46 = vadd.f32 %v2470_v8, %v1517_v0 }
 0xf0e   :  { %v1522_v30 = vsel %vm1521_vm1, %v2470_v8, %v1518_v46 }
 0xf0f   :  { %v1527_v47 = vsel %vm1524_vm7, %v1526_v2, %v1522_v30 }
 0xf61   :  { %v1537_v26 = vpop.permute.xlu2 %1536 }
 0xf62   :  { %v3141_v27 = vadd.f32 %v1537_v26, %v1533_v24 }
 0xf64   :  { %2471 = vtanh.f32 %v3141_v27  ;;  %v1636_v34 = vrot.slane %v3141_v27, 6 }
 0xf6a   :  { %v2472_v7 = vpop.eup %2471 }
 0xf6b   :  { %v1541_v52 = vmul.f32 %v2472_v7, %v1527_v47 }
 0xf6d   :  { %v1543_v14 = vrot.slane %v1541_v52, 2 }
 0xf6f   :  { %1544 = vrot.lane.b32.xlu0 %v1543_v14, %s2606_s0 }
 0xfe1   :  { %v1545_v56 = vpop.permute.xlu0 %1544 }
 0xfe2   :  { %2316 = vmatmul.msk.f32.vlgmr.msra.gmra.mxu0 %vm254_vm11, %v1545_v56  ;;  %2317 = vmatmul.msk.f32.vlgmr.msrb.gmra.mxu1 %vm254_vm11, %v1545_v56 }
 0xfe3   :  { %2001 = vmatpush.msra.mxu0 %v2946_v16  ;;  %2021 = vmatpush.msrb.mxu1 %v2985_v40 }
 0xfe5   :  { %2002 = vmatpush.msra.mxu0 %v2949_v18  ;;  %2022 = vmatpush.msrb.mxu1 %v2990_v41 }
 0xfe7   :  { %2003 = vmatpush.msra.mxu0 %v2951_v31  ;;  %2023 = vmatpush.msrb.mxu1 %v2994_v42 }
 0xfe9   :  { %2004 = vmatpush.msra.mxu0 %v2957_v35  ;;  %2024 = vmatpush.msrb.mxu1 %v2998_v44 }
 0xfeb   :  { %2005 = vmatpush.msra.mxu0 %v2962_v36  ;;  %2025 = vmatpush.msrb.mxu1 %v3005_v6 }
 0xfed   :  { %2006 = vmatpush.msra.mxu0 %v2964_v37  ;;  %2026 = vmatpush.msrb.mxu1 %v3009_v15 }
 0xfef   :  { %2007 = vmatpush.msra.mxu0 %v2968_v38  ;;  %2027 = vmatpush.msrb.mxu1 %v3013_v1 }
 0xff1   :  { %2008 = vmatpush.msra.mxu0 %v2972_v39  ;;  %2028 = vmatpush.msrb.mxu1 %v3025_v54 }
0x105f   :  { %v1565_v59 = vpop.f32.mrf.mxu0  ;;  %v1585_v9 = vpop.f32.mrf.mxu1 }
0x1060   :  { %v1590_v58 = vrot.slane %v1565_v59, 4  ;;  %v1591_v11 = vrot.slane %v1585_v9, 4 }
0x1062   :  { %v1594_v60 = vadd.f32 %v1590_v58, %v3093_v5  ;;  %v1595_v17 = vadd.f32 %v1591_v11, %v3105_v51 }
0x1064   :  { %v2318_v61 = vmul.f32 -1.442695, %v1594_v60  ;;  %v2319_v51 = vmul.f32 -1.442695, %v1595_v17 }
0x1066   :  { %2473 = vpow2.f32 %v2318_v61 }
0x106c   :  { %v2474_v57 = vpop.eup %2473 }
0x106d   :  { %v1602_v63 = vadd.f32 1.0, %v2474_v57 }
0x106f   :  { %2475 = vrcp.f32 %v1602_v63  ;;  %v1615_v4 = vand.u32 2147483648, %v1602_v63  ;;  %v1613_v33 = vand.u32 2147483647, %v1602_v63  ;;  %vm1609_vm3 = vweird.f32 %v1602_v63 }
0x1070   :  { %2477 = vtanh.f32 %v1595_v17 }
0x1071   :  { %v1616_v5 = vor.u32 1.1754944e-38, %v1615_v4  ;;  %vm1614_vm5 = vcmp.eq.f32.partialorder %v1613_v33, 8.507059e+37  ;;  %2479 = vpow2.f32 %v2319_v51 }
0x1075   :  { %v2476_v13 = vpop.eup %2475 }
0x1076   :  { %v1605_v19 = vmul.f32 %v2476_v13, %v1602_v63  ;;  %vm1610_vm2 = vweird.f32 %v2476_v13  ;;  %v2478_v12 = vpop.eup %2477 }
0x1077   :  { %vm1611_vm4 = vmor %vm1609_vm3, %vm1610_vm2  ;;  %v2480_v0 = vpop.eup %2479 }
0x1078   :  { %v1606_v20 = vsub.f32 1.0, %v1605_v19  ;;  %v1603_v26 = vadd.f32 1.0, %v2480_v0 }
0x107a   :  { %v1607_v32 = vmul.f32 %v2476_v13, %v1606_v20  ;;  %2481 = vrcp.f32 %v1603_v26  ;;  %v1630_v47 = vand.u32 2147483648, %v1603_v26  ;;  %vm1624_vm8 = vweird.f32 %v1603_v26 }
0x107b   :  { %v1628_v52 = vand.u32 2147483647, %v1603_v26 }
0x107c   :  { %v1608_v24 = vadd.f32 %v2476_v13, %v1607_v32  ;;  %v1631_v56 = vor.u32 1.1754944e-38, %v1630_v47 }
0x107d   :  { %vm1629_vm14 = vcmp.eq.f32.partialorder %v1628_v52, 8.507059e+37 }
0x107e   :  { %v1612_v45 = vsel %vm1611_vm4, %v2476_v13, %v1608_v24 }
0x107f   :  { %v1617_v8 = vsel %vm1614_vm5, %v1616_v5, %v1612_v45 }
0x1080   :  { %v1639_v50 = vmul.f32 %v2478_v12, %v1617_v8  ;;  %v1638_v22 = vmul.f32 %v1636_v34, %v1617_v8  ;;  %v2482_v46 = vpop.eup %2481 }
0x1081   :  { %v1620_v3 = vmul.f32 %v2482_v46, %v1603_v26  ;;  %vm1625_vm6 = vweird.f32 %v2482_v46 }
0x1082   :  { %1641 = vrot.lane.b32.xlu1 %v1639_v50, %s2606_s0  ;;  %vm1626_vm13 = vmor %vm1624_vm8, %vm1625_vm6 }
0x1083   :  { %v1621_v28 = vsub.f32 1.0, %v1620_v3 }
0x1085   :  { %v1622_v30 = vmul.f32 %v2482_v46, %v1621_v28 }
0x1087   :  { %v1623_v27 = vadd.f32 %v2482_v46, %v1622_v30  ;;  %v1754_v30 = vrot.slane %v3082_v25, 6 }
0x1089   :  { %v1627_v14 = vsel %vm1626_vm13, %v2482_v46, %v1623_v27 }
0x108a   :  { %v1632_v58 = vsel %vm1629_vm14, %v1631_v56, %v1627_v14 }
0x10f4   :  { %v1642_v2 = vpop.permute.xlu1 %1641 }
0x10f5   :  { %v3167_v7 = vadd.f32 %v1642_v2, %v1638_v22  ;;  %v1758_v2 = vadd.f32 %v1754_v30, %v3087_v55 }
0x10f7   :  { %2483 = vtanh.f32 %v3167_v7  ;;  %v1741_v63 = vrot.slane %v3167_v7, 6  ;;  %v1762_v7 = vrot.slane %v3084_v10, 6 }
0x10f9   :  { %v1766_v27 = vadd.f32 %v1762_v7, %v1758_v2 }
0x10fb   :  { %v3200_v47 = vadd.f32 %v1766_v27, %v3133_v29 }
0x10fd   :  { %v2484_v59 = vpop.eup %2483 }
0x10fe   :  { %v1646_v60 = vmul.f32 %v2484_v59, %v1632_v58  ;;  %v1763_v58 = vrot.slane %v3098_v21, 6 }
0x1100   :  { %v1648_v61 = vrot.slane %v1646_v60, 4  ;;  %v1767_v25 = vadd.f32 %v1763_v58, %v3101_v43 }
0x1102   :  { %1649 = vrot.lane.b32.xlu2 %v1648_v61, %s2606_s0  ;;  %v3206_v55 = vadd.f32 %v1767_v25, %v3136_v49 }
0x115c   :  { %v1650_v57 = vpop.permute.xlu2 %1649 }
0x115d   :  { %2320 = vmatmul.msk.f32.vlgmr.msra.gmra.mxu2 %vm254_vm11, %v1650_v57  ;;  %2321 = vmatmul.msk.f32.vlgmr.msra.gmra.mxu3 %vm254_vm11, %v1650_v57 }
0x115e   :  { %2106 = vmatpush.msra.mxu2 %v2946_v16  ;;  %2126 = vmatpush.msra.mxu3 %v2985_v40 }
0x1160   :  { %2107 = vmatpush.msra.mxu2 %v2949_v18  ;;  %2127 = vmatpush.msra.mxu3 %v2990_v41 }
0x1162   :  { %2108 = vmatpush.msra.mxu2 %v2951_v31  ;;  %2128 = vmatpush.msra.mxu3 %v2994_v42 }
0x1164   :  { %2109 = vmatpush.msra.mxu2 %v2957_v35  ;;  %2129 = vmatpush.msra.mxu3 %v2998_v44 }
0x1166   :  { %2110 = vmatpush.msra.mxu2 %v2962_v36  ;;  %2130 = vmatpush.msra.mxu3 %v3005_v6 }
0x1168   :  { %2111 = vmatpush.msra.mxu2 %v2964_v37  ;;  %2131 = vmatpush.msra.mxu3 %v3009_v15 }
0x116a   :  { %2112 = vmatpush.msra.mxu2 %v2968_v38  ;;  %2132 = vmatpush.msra.mxu3 %v3013_v1 }
0x116c   :  { %2113 = vmatpush.msra.mxu2 %v2972_v39  ;;  %2133 = vmatpush.msra.mxu3 %v3025_v54 }
0x11e0   :  { %v1670_v16 = vpop.f32.mrf.mxu2  ;;  %v1690_v41 = vpop.f32.mrf.mxu3 }
0x11e1   :  { %v1695_v18 = vrot.slane %v1670_v16, 2  ;;  %v1696_v37 = vrot.slane %v1690_v41, 2 }
0x11e3   :  { %v1699_v31 = vadd.f32 %v1695_v18, %v3095_v62  ;;  %v1700_v38 = vadd.f32 %v1696_v37, %v3107_v53 }
0x11e5   :  { %v2322_v35 = vmul.f32 -1.442695, %v1699_v31  ;;  %v2323_v53 = vmul.f32 -1.442695, %v1700_v38 }
0x11e7   :  { %2485 = vpow2.f32 %v2322_v35 }
0x11ed   :  { %v2486_v36 = vpop.eup %2485 }
0x11ee   :  { %v1707_v40 = vadd.f32 1.0, %v2486_v36 }
0x11f0   :  { %2487 = vrcp.f32 %v1707_v40  ;;  %v1720_v39 = vand.u32 2147483648, %v1707_v40  ;;  %v1718_v1 = vand.u32 2147483647, %v1707_v40  ;;  %vm1714_vm10 = vweird.f32 %v1707_v40 }
0x11f1   :  { %2489 = vtanh.f32 %v1700_v38 }
0x11f2   :  { %v1721_v62 = vor.u32 1.1754944e-38, %v1720_v39  ;;  %vm1719_vm15 = vcmp.eq.f32.partialorder %v1718_v1, 8.507059e+37  ;;  %2491 = vpow2.f32 %v2323_v53 }
0x11f6   :  { %v2488_v42 = vpop.eup %2487 }
0x11f7   :  { %v1710_v44 = vmul.f32 %v2488_v42, %v1707_v40  ;;  %vm1715_vm9 = vweird.f32 %v2488_v42  ;;  %v2490_v11 = vpop.eup %2489 }
0x11f8   :  { %vm1716_vm12 = vmor %vm1714_vm10, %vm1715_vm9  ;;  %v2492_v20 = vpop.eup %2491 }
0x11f9   :  { %v1711_v6 = vsub.f32 1.0, %v1710_v44  ;;  %v1708_v4 = vadd.f32 1.0, %v2492_v20 }
0x11fb   :  { %v1712_v15 = vmul.f32 %v2488_v42, %v1711_v6  ;;  %2493 = vrcp.f32 %v1708_v4  ;;  %v1735_v8 = vand.u32 2147483648, %v1708_v4  ;;  %vm1729_vm1 = vweird.f32 %v1708_v4 }
0x11fc   :  { %v1733_v50 = vand.u32 2147483647, %v1708_v4 }
0x11fd   :  { %v1713_v54 = vadd.f32 %v2488_v42, %v1712_v15  ;;  %v1736_v51 = vor.u32 1.1754944e-38, %v1735_v8 }
0x11fe   :  { %vm1734_vm2 = vcmp.eq.f32.partialorder %v1733_v50, 8.507059e+37 }
0x11ff   :  { %v1717_v9 = vsel %vm1716_vm12, %v2488_v42, %v1713_v54 }
0x1200   :  { %v1722_v13 = vsel %vm1719_vm15, %v1721_v62, %v1717_v9 }
0x1201   :  { %v1744_v17 = vmul.f32 %v2490_v11, %v1722_v13  ;;  %v1743_v19 = vmul.f32 %v1741_v63, %v1722_v13  ;;  %v2494_v32 = vpop.eup %2493 }
0x1202   :  { %v1725_v33 = vmul.f32 %v2494_v32, %v1708_v4  ;;  %vm1730_vm0 = vweird.f32 %v2494_v32 }
0x1203   :  { %1746 = vrot.lane.b32.xlu0 %v1744_v17, %s2606_s0  ;;  %vm1731_vm7 = vmor %vm1729_vm1, %vm1730_vm0 }
0x1204   :  { %v1726_v24 = vsub.f32 1.0, %v1725_v33 }
0x1206   :  { %v1727_v5 = vmul.f32 %v2494_v32, %v1726_v24 }
0x1208   :  { %v1728_v12 = vadd.f32 %v2494_v32, %v1727_v5 }
0x120a   :  { %v1732_v22 = vsel %vm1731_vm7, %v2494_v32, %v1728_v12 }
0x120b   :  { %v1737_v26 = vsel %vm1734_vm2, %v1736_v51, %v1732_v22 }
0x1275   :  { %v1747_v34 = vpop.permute.xlu0 %1746 }
0x1276   :  { %v1749_v45 = vadd.f32 %v1747_v34, %v1743_v19  ;;  %v3215_v34 = vadd.f32 %v3091_v48, %v3133_v29 }
0x1278   :  { %2495 = vtanh.f32 %v1749_v45  ;;  %v1858_v41 = vrot.slane %v1749_v45, 6 }
0x127e   :  { %v2496_v0 = vpop.eup %2495 }
0x127f   :  { %v1751_v46 = vmul.f32 %v2496_v0, %v1737_v26  ;;  %v3220_v26 = vadd.f32 %v3103_v23, %v3136_v49 }
0x1281   :  { %v1771_v3 = vrot.slane %v1751_v46, 6 }
0x1283   :  { %1772 = vrot.lane.b32.xlu1 %v1771_v3, %s2606_s0 }
0x12f5   :  { %v1773_v28 = vpop.permute.xlu1 %1772 }
0x12f6   :  { %2324 = vmatmul.msk.f32.vlgmr.msrb.gmra.mxu0 %vm254_vm11, %v1773_v28  ;;  %2325 = vmatmul.msk.f32.vlgmr.msra.gmra.mxu1 %vm254_vm11, %v1773_v28 }
0x1373   :  { %v1793_v52 = vpop.f32.mrf.mxu0  ;;  %v1813_v61 = vpop.f32.mrf.mxu1 }
0x1374   :  { %v1816_v14 = vadd.f32 %v1793_v52, %v3200_v47  ;;  %v1817_v57 = vadd.f32 %v1813_v61, %v3206_v55 }
0x1376   :  { %v2326_v56 = vmul.f32 -1.442695, %v1816_v14  ;;  %v2327_v6 = vmul.f32 -1.442695, %v1817_v57 }
0x1378   :  { %2497 = vpow2.f32 %v2326_v56 }
0x137e   :  { %v2498_v59 = vpop.eup %2497 }
0x137f   :  { %v1824_v60 = vadd.f32 1.0, %v2498_v59 }
0x1381   :  { %2499 = vrcp.f32 %v1824_v60  ;;  %v1837_v31 = vand.u32 2147483648, %v1824_v60  ;;  %v1835_v36 = vand.u32 2147483647, %v1824_v60  ;;  %vm1831_vm4 = vweird.f32 %v1824_v60 }
0x1382   :  { %2501 = vtanh.f32 %v1817_v57 }
0x1383   :  { %v1838_v21 = vor.u32 1.1754944e-38, %v1837_v31  ;;  %vm1836_vm6 = vcmp.eq.f32.partialorder %v1835_v36, 8.507059e+37  ;;  %2503 = vpow2.f32 %v2327_v6 }
0x1387   :  { %v2500_v10 = vpop.eup %2499 }
0x1388   :  { %v1827_v16 = vmul.f32 %v2500_v10, %v1824_v60  ;;  %vm1832_vm3 = vweird.f32 %v2500_v10  ;;  %v2502_v37 = vpop.eup %2501 }
0x1389   :  { %vm1833_vm5 = vmor %vm1831_vm4, %vm1832_vm3  ;;  %v2504_v39 = vpop.eup %2503 }
0x138a   :  { %v1828_v18 = vsub.f32 1.0, %v1827_v16  ;;  %v1825_v15 = vadd.f32 1.0, %v2504_v39 }
0x138c   :  { %v1829_v35 = vmul.f32 %v2500_v10, %v1828_v18  ;;  %2505 = vrcp.f32 %v1825_v15  ;;  %v1852_v17 = vand.u32 2147483648, %v1825_v15  ;;  %vm1846_vm13 = vweird.f32 %v1825_v15 }
0x138d   :  { %v1850_v19 = vand.u32 2147483647, %v1825_v15 }
0x138e   :  { %v1830_v40 = vadd.f32 %v2500_v10, %v1829_v35  ;;  %v1853_v20 = vor.u32 1.1754944e-38, %v1852_v17 }
0x138f   :  { %vm1851_vm9 = vcmp.eq.f32.partialorder %v1850_v19, 8.507059e+37 }
0x1390   :  { %v1834_v43 = vsel %vm1833_vm5, %v2500_v10, %v1830_v40 }
0x1391   :  { %v1839_v42 = vsel %vm1836_vm6, %v1838_v21, %v1834_v43 }
0x1392   :  { %v1861_v38 = vmul.f32 %v2502_v37, %v1839_v42  ;;  %v1860_v44 = vmul.f32 %v1858_v41, %v1839_v42  ;;  %v2506_v1 = vpop.eup %2505 }
0x1393   :  { %v1842_v54 = vmul.f32 %v2506_v1, %v1825_v15  ;;  %vm1847_vm8 = vweird.f32 %v2506_v1 }
0x1394   :  { %1863 = vrot.lane.b32.xlu2 %v1861_v38, %s2606_s0  ;;  %vm1848_vm14 = vmor %vm1846_vm13, %vm1847_vm8 }
0x1395   :  { %v1843_v62 = vsub.f32 1.0, %v1842_v54 }
0x1397   :  { %v1844_v63 = vmul.f32 %v2506_v1, %v1843_v62 }
0x1399   :  { %v1845_v13 = vadd.f32 %v2506_v1, %v1844_v63 }
0x139b   :  { %v1849_v53 = vsel %vm1848_vm14, %v2506_v1, %v1845_v13 }
0x139c   :  { %v1854_v32 = vsel %vm1851_vm9, %v1853_v20, %v1849_v53 }
0x13ee   :  { %v1864_v9 = vpop.permute.xlu2 %1863 }
0x13ef   :  { %v1866_v11 = vadd.f32 %v1864_v9, %v1860_v44 }
0x13f1   :  { %2507 = vtanh.f32 %v1866_v11  ;;  %v1976_v52 = vrot.slane %v1866_v11, 6 }
0x13f7   :  { %v2508_v4 = vpop.eup %2507 }
0x13f8   :  { %v1868_v33 = vmul.f32 %v2508_v4, %v1854_v32 }
0x13fa   :  { %1884 = vrot.lane.b32.xlu0 %v1868_v33, %s2606_s0 }
0x146c   :  { %v1885_v24 = vpop.permute.xlu0 %1884 }
0x146d   :  { %2328 = vmatmul.msk.f32.vlgmr.msrb.gmra.mxu2 %vm254_vm11, %v1885_v24  ;;  %2329 = vmatmul.msk.f32.vlgmr.msrb.gmra.mxu3 %vm254_vm11, %v1885_v24 }
0x14f0   :  { %v1905_v5 = vpop.f32.mrf.mxu2  ;;  %v1925_v51 = vpop.f32.mrf.mxu3 }
0x14f1   :  { %v1930_v45 = vrot.slane %v1905_v5, 6  ;;  %v1931_v0 = vrot.slane %v1925_v51, 6 }
0x14f3   :  { %v1934_v12 = vadd.f32 %v1930_v45, %v3215_v34  ;;  %v1935_v3 = vadd.f32 %v1931_v0, %v3220_v26 }
0x14f5   :  { %v2330_v8 = vmul.f32 -1.442695, %v1934_v12  ;;  %v2331_v58 = vmul.f32 -1.442695, %v1935_v3 }
0x14f7   :  { %2509 = vpow2.f32 %v2330_v8 }
0x14fd   :  { %v2510_v50 = vpop.eup %2509 }
0x14fe   :  { %v1942_v22 = vadd.f32 1.0, %v2510_v50 }
0x1500   :  { %2511 = vrcp.f32 %v1942_v22  ;;  %v1955_v29 = vand.u32 2147483648, %v1942_v22  ;;  %v1953_v2 = vand.u32 2147483647, %v1942_v22  ;;  %vm1949_vm12 = vweird.f32 %v1942_v22 }
0x1501   :  { %2513 = vtanh.f32 %v1935_v3 }
0x1502   :  { %v1956_v27 = vor.u32 1.1754944e-38, %v1955_v29  ;;  %vm1954_vm0 = vcmp.eq.f32.partialorder %v1953_v2, 8.507059e+37  ;;  %2515 = vpow2.f32 %v2331_v58 }
0x1506   :  { %v2512_v46 = vpop.eup %2511 }
0x1507   :  { %v1945_v28 = vmul.f32 %v2512_v46, %v1942_v22  ;;  %vm1950_vm10 = vweird.f32 %v2512_v46  ;;  %v2514_v56 = vpop.eup %2513 }
0x1508   :  { %vm1951_vm15 = vmor %vm1949_vm12, %vm1950_vm10  ;;  %v2516_v60 = vpop.eup %2515 }
0x1509   :  { %v1946_v48 = vsub.f32 1.0, %v1945_v28  ;;  %v1943_v25 = vadd.f32 1.0, %v2516_v60 }
0x150b   :  { %v1947_v30 = vmul.f32 %v2512_v46, %v1946_v48  ;;  %2517 = vrcp.f32 %v1943_v25  ;;  %v1970_v36 = vand.u32 2147483648, %v1943_v25  ;;  %vm1964_vm7 = vweird.f32 %v1943_v25 }
0x150c   :  { %v1968_v40 = vand.u32 2147483647, %v1943_v25 }
0x150d   :  { %v1948_v7 = vadd.f32 %v2512_v46, %v1947_v30  ;;  %v1971_v41 = vor.u32 1.1754944e-38, %v1970_v36 }
0x150e   :  { %vm1969_vm3 = vcmp.eq.f32.partialorder %v1968_v40, 8.507059e+37 }
0x150f   :  { %v1952_v14 = vsel %vm1951_vm15, %v2512_v46, %v1948_v7 }
0x1510   :  { %v1957_v23 = vsel %vm1954_vm0, %v1956_v27, %v1952_v14 }
0x1511   :  { %v1979_v49 = vmul.f32 %v2514_v56, %v1957_v23  ;;  %v1978_v59 = vmul.f32 %v1976_v52, %v1957_v23  ;;  %v2518_v61 = vpop.eup %2517 }
0x1512   :  { %v1960_v10 = vmul.f32 %v2518_v61, %v1943_v25  ;;  %vm1965_vm1 = vweird.f32 %v2518_v61 }
0x1513   :  { %1981 = vrot.lane.b32.xlu1 %v1979_v49, %s2606_s0  ;;  %vm1966_vm2 = vmor %vm1964_vm7, %vm1965_vm1 }
0x1514   :  { %v1961_v57 = vsub.f32 1.0, %v1960_v10 }
0x1516   :  { %v1962_v16 = vmul.f32 %v2518_v61, %v1961_v57 }
0x1518   :  { %v1963_v35 = vadd.f32 %v2518_v61, %v1962_v16 }
0x151a   :  { %v1967_v21 = vsel %vm1966_vm2, %v2518_v61, %v1963_v35 }
0x151b   :  { %v1972_v37 = vsel %vm1969_vm3, %v1971_v41, %v1967_v21 }
0x1585   :  { %v1982_v18 = vpop.permute.xlu1 %1981 }
0x1586   :  { %v1984_v31 = vadd.f32 %v1982_v18, %v1978_v59 }
0x1588   :  { %2519 = vtanh.f32 %v1984_v31  ;;  %v2081_v33 = vrot.slane %v1984_v31, 6 }
0x158e   :  { %v2520_v43 = vpop.eup %2519 }
0x158f   :  { %v1986_v42 = vmul.f32 %v2520_v43, %v1972_v37 }
0x1591   :  { %v1988_v38 = vrot.slane %v1986_v42, 2 }
0x1593   :  { %1989 = vrot.lane.b32.xlu2 %v1988_v38, %s2606_s0 }
0x15ed   :  { %v1990_v44 = vpop.permute.xlu2 %1989 }
0x15ee   :  { %2332 = vmatmul.msk.f32.vlgmr.msra.gmra.mxu0 %vm254_vm11, %v1990_v44  ;;  %2333 = vmatmul.msk.f32.vlgmr.msrb.gmra.mxu1 %vm254_vm11, %v1990_v44 }
0x166b   :  { %v2010_v6 = vpop.f32.mrf.mxu0  ;;  %v2030_v63 = vpop.f32.mrf.mxu1 }
0x166c   :  { %v2035_v39 = vrot.slane %v2010_v6, 4  ;;  %v2036_v9 = vrot.slane %v2030_v63, 4  ;;  %v127_v63 = vld [vmem:[#allocation2 + $0x4a0] sm:$0xff] }
0x166e   :  { %v2039_v15 = vadd.f32 %v2035_v39, %v3200_v47  ;;  %v2040_v13 = vadd.f32 %v2036_v9, %v3206_v55  ;;  %v126_v9 = vld [vmem:[#allocation2 + $0x480] sm:$0xff] }
0x1670   :  { %v2334_v1 = vmul.f32 -1.442695, %v2039_v15  ;;  %v2335_v55 = vmul.f32 -1.442695, %v2040_v13 }
0x1672   :  { %2521 = vpow2.f32 %v2334_v1 }
0x1678   :  { %v2522_v54 = vpop.eup %2521 }
0x1679   :  { %v2047_v62 = vadd.f32 1.0, %v2522_v54  ;;  %v129_v54 = vld [vmem:[#allocation2 + $0x4e0] sm:$0xff] }
0x167a   :  { %2211 = vmatpush.msrb.mxu0 %v129_v54 }
0x167b   :  { %2523 = vrcp.f32 %v2047_v62  ;;  %v2060_v53 = vand.u32 2147483648, %v2047_v62  ;;  %v2058_v4 = vand.u32 2147483647, %v2047_v62  ;;  %vm2054_vm5 = vweird.f32 %v2047_v62 }
0x167c   :  { %2525 = vtanh.f32 %v2040_v13  ;;  %v125_v13 = vld [vmem:[#allocation2 + $0x460] sm:$0xff] }
0x167d   :  { %v2061_v47 = vor.u32 1.1754944e-38, %v2060_v53  ;;  %vm2059_vm8 = vcmp.eq.f32.partialorder %v2058_v4, 8.507059e+37  ;;  %2527 = vpow2.f32 %v2335_v55  ;;  %v123_v53 = vld [vmem:[#allocation2 + $0x420] sm:$0xff] }
0x167e   :  { %v122_v4 = vld [vmem:[#allocation2 + $0x400] sm:$0xff] }
0x1681   :  { %v2524_v11 = vpop.eup %2523 }
0x1682   :  { %v2050_v17 = vmul.f32 %v2524_v11, %v2047_v62  ;;  %vm2055_vm4 = vweird.f32 %v2524_v11  ;;  %v2526_v5 = vpop.eup %2525  ;;  %v128_v62 = vld [vmem:[#allocation2 + $0x4c0] sm:$0xff] }
0x1683   :  { %vm2056_vm6 = vmor %vm2054_vm5, %vm2055_vm4  ;;  %v2528_v50 = vpop.eup %2527  ;;  %2212 = vmatpush.msrb.mxu0 %v128_v62  ;;  %vm2223_vm5 = vcmask 9216  }
0x1684   :  { %v2051_v19 = vsub.f32 1.0, %v2050_v17  ;;  %v2048_v22 = vadd.f32 1.0, %v2528_v50 }
0x1685   :  { %2213 = vmatpush.msrb.mxu0 %v127_v63 }
0x1686   :  { %v2052_v20 = vmul.f32 %v2524_v11, %v2051_v19  ;;  %2529 = vrcp.f32 %v2048_v22  ;;  %v2075_v30 = vand.u32 2147483648, %v2048_v22  ;;  %vm2069_vm14 = vweird.f32 %v2048_v22  ;;  %v124_v19 = vld [vmem:[#allocation2 + $0x440] sm:$0xff] }
0x1687   :  { %v2073_v2 = vand.u32 2147483647, %v2048_v22  ;;  %2214 = vmatpush.msrb.mxu0 %v126_v9 }
0x1688   :  { %v2053_v32 = vadd.f32 %v2524_v11, %v2052_v20  ;;  %v2076_v27 = vor.u32 1.1754944e-38, %v2075_v30 }
0x1689   :  { %vm2074_vm10 = vcmp.eq.f32.partialorder %v2073_v2, 8.507059e+37  ;;  %2215 = vmatpush.msrb.mxu0 %v125_v13 }
0x168a   :  { %v2057_v24 = vsel %vm2056_vm6, %v2524_v11, %v2053_v32 }
0x168b   :  { %v2062_v45 = vsel %vm2059_vm8, %v2061_v47, %v2057_v24  ;;  %2216 = vmatpush.msrb.mxu0 %v124_v19 }
0x168c   :  { %v2084_v12 = vmul.f32 %v2526_v5, %v2062_v45  ;;  %v2083_v8 = vmul.f32 %v2081_v33, %v2062_v45  ;;  %v2530_v51 = vpop.eup %2529 }
0x168d   :  { %v2065_v0 = vmul.f32 %v2530_v51, %v2048_v22  ;;  %vm2070_vm13 = vweird.f32 %v2530_v51  ;;  %2217 = vmatpush.msrb.mxu0 %v123_v53 }
0x168e   :  { %2086 = vrot.lane.b32.xlu0 %v2084_v12, %s2606_s0  ;;  %vm2071_vm9 = vmor %vm2069_vm14, %vm2070_vm13 }
0x168f   :  { %v2066_v46 = vsub.f32 1.0, %v2065_v0  ;;  %2218 = vmatpush.msrb.mxu0 %v122_v4 }
0x1691   :  { %v2067_v3 = vmul.f32 %v2530_v51, %v2066_v46  ;;  %v130_v46 = vld [vmem:[#allocation2 + $0x2e1] ss:$0 sm:$0xff] }
0x1693   :  { %v2068_v29 = vadd.f32 %v2530_v51, %v2067_v3 }
0x1695   :  { %v2072_v7 = vsel %vm2071_vm9, %v2530_v51, %v2068_v29 }
0x1696   :  { %v2077_v14 = vsel %vm2074_vm10, %v2076_v27, %v2072_v7 }
0x1700   :  { %v2087_v28 = vpop.permute.xlu0 %2086 }
0x1701   :  { %v2089_v48 = vadd.f32 %v2087_v28, %v2083_v8 }
0x1703   :  { %2531 = vtanh.f32 %v2089_v48  ;;  %v2186_v37 = vrot.slane %v2089_v48, 6 }
0x1709   :  { %v2532_v52 = vpop.eup %2531 }
0x170a   :  { %v2091_v56 = vmul.f32 %v2532_v52, %v2077_v14 }
0x170c   :  { %v2093_v23 = vrot.slane %v2091_v56, 4 }
0x170e   :  { %2094 = vrot.lane.b32.xlu1 %v2093_v23, %s2606_s0 }
0x1780   :  { %v2095_v49 = vpop.permute.xlu1 %2094 }
0x1781   :  { %2336 = vmatmul.msk.f32.vlgmr.msra.gmra.mxu2 %vm254_vm11, %v2095_v49  ;;  %2337 = vmatmul.msk.f32.vlgmr.msra.gmra.mxu3 %vm254_vm11, %v2095_v49 }
0x1804   :  { %v2115_v59 = vpop.f32.mrf.mxu2  ;;  %v2135_v57 = vpop.f32.mrf.mxu3 }
0x1805   :  { %v2140_v58 = vrot.slane %v2115_v59, 2  ;;  %v2141_v16 = vrot.slane %v2135_v57, 2 }
0x1807   :  { %v2144_v60 = vadd.f32 %v2140_v58, %v3215_v34  ;;  %v2145_v31 = vadd.f32 %v2141_v16, %v3220_v26 }
0x1809   :  { %v2338_v25 = vmul.f32 -1.442695, %v2144_v60  ;;  %v2339_v26 = vmul.f32 -1.442695, %v2145_v31 }
0x180b   :  { %2533 = vpow2.f32 %v2338_v25 }
0x1811   :  { %v2534_v61 = vpop.eup %2533 }
0x1812   :  { %v2152_v10 = vadd.f32 1.0, %v2534_v61 }
0x1814   :  { %2535 = vrcp.f32 %v2152_v10  ;;  %v2165_v40 = vand.u32 2147483648, %v2152_v10  ;;  %v2163_v41 = vand.u32 2147483647, %v2152_v10  ;;  %vm2159_vm15 = vweird.f32 %v2152_v10 }
0x1815   :  { %2537 = vtanh.f32 %v2145_v31 }
0x1816   :  { %v2166_v34 = vor.u32 1.1754944e-38, %v2165_v40  ;;  %vm2164_vm1 = vcmp.eq.f32.partialorder %v2163_v41, 8.507059e+37  ;;  %2539 = vpow2.f32 %v2339_v26 }
0x181a   :  { %v2536_v18 = vpop.eup %2535 }
0x181b   :  { %v2155_v35 = vmul.f32 %v2536_v18, %v2152_v10  ;;  %vm2160_vm12 = vweird.f32 %v2536_v18  ;;  %v2538_v38 = vpop.eup %2537 }
0x181c   :  { %vm2161_vm0 = vmor %vm2159_vm15, %vm2160_vm12  ;;  %v2540_v15 = vpop.eup %2539 }
0x181d   :  { %v2156_v36 = vsub.f32 1.0, %v2155_v35  ;;  %v2153_v1 = vadd.f32 1.0, %v2540_v15 }
0x181f   :  { %v2157_v21 = vmul.f32 %v2536_v18, %v2156_v36  ;;  %2541 = vrcp.f32 %v2153_v1  ;;  %v2180_v5 = vand.u32 2147483648, %v2153_v1  ;;  %vm2174_vm2 = vweird.f32 %v2153_v1 }
0x1820   :  { %v2178_v45 = vand.u32 2147483647, %v2153_v1 }
0x1821   :  { %v2158_v43 = vadd.f32 %v2536_v18, %v2157_v21  ;;  %v2181_v8 = vor.u32 1.1754944e-38, %v2180_v5 }
0x1822   :  { %vm2179_vm4 = vcmp.eq.f32.partialorder %v2178_v45, 8.507059e+37 }
0x1823   :  { %v2162_v42 = vsel %vm2161_vm0, %v2536_v18, %v2158_v43 }
0x1824   :  { %v2167_v44 = vsel %vm2164_vm1, %v2166_v34, %v2162_v42 }
0x1825   :  { %v2189_v6 = vmul.f32 %v2538_v38, %v2167_v44  ;;  %v2188_v39 = vmul.f32 %v2186_v37, %v2167_v44  ;;  %v2542_v11 = vpop.eup %2541 }
0x1826   :  { %v2170_v17 = vmul.f32 %v2542_v11, %v2153_v1  ;;  %vm2175_vm7 = vweird.f32 %v2542_v11 }
0x1827   :  { %2191 = vrot.lane.b32.xlu2 %v2189_v6, %s2606_s0  ;;  %vm2176_vm3 = vmor %vm2174_vm2, %vm2175_vm7 }
0x1828   :  { %v2171_v20 = vsub.f32 1.0, %v2170_v17 }
0x182a   :  { %v2172_v32 = vmul.f32 %v2542_v11, %v2171_v20 }
0x182c   :  { %v2173_v24 = vadd.f32 %v2542_v11, %v2172_v32 }
0x182e   :  { %v2177_v12 = vsel %vm2176_vm3, %v2542_v11, %v2173_v24 }
0x182f   :  { %v2182_v50 = vsel %vm2179_vm4, %v2181_v8, %v2177_v12 }
0x1881   :  { %v2192_v47 = vpop.permute.xlu2 %2191 }
0x1882   :  { %v2194_v33 = vadd.f32 %v2192_v47, %v2188_v39 }
0x1884   :  { %2543 = vtanh.f32 %v2194_v33 }
0x188a   :  { %v2544_v55 = vpop.eup %2543 }
0x188b   :  { %v2196_v22 = vmul.f32 %v2544_v55, %v2182_v50 }
0x188d   :  { %v2198_v51 = vrot.slane %v2196_v22, 6 }
0x188f   :  { %2199 = vrot.lane.b32.xlu0 %v2198_v51, %s2606_s0 }
0x1901   :  { %v2200_v0 = vpop.permute.xlu0 %2199 }
0x1902   :  { %2340 = vmatmul.msk.f32.vlgmr.msrb.gmra.mxu0 %vm254_vm11, %v2200_v0 }
0x197f   :  { %v2220_v3 = vpop.f32.mrf.mxu0 }
0x1980   :  { %v2221_v28 = vadd.f32 %v2220_v3, %v130_v46 }
0x1982   :  { %v2224_v48 = vsel %vm2223_vm5, %v2221_v28, -inf }
0x1983   :  { %2225 = vmax.xlane.f32.xlu1 %v2224_v48 }
0x19f6   :  { %v2226_v29 = vpop.xlane.xlu1 %2225 }
0x19f7   :  { %v2227_v30 = vsub.f32 %v2221_v28, %v2226_v29 }
0x19f9   :  { %v2228_v2 = vmul.f32 1.442695, %v2227_v30 }
0x19fb   :  { %2545 = vpow2.f32 %v2228_v2 }
0x1a01   :  { %v2546_v7 = vpop.eup %2545 }
0x1a02   :  { %v2230_v27 = vsel %vm2223_vm5, %v2546_v7, 0.0 }
0x1a03   :  { %2231 = vadd.xlane.f32.xlu2 %v2230_v27 }
0x1a76   :  { %v2232_v52 = vpop.xlane.xlu2 %2231 }
0x1a77   :  { %2547 = vlog2.f32 %v2232_v52 }
0x1a7d   :  { %v2548_v14 = vpop.eup %2547 }
0x1a7e   :  { %v2234_v56 = vmul.f32 0.6931472, %v2548_v14 }
0x1a80   :  { %v2235_v23 = vsub.f32 %v2227_v30, %v2234_v56 }
0x1a82   :  { %2236 = vst.msk [vmem:[#allocation5] sm:$0x3] %vm2223_vm5, %v2235_v23 }
0x1a83   :  { %2247 = dma.vmem_to_hbm [thread:$0]  %s2243_s20, 32, %s2245_s23, [#allocation4]  }
0x1a84   :  { %2599 = dma.done.wait [#allocation4], 32  }
0x1a85   :  { %2600 = vsyncadd [#allocation4], 4294967264 }
0x1a86   :  { %2252 = vsyncpa [#allocation3], 1 }
0x1a87   :  { %2253 = vsyncpa [#allocation4], 1 }

</bundles_post_ra>
